<compile_context>
chip_gen: v7x
topology: tpu7x:2x2x1
jax: 0.10.0
libtpu: 0.0.40
codegen_flags: <defaults>
</compile_context>

<pallas_src>
import functools

import jax
import jax.numpy as jnp
from jax import lax
from jax.experimental import pallas as pl
from jax.experimental.pallas import tpu as pltpu


def _silu(x):
    # x * sigmoid(x); approx reciprocal runs on the otherwise-idle EUP slot.
    return x * pl.reciprocal(1.0 + jnp.exp(-x), approx=True)


def _softmax_rows(v):
    # Exact divide: these two (1, C) denominators rescale the whole output.
    m = jnp.max(v, axis=-1, keepdims=True)
    e = jnp.exp(v - m)
    return e / jnp.sum(e, axis=-1, keepdims=True)


# ----------------------- fused conv + pool + gate + combine -----------------------
def _fused_kernel(ph_ref, x4_ref, wt_ref, scale_ref, bias_ref,
                  w1_ref, w3_ref, w4_ref, out_ref, *, wp, wout, inv_hw):
    m = out_ref.shape[1]                 # Hout * Wp rows (junk cols included)
    c = out_ref.shape[2]

    # --- 3x3 / stride-2 conv: nine accumulating MXU matmuls over *contiguous*
    #     windows of the flattened phase slabs (no tap relayout copies).
    #     tap(kh,kw)[r,s] = phase[2*(kh%2)+(kw%2)][(r + kh//2)*Wp + (s + kw//2)]
    acc = jnp.zeros((m, c), jnp.float32)
    for kh in range(3):
        for kw in range(3):
            p = 2 * (kh % 2) + (kw % 2)
            off = (kh // 2) * wp + (kw // 2)
            lhs = ph_ref[0, p, pl.ds(off, m), :]          # (m, Cin) bf16, contiguous
            acc = acc + jnp.dot(lhs, wt_ref[kh, kw],
                                preferred_element_type=jnp.float32)

    # --- BatchNorm (eval-mode, folded to scale/bias) + SiLU; zero the junk
    #     (width-padding) columns once so they drop out of the pool & combine.
    x3f = _silu(acc * scale_ref[...] + bias_ref[...])     # (m, C) f32
    col = lax.broadcasted_iota(jnp.int32, (m, 1), 0) % wp
    x3f = jnp.where(col < wout, x3f, 0.0)

    x4 = x4_ref[0]                                        # (m, C) bf16, junk cols = 0

    # --- pooled spatial mean of (x3 + x4); the sum is never materialized.
    pooled = (jnp.sum(x3f, axis=0, keepdims=True)
              + jnp.sum(x4, axis=0, keepdims=True, dtype=jnp.float32)) * inv_hw

    # --- gate: fc -> SiLU -> {fc3, fc4} -> SiLU -> channel softmax.
    #     torch.Softmax(dim=1) on the stacked (N, C, 2) tensor == independent
    #     channel softmax of each branch.
    y = _silu(jnp.dot(pooled.astype(w1_ref.dtype), w1_ref[...],
                      preferred_element_type=jnp.float32))
    y3 = _silu(jnp.dot(y.astype(w3_ref.dtype), w3_ref[...],
                       preferred_element_type=jnp.float32))
    y4 = _silu(jnp.dot(y.astype(w4_ref.dtype), w4_ref[...],
                       preferred_element_type=jnp.float32))
    z3 = _softmax_rows(y3)                                # (1, C) f32
    z4 = _softmax_rows(y4)

    # --- gated combine in bf16 (junk columns are stripped on the host).
    comb = (x3f * z3).astype(x4.dtype) + x4 * z4.astype(x4.dtype)
    out_ref[0] = comb.astype(out_ref.dtype)


def _round_up(x, mult):
    return (x + mult - 1) // mult * mult


def feature_fusion_2maps_forward(x3_nchw, x4_nchw, params, *, out_dtype=jnp.bfloat16):
    N, Cin, Hin, Win = x3_nchw.shape
    Nb, C, Hout, Wout = x4_nchw.shape
    assert Nb == N and params["wconv"].shape == (C, Cin, 3, 3)
    assert Hin == 2 * Hout and Win == 2 * Wout, "x3 must have 2x x4's spatial size"
    Cr = params["w1"].shape[1]
    HW = Hout * Wout

    cdt = jnp.bfloat16               # compute / IO dtype on the big streams

    # Padded phase-row stride (sublane dim).  Align to 16/8 only when the extra
    # zero-column HBM traffic stays under ~12.5%; otherwise keep it minimal and
    # accept slightly misaligned contiguous window loads (cheaper than +X% HBM
    # on a memory-bound kernel).
    Wp = Wout + 1
    for mult in (16, 8):
        cand = _round_up(Wout + 1, mult)
        if (cand - (Wout + 1)) * 8 <= (Wout + 1):
            Wp = cand
            break
    Hp = Hout + 2                    # +1 real halo row (bottom pad) + 1 junk row
    M = Hout * Wp                    # kernel row count (junk cols included)

    # ---- host-side layout prep: ONE relayout pass per tensor, no restack ----
    # 2x2 spatial phases of the conv-padded x3: phase[2p+q][i, j] = xp[2i+p, 2j+q].
    x3_nhwc = jnp.transpose(x3_nchw, (0, 2, 3, 1)).astype(cdt)
    xp = jnp.pad(x3_nhwc,
                 ((0, 0), (1, 2 * Hp - Hin - 1), (1, 2 * Wp - Win - 1), (0, 0)))
    phases = jnp.stack([xp[:, p::2, q::2, :] for p in (0, 1) for q in (0, 1)],
                       axis=1)                               # (N, 4, Hp, Wp, Cin)
    phases = phases.reshape(N, 4, Hp * Wp, Cin)              # flattened slabs

    # x4 in the same junk-padded (Hout, Wp) row layout, flattened.
    x4p = jnp.pad(jnp.transpose(x4_nchw, (0, 2, 3, 1)).astype(cdt),
                  ((0, 0), (0, 0), (0, Wp - Wout), (0, 0))).reshape(N, M, C)

    # Conv weight OIHW -> (3, 3, Cin, C): tap (kh, kw) is the (Cin, C) matmul RHS.
    w_taps = jnp.transpose(params["wconv"], (2, 3, 1, 0)).astype(cdt)
    w1 = params["w1"].astype(cdt)
    w3 = params["w3"].astype(cdt)
    w4 = params["w4"].astype(cdt)
    bn_scale = params["bn_scale"].reshape(1, C).astype(jnp.float32)
    bn_bias = params["bn_bias"].reshape(1, C).astype(jnp.float32)

    # ---- VMEM budget: double-buffered per-batch blocks + f32 temporaries ----
    phase_b = 4 * Hp * Wp * Cin * 2
    x4_b = M * C * 2
    out_b = M * C * jnp.dtype(out_dtype).itemsize
    w_b = (9 * Cin * C + C * Cr + 2 * Cr * C) * 2 + 2 * C * 4
    tmp_b = 3 * M * C * 4            # conv acc / masked x3 / combine f32 temporaries
    need = 2 * (phase_b + x4_b + out_b) + 2 * w_b + tmp_b
    try:
        vmem_cap = int(pltpu.get_tpu_info().vmem_capacity_bytes)
    except Exception:                # conservative fallback = v7x physical VMEM
        vmem_cap = 64 << 20
    vmem_limit = int(max(32 << 20,
                         min(int(need * 1.25) + (4 << 20), int(vmem_cap * 0.85))))

    out_flat = pl.pallas_call(
        functools.partial(_fused_kernel, wp=Wp, wout=Wout, inv_hw=1.0 / float(HW)),
        out_shape=jax.ShapeDtypeStruct((N, M, C), out_dtype),
        grid_spec=pltpu.PrefetchScalarGridSpec(
            num_scalar_prefetch=0,
            grid=(N,),
            in_specs=[
                pl.BlockSpec((1, 4, Hp * Wp, Cin), lambda n: (n, 0, 0, 0)),  # x3 phases
                pl.BlockSpec((1, M, C), lambda n: (n, 0, 0)),                # x4
                pl.BlockSpec((3, 3, Cin, C), lambda n: (0, 0, 0, 0)),        # conv taps
                pl.BlockSpec((1, C), lambda n: (0, 0)),                      # bn scale
                pl.BlockSpec((1, C), lambda n: (0, 0)),                      # bn bias
                pl.BlockSpec((C, Cr), lambda n: (0, 0)),                     # fc
                pl.BlockSpec((Cr, C), lambda n: (0, 0)),                     # fc3
                pl.BlockSpec((Cr, C), lambda n: (0, 0)),                     # fc4
            ],
            out_specs=pl.BlockSpec((1, M, C), lambda n: (n, 0, 0)),
        ),
        compiler_params=pltpu.CompilerParams(
            dimension_semantics=("parallel",),
            vmem_limit_bytes=vmem_limit,
        ),
    )(phases, x4p, w_taps, bn_scale, bn_bias, w1, w3, w4)

    # Strip the junk columns; XLA fuses the slice into the NHWC->NCHW transpose.
    out = out_flat.reshape(N, Hout, Wp, C)[:, :, :Wout, :]
    return jnp.transpose(out, (0, 3, 1, 2))


def make_params(key, max_channel, fc_reduction):
    C = max_channel
    Cin = C // 2
    Cr = C // fc_reduction
    k = jax.random.split(key, 4)
    wconv = jax.random.normal(k[0], (C, Cin, 3, 3), jnp.float32) * 0.1   # OIHW
    w1 = jax.random.normal(k[1], (C, Cr), jnp.float32) * 0.1             # fc  (no bias)
    w3 = jax.random.normal(k[2], (Cr, C), jnp.float32) * 0.1             # fc3 (no bias)
    w4 = jax.random.normal(k[3], (Cr, C), jnp.float32) * 0.1             # fc4 (no bias)
    # BatchNorm2d eval-mode defaults: gamma=1, beta=0, mean=0, var=1, eps=1e-5
    eps = 1e-5
    bn_scale = jnp.ones((1, C), jnp.float32) / jnp.sqrt(1.0 + eps)
    bn_bias = jnp.zeros((1, C), jnp.float32)
    return dict(wconv=wconv, w1=w1, w3=w3, w4=w4,
                bn_scale=bn_scale, bn_bias=bn_bias)


def _reference(x3_nchw, x4_nchw, params):
    """Pure-JAX (XLA, f32) reference of the same forward pass."""
    conv = lax.conv_general_dilated(
        x3_nchw, params["wconv"], window_strides=(2, 2),
        padding=((1, 1), (1, 1)),
        dimension_numbers=("NCHW", "OIHW", "NCHW"))
    scale = params["bn_scale"].reshape(1, -1, 1, 1)
    bias = params["bn_bias"].reshape(1, -1, 1, 1)
    x3 = jax.nn.silu(conv * scale + bias)
    x = x3 + x4_nchw
    y = jnp.mean(x, axis=(2, 3))                       # (N, C)
    y = jax.nn.silu(y @ params["w1"])
    y3 = jax.nn.silu(y @ params["w3"])
    y4 = jax.nn.silu(y @ params["w4"])
    z3 = jax.nn.softmax(y3, axis=1)
    z4 = jax.nn.softmax(y4, axis=1)
    return x3 * z3[:, :, None, None] + x4_nchw * z4[:, :, None, None]


if __name__ == "__main__":
    max_channel = 16
    fc_reduction = 4
    N = 2
    Hout = Wout = 16          # x4 spatial; x3 is 2x resolution with half channels

    key = jax.random.PRNGKey(0)
    kx3, kx4, kp = jax.random.split(key, 3)
    x3 = jax.random.normal(kx3, (N, max_channel // 2, 2 * Hout, 2 * Wout), jnp.float32)
    x4 = jax.random.normal(kx4, (N, max_channel, Hout, Wout), jnp.float32)
    params = make_params(kp, max_channel, fc_reduction)

    out = feature_fusion_2maps_forward(x3, x4, params)
    out = jax.block_until_ready(out)

    ref = jax.block_until_ready(_reference(x3, x4, params))
    assert out.shape == (N, max_channel, Hout, Wout), out.shape
    out_f32 = out.astype(jnp.float32)
    err = jnp.max(jnp.abs(out_f32 - ref))
    assert jnp.allclose(out_f32, ref, atol=2e-2, rtol=2e-2), f"max abs err {err}"

    print("KERNEL_OK")
</pallas_src>

<mosaic_0001>
module attributes {stable_mosaic.version = 11 : i64} {
  func.func @_fused_kernel(%arg0: i32, %arg1: memref<1x4x306x8xbf16, #tpu.memory_space<vmem>>, %arg2: memref<1x272x16xbf16, #tpu.memory_space<vmem>>, %arg3: memref<3x3x8x16xbf16, #tpu.memory_space<vmem>>, %arg4: memref<1x16xf32, #tpu.memory_space<vmem>>, %arg5: memref<1x16xf32, #tpu.memory_space<vmem>>, %arg6: memref<16x4xbf16, #tpu.memory_space<vmem>>, %arg7: memref<4x16xbf16, #tpu.memory_space<vmem>>, %arg8: memref<4x16xbf16, #tpu.memory_space<vmem>>, %arg9: memref<1x272x16xbf16, #tpu.memory_space<vmem>>) attributes {dimension_semantics = [#tpu.dimension_semantics<parallel>], iteration_bounds = array<i64: 2>, scalar_prefetch = 0 : i64, scratch_operands = 0 : i64, tpu.core_type = #tpu.core_type<tc>, window_params = [{transform_indices = @transform_0, window_bounds = array<i64: 1, 4, 306, 8>}, {transform_indices = @transform_1, window_bounds = array<i64: 1, 272, 16>}, {pipeline_mode = #tpu.pipeline_mode<synchronous>, transform_indices = @transform_2, window_bounds = array<i64: 3, 3, 8, 16>}, {pipeline_mode = #tpu.pipeline_mode<synchronous>, transform_indices = @transform_3, window_bounds = array<i64: 1, 16>}, {pipeline_mode = #tpu.pipeline_mode<synchronous>, transform_indices = @transform_4, window_bounds = array<i64: 1, 16>}, {pipeline_mode = #tpu.pipeline_mode<synchronous>, transform_indices = @transform_5, window_bounds = array<i64: 16, 4>}, {pipeline_mode = #tpu.pipeline_mode<synchronous>, transform_indices = @transform_6, window_bounds = array<i64: 4, 16>}, {pipeline_mode = #tpu.pipeline_mode<synchronous>, transform_indices = @transform_7, window_bounds = array<i64: 4, 16>}, {transform_indices = @transform_8, window_bounds = array<i64: 1, 272, 16>}]} {
    %cst = arith.constant 0.000000e+00 : f32
    %0 = vector.broadcast %cst : f32 to vector<272x16xf32>
    %c0 = arith.constant 0 : index
    %c0_0 = arith.constant 0 : index
    %c0_1 = arith.constant 0 : index
    %c0_2 = arith.constant 0 : index
    %1 = vector.load %arg1[%c0, %c0_0, %c0_1, %c0_2] : memref<1x4x306x8xbf16, #tpu.memory_space<vmem>>, vector<1x1x272x8xbf16>
    %2 = vector.shape_cast %1 : vector<1x1x272x8xbf16> to vector<272x8xbf16>
    %c0_3 = arith.constant 0 : index
    %c0_4 = arith.constant 0 : index
    %c0_5 = arith.constant 0 : index
    %c0_6 = arith.constant 0 : index
    %3 = vector.load %arg3[%c0_3, %c0_4, %c0_5, %c0_6] : memref<3x3x8x16xbf16, #tpu.memory_space<vmem>>, vector<1x1x8x16xbf16>
    %4 = vector.shape_cast %3 : vector<1x1x8x16xbf16> to vector<8x16xbf16>
    %cst_7 = arith.constant dense<0.000000e+00> : vector<272x16xf32>
    %5 = tpu.matmul %2, %4, %cst_7 {dimension_numbers = #tpu.dot_dimension_numbers<[1], [0], [0], [1], [0, 0, 1, 1], [], []>} : vector<272x8xbf16>, vector<8x16xbf16>, vector<272x16xf32> -> vector<272x16xf32>
    %6 = arith.addf %0, %5 : vector<272x16xf32>
    %c0_8 = arith.constant 0 : index
    %c1 = arith.constant 1 : index
    %c0_9 = arith.constant 0 : index
    %c0_10 = arith.constant 0 : index
    %7 = vector.load %arg1[%c0_8, %c1, %c0_9, %c0_10] : memref<1x4x306x8xbf16, #tpu.memory_space<vmem>>, vector<1x1x272x8xbf16>
    %8 = vector.shape_cast %7 : vector<1x1x272x8xbf16> to vector<272x8xbf16>
    %c0_11 = arith.constant 0 : index
    %c1_12 = arith.constant 1 : index
    %c0_13 = arith.constant 0 : index
    %c0_14 = arith.constant 0 : index
    %9 = vector.load %arg3[%c0_11, %c1_12, %c0_13, %c0_14] : memref<3x3x8x16xbf16, #tpu.memory_space<vmem>>, vector<1x1x8x16xbf16>
    %10 = vector.shape_cast %9 : vector<1x1x8x16xbf16> to vector<8x16xbf16>
    %cst_15 = arith.constant dense<0.000000e+00> : vector<272x16xf32>
    %11 = tpu.matmul %8, %10, %cst_15 {dimension_numbers = #tpu.dot_dimension_numbers<[1], [0], [0], [1], [0, 0, 1, 1], [], []>} : vector<272x8xbf16>, vector<8x16xbf16>, vector<272x16xf32> -> vector<272x16xf32>
    %12 = arith.addf %6, %11 : vector<272x16xf32>
    %c0_16 = arith.constant 0 : index
    %c0_17 = arith.constant 0 : index
    %c1_18 = arith.constant 1 : index
    %c0_19 = arith.constant 0 : index
    %13 = vector.load %arg1[%c0_16, %c0_17, %c1_18, %c0_19] : memref<1x4x306x8xbf16, #tpu.memory_space<vmem>>, vector<1x1x272x8xbf16>
    %14 = vector.shape_cast %13 : vector<1x1x272x8xbf16> to vector<272x8xbf16>
    %c0_20 = arith.constant 0 : index
    %c2 = arith.constant 2 : index
    %c0_21 = arith.constant 0 : index
    %c0_22 = arith.constant 0 : index
    %15 = vector.load %arg3[%c0_20, %c2, %c0_21, %c0_22] : memref<3x3x8x16xbf16, #tpu.memory_space<vmem>>, vector<1x1x8x16xbf16>
    %16 = vector.shape_cast %15 : vector<1x1x8x16xbf16> to vector<8x16xbf16>
    %cst_23 = arith.constant dense<0.000000e+00> : vector<272x16xf32>
    %17 = tpu.matmul %14, %16, %cst_23 {dimension_numbers = #tpu.dot_dimension_numbers<[1], [0], [0], [1], [0, 0, 1, 1], [], []>} : vector<272x8xbf16>, vector<8x16xbf16>, vector<272x16xf32> -> vector<272x16xf32>
    %18 = arith.addf %12, %17 : vector<272x16xf32>
    %c0_24 = arith.constant 0 : index
    %c2_25 = arith.constant 2 : index
    %c0_26 = arith.constant 0 : index
    %c0_27 = arith.constant 0 : index
    %19 = vector.load %arg1[%c0_24, %c2_25, %c0_26, %c0_27] : memref<1x4x306x8xbf16, #tpu.memory_space<vmem>>, vector<1x1x272x8xbf16>
    %20 = vector.shape_cast %19 : vector<1x1x272x8xbf16> to vector<272x8xbf16>
    %c1_28 = arith.constant 1 : index
    %c0_29 = arith.constant 0 : index
    %c0_30 = arith.constant 0 : index
    %c0_31 = arith.constant 0 : index
    %21 = vector.load %arg3[%c1_28, %c0_29, %c0_30, %c0_31] : memref<3x3x8x16xbf16, #tpu.memory_space<vmem>>, vector<1x1x8x16xbf16>
    %22 = vector.shape_cast %21 : vector<1x1x8x16xbf16> to vector<8x16xbf16>
    %cst_32 = arith.constant dense<0.000000e+00> : vector<272x16xf32>
    %23 = tpu.matmul %20, %22, %cst_32 {dimension_numbers = #tpu.dot_dimension_numbers<[1], [0], [0], [1], [0, 0, 1, 1], [], []>} : vector<272x8xbf16>, vector<8x16xbf16>, vector<272x16xf32> -> vector<272x16xf32>
    %24 = arith.addf %18, %23 : vector<272x16xf32>
    %c0_33 = arith.constant 0 : index
    %c3 = arith.constant 3 : index
    %c0_34 = arith.constant 0 : index
    %c0_35 = arith.constant 0 : index
    %25 = vector.load %arg1[%c0_33, %c3, %c0_34, %c0_35] : memref<1x4x306x8xbf16, #tpu.memory_space<vmem>>, vector<1x1x272x8xbf16>
    %26 = vector.shape_cast %25 : vector<1x1x272x8xbf16> to vector<272x8xbf16>
    %c1_36 = arith.constant 1 : index
    %c1_37 = arith.constant 1 : index
    %c0_38 = arith.constant 0 : index
    %c0_39 = arith.constant 0 : index
    %27 = vector.load %arg3[%c1_36, %c1_37, %c0_38, %c0_39] : memref<3x3x8x16xbf16, #tpu.memory_space<vmem>>, vector<1x1x8x16xbf16>
    %28 = vector.shape_cast %27 : vector<1x1x8x16xbf16> to vector<8x16xbf16>
    %cst_40 = arith.constant dense<0.000000e+00> : vector<272x16xf32>
    %29 = tpu.matmul %26, %28, %cst_40 {dimension_numbers = #tpu.dot_dimension_numbers<[1], [0], [0], [1], [0, 0, 1, 1], [], []>} : vector<272x8xbf16>, vector<8x16xbf16>, vector<272x16xf32> -> vector<272x16xf32>
    %30 = arith.addf %24, %29 : vector<272x16xf32>
    %c0_41 = arith.constant 0 : index
    %c2_42 = arith.constant 2 : index
    %c1_43 = arith.constant 1 : index
    %c0_44 = arith.constant 0 : index
    %31 = vector.load %arg1[%c0_41, %c2_42, %c1_43, %c0_44] : memref<1x4x306x8xbf16, #tpu.memory_space<vmem>>, vector<1x1x272x8xbf16>
    %32 = vector.shape_cast %31 : vector<1x1x272x8xbf16> to vector<272x8xbf16>
    %c1_45 = arith.constant 1 : index
    %c2_46 = arith.constant 2 : index
    %c0_47 = arith.constant 0 : index
    %c0_48 = arith.constant 0 : index
    %33 = vector.load %arg3[%c1_45, %c2_46, %c0_47, %c0_48] : memref<3x3x8x16xbf16, #tpu.memory_space<vmem>>, vector<1x1x8x16xbf16>
    %34 = vector.shape_cast %33 : vector<1x1x8x16xbf16> to vector<8x16xbf16>
    %cst_49 = arith.constant dense<0.000000e+00> : vector<272x16xf32>
    %35 = tpu.matmul %32, %34, %cst_49 {dimension_numbers = #tpu.dot_dimension_numbers<[1], [0], [0], [1], [0, 0, 1, 1], [], []>} : vector<272x8xbf16>, vector<8x16xbf16>, vector<272x16xf32> -> vector<272x16xf32>
    %36 = arith.addf %30, %35 : vector<272x16xf32>
    %c0_50 = arith.constant 0 : index
    %c0_51 = arith.constant 0 : index
    %c17 = arith.constant 17 : index
    %c0_52 = arith.constant 0 : index
    %37 = vector.load %arg1[%c0_50, %c0_51, %c17, %c0_52] : memref<1x4x306x8xbf16, #tpu.memory_space<vmem>>, vector<1x1x272x8xbf16>
    %38 = vector.shape_cast %37 : vector<1x1x272x8xbf16> to vector<272x8xbf16>
    %c2_53 = arith.constant 2 : index
    %c0_54 = arith.constant 0 : index
    %c0_55 = arith.constant 0 : index
    %c0_56 = arith.constant 0 : index
    %39 = vector.load %arg3[%c2_53, %c0_54, %c0_55, %c0_56] : memref<3x3x8x16xbf16, #tpu.memory_space<vmem>>, vector<1x1x8x16xbf16>
    %40 = vector.shape_cast %39 : vector<1x1x8x16xbf16> to vector<8x16xbf16>
    %cst_57 = arith.constant dense<0.000000e+00> : vector<272x16xf32>
    %41 = tpu.matmul %38, %40, %cst_57 {dimension_numbers = #tpu.dot_dimension_numbers<[1], [0], [0], [1], [0, 0, 1, 1], [], []>} : vector<272x8xbf16>, vector<8x16xbf16>, vector<272x16xf32> -> vector<272x16xf32>
    %42 = arith.addf %36, %41 : vector<272x16xf32>
    %c0_58 = arith.constant 0 : index
    %c1_59 = arith.constant 1 : index
    %c17_60 = arith.constant 17 : index
    %c0_61 = arith.constant 0 : index
    %43 = vector.load %arg1[%c0_58, %c1_59, %c17_60, %c0_61] : memref<1x4x306x8xbf16, #tpu.memory_space<vmem>>, vector<1x1x272x8xbf16>
    %44 = vector.shape_cast %43 : vector<1x1x272x8xbf16> to vector<272x8xbf16>
    %c2_62 = arith.constant 2 : index
    %c1_63 = arith.constant 1 : index
    %c0_64 = arith.constant 0 : index
    %c0_65 = arith.constant 0 : index
    %45 = vector.load %arg3[%c2_62, %c1_63, %c0_64, %c0_65] : memref<3x3x8x16xbf16, #tpu.memory_space<vmem>>, vector<1x1x8x16xbf16>
    %46 = vector.shape_cast %45 : vector<1x1x8x16xbf16> to vector<8x16xbf16>
    %cst_66 = arith.constant dense<0.000000e+00> : vector<272x16xf32>
    %47 = tpu.matmul %44, %46, %cst_66 {dimension_numbers = #tpu.dot_dimension_numbers<[1], [0], [0], [1], [0, 0, 1, 1], [], []>} : vector<272x8xbf16>, vector<8x16xbf16>, vector<272x16xf32> -> vector<272x16xf32>
    %48 = arith.addf %42, %47 : vector<272x16xf32>
    %c0_67 = arith.constant 0 : index
    %c0_68 = arith.constant 0 : index
    %c18 = arith.constant 18 : index
    %c0_69 = arith.constant 0 : index
    %49 = vector.load %arg1[%c0_67, %c0_68, %c18, %c0_69] : memref<1x4x306x8xbf16, #tpu.memory_space<vmem>>, vector<1x1x272x8xbf16>
    %50 = vector.shape_cast %49 : vector<1x1x272x8xbf16> to vector<272x8xbf16>
    %c2_70 = arith.constant 2 : index
    %c2_71 = arith.constant 2 : index
    %c0_72 = arith.constant 0 : index
    %c0_73 = arith.constant 0 : index
    %51 = vector.load %arg3[%c2_70, %c2_71, %c0_72, %c0_73] : memref<3x3x8x16xbf16, #tpu.memory_space<vmem>>, vector<1x1x8x16xbf16>
    %52 = vector.shape_cast %51 : vector<1x1x8x16xbf16> to vector<8x16xbf16>
    %cst_74 = arith.constant dense<0.000000e+00> : vector<272x16xf32>
    %53 = tpu.matmul %50, %52, %cst_74 {dimension_numbers = #tpu.dot_dimension_numbers<[1], [0], [0], [1], [0, 0, 1, 1], [], []>} : vector<272x8xbf16>, vector<8x16xbf16>, vector<272x16xf32> -> vector<272x16xf32>
    %54 = arith.addf %48, %53 : vector<272x16xf32>
    %c0_75 = arith.constant 0 : index
    %c0_76 = arith.constant 0 : index
    %55 = vector.load %arg4[%c0_75, %c0_76] : memref<1x16xf32, #tpu.memory_space<vmem>>, vector<1x16xf32>
    %56 = vector.broadcast %55 : vector<1x16xf32> to vector<272x16xf32>
    %57 = arith.mulf %54, %56 : vector<272x16xf32>
    %c0_77 = arith.constant 0 : index
    %c0_78 = arith.constant 0 : index
    %58 = vector.load %arg5[%c0_77, %c0_78] : memref<1x16xf32, #tpu.memory_space<vmem>>, vector<1x16xf32>
    %59 = vector.broadcast %58 : vector<1x16xf32> to vector<272x16xf32>
    %60 = arith.addf %57, %59 : vector<272x16xf32>
    %cst_79 = arith.constant 0.000000e+00 : f32
    %61 = vector.broadcast %cst_79 : f32 to vector<272x16xf32>
    %62 = arith.subf %61, %60 : vector<272x16xf32>
    %63 = math.exp %62 : vector<272x16xf32>
    %cst_80 = arith.constant 1.000000e+00 : f32
    %64 = vector.broadcast %cst_80 : f32 to vector<272x16xf32>
    %65 = arith.addf %64, %63 : vector<272x16xf32>
    %66 = tpu.reciprocal %65 {approx = true} : vector<272x16xf32> -> vector<272x16xf32>
    %67 = arith.mulf %60, %66 : vector<272x16xf32>
    %68 = tpu.iota {dimensions = array<i32: 0>} : vector<272x1xi32>
    %c17_i32 = arith.constant 17 : i32
    %c0_i32 = arith.constant 0 : i32
    %69 = arith.cmpi eq, %c17_i32, %c0_i32 : i32
    %c1_i32 = arith.constant 1 : i32
    %70 = arith.select %69, %c1_i32, %c17_i32 : i32
    %71 = vector.broadcast %70 : i32 to vector<272x1xi32>
    %72 = arith.remsi %68, %71 : vector<272x1xi32>
    %c0_i32_81 = arith.constant 0 : i32
    %73 = vector.broadcast %c0_i32_81 : i32 to vector<272x1xi32>
    %74 = arith.cmpi ne, %72, %73 : vector<272x1xi32>
    %c0_i32_82 = arith.constant 0 : i32
    %75 = vector.broadcast %c0_i32_82 : i32 to vector<272x1xi32>
    %76 = arith.cmpi slt, %72, %75 : vector<272x1xi32>
    %c0_i32_83 = arith.constant 0 : i32
    %77 = arith.cmpi slt, %70, %c0_i32_83 : i32
    %78 = vector.broadcast %77 : i1 to vector<272x1xi1>
    %79 = vector.broadcast %78 : vector<272x1xi1> to vector<272x1xi1>
    %80 = arith.xori %76, %79 : vector<272x1xi1>
    %81 = arith.andi %80, %74 : vector<272x1xi1>
    %82 = vector.broadcast %70 : i32 to vector<272x1xi32>
    %83 = arith.addi %72, %82 : vector<272x1xi32>
    %84 = arith.select %81, %83, %72 : vector<272x1xi1>, vector<272x1xi32>
    %c16_i32 = arith.constant 16 : i32
    %85 = vector.broadcast %c16_i32 : i32 to vector<272x1xi32>
    %86 = arith.cmpi slt, %84, %85 : vector<272x1xi32>
    %cst_84 = arith.constant 0.000000e+00 : f32
    %87 = vector.shape_cast %86 : vector<272x1xi1> to vector<272x1xi1>
    %88 = vector.broadcast %87 : vector<272x1xi1> to vector<272x16xi1>
    %89 = vector.broadcast %cst_84 : f32 to vector<272x16xf32>
    %90 = arith.select %88, %67, %89 : vector<272x16xi1>, vector<272x16xf32>
    %c0_85 = arith.constant 0 : index
    %c0_86 = arith.constant 0 : index
    %c0_87 = arith.constant 0 : index
    %91 = vector.load %arg2[%c0_85, %c0_86, %c0_87] : memref<1x272x16xbf16, #tpu.memory_space<vmem>>, vector<1x272x16xbf16>
    %92 = vector.shape_cast %91 : vector<1x272x16xbf16> to vector<272x16xbf16>
    %cst_88 = arith.constant dense<0.000000e+00> : vector<16xf32>
    %93 = vector.multi_reduction <add>, %90, %cst_88 [0] : vector<272x16xf32> to vector<16xf32>
    %94 = vector.shape_cast %93 : vector<16xf32> to vector<1x16xf32>
    %95 = arith.extf %92 : vector<272x16xbf16> to vector<272x16xf32>
    %cst_89 = arith.constant dense<0.000000e+00> : vector<16xf32>
    %96 = vector.multi_reduction <add>, %95, %cst_89 [0] : vector<272x16xf32> to vector<16xf32>
    %97 = vector.shape_cast %96 : vector<16xf32> to vector<1x16xf32>
    %98 = arith.addf %94, %97 : vector<1x16xf32>
    %cst_90 = arith.constant 3.906250e-03 : f32
    %99 = vector.broadcast %cst_90 : f32 to vector<1x16xf32>
    %100 = arith.mulf %98, %99 : vector<1x16xf32>
    %101 = arith.truncf %100 : vector<1x16xf32> to vector<1x16xbf16>
    %c0_91 = arith.constant 0 : index
    %c0_92 = arith.constant 0 : index
    %102 = vector.load %arg6[%c0_91, %c0_92] : memref<16x4xbf16, #tpu.memory_space<vmem>>, vector<16x4xbf16>
    %cst_93 = arith.constant dense<0.000000e+00> : vector<1x4xf32>
    %103 = tpu.matmul %101, %102, %cst_93 {dimension_numbers = #tpu.dot_dimension_numbers<[1], [0], [0], [1], [0, 0, 1, 1], [], []>} : vector<1x16xbf16>, vector<16x4xbf16>, vector<1x4xf32> -> vector<1x4xf32>
    %cst_94 = arith.constant 0.000000e+00 : f32
    %104 = vector.broadcast %cst_94 : f32 to vector<1x4xf32>
    %105 = arith.subf %104, %103 : vector<1x4xf32>
    %106 = math.exp %105 : vector<1x4xf32>
    %cst_95 = arith.constant 1.000000e+00 : f32
    %107 = vector.broadcast %cst_95 : f32 to vector<1x4xf32>
    %108 = arith.addf %107, %106 : vector<1x4xf32>
    %109 = tpu.reciprocal %108 {approx = true} : vector<1x4xf32> -> vector<1x4xf32>
    %110 = arith.mulf %103, %109 : vector<1x4xf32>
    %111 = arith.truncf %110 : vector<1x4xf32> to vector<1x4xbf16>
    %c0_96 = arith.constant 0 : index
    %c0_97 = arith.constant 0 : index
    %112 = vector.load %arg7[%c0_96, %c0_97] : memref<4x16xbf16, #tpu.memory_space<vmem>>, vector<4x16xbf16>
    %cst_98 = arith.constant dense<0.000000e+00> : vector<1x16xf32>
    %113 = tpu.matmul %111, %112, %cst_98 {dimension_numbers = #tpu.dot_dimension_numbers<[1], [0], [0], [1], [0, 0, 1, 1], [], []>} : vector<1x4xbf16>, vector<4x16xbf16>, vector<1x16xf32> -> vector<1x16xf32>
    %cst_99 = arith.constant 0.000000e+00 : f32
    %114 = vector.broadcast %cst_99 : f32 to vector<1x16xf32>
    %115 = arith.subf %114, %113 : vector<1x16xf32>
    %116 = math.exp %115 : vector<1x16xf32>
    %cst_100 = arith.constant 1.000000e+00 : f32
    %117 = vector.broadcast %cst_100 : f32 to vector<1x16xf32>
    %118 = arith.addf %117, %116 : vector<1x16xf32>
    %119 = tpu.reciprocal %118 {approx = true} : vector<1x16xf32> -> vector<1x16xf32>
    %120 = arith.mulf %113, %119 : vector<1x16xf32>
    %121 = arith.truncf %110 : vector<1x4xf32> to vector<1x4xbf16>
    %c0_101 = arith.constant 0 : index
    %c0_102 = arith.constant 0 : index
    %122 = vector.load %arg8[%c0_101, %c0_102] : memref<4x16xbf16, #tpu.memory_space<vmem>>, vector<4x16xbf16>
    %cst_103 = arith.constant dense<0.000000e+00> : vector<1x16xf32>
    %123 = tpu.matmul %121, %122, %cst_103 {dimension_numbers = #tpu.dot_dimension_numbers<[1], [0], [0], [1], [0, 0, 1, 1], [], []>} : vector<1x4xbf16>, vector<4x16xbf16>, vector<1x16xf32> -> vector<1x16xf32>
    %cst_104 = arith.constant 0.000000e+00 : f32
    %124 = vector.broadcast %cst_104 : f32 to vector<1x16xf32>
    %125 = arith.subf %124, %123 : vector<1x16xf32>
    %126 = math.exp %125 : vector<1x16xf32>
    %cst_105 = arith.constant 1.000000e+00 : f32
    %127 = vector.broadcast %cst_105 : f32 to vector<1x16xf32>
    %128 = arith.addf %127, %126 : vector<1x16xf32>
    %129 = tpu.reciprocal %128 {approx = true} : vector<1x16xf32> -> vector<1x16xf32>
    %130 = arith.mulf %123, %129 : vector<1x16xf32>
    %cst_106 = arith.constant dense<0xFF800000> : vector<1xf32>
    %131 = vector.multi_reduction <maximumf>, %120, %cst_106 [1] : vector<1x16xf32> to vector<1xf32>
    %132 = vector.shape_cast %131 : vector<1xf32> to vector<1x1xf32>
    %133 = vector.broadcast %132 : vector<1x1xf32> to vector<1x16xf32>
    %134 = arith.subf %120, %133 : vector<1x16xf32>
    %135 = math.exp %134 : vector<1x16xf32>
    %cst_107 = arith.constant dense<0.000000e+00> : vector<1xf32>
    %136 = vector.multi_reduction <add>, %135, %cst_107 [1] : vector<1x16xf32> to vector<1xf32>
    %137 = vector.shape_cast %136 : vector<1xf32> to vector<1x1xf32>
    %138 = vector.broadcast %137 : vector<1x1xf32> to vector<1x16xf32>
    %139 = arith.divf %135, %138 : vector<1x16xf32>
    %cst_108 = arith.constant dense<0xFF800000> : vector<1xf32>
    %140 = vector.multi_reduction <maximumf>, %130, %cst_108 [1] : vector<1x16xf32> to vector<1xf32>
    %141 = vector.shape_cast %140 : vector<1xf32> to vector<1x1xf32>
    %142 = vector.broadcast %141 : vector<1x1xf32> to vector<1x16xf32>
    %143 = arith.subf %130, %142 : vector<1x16xf32>
    %144 = math.exp %143 : vector<1x16xf32>
    %cst_109 = arith.constant dense<0.000000e+00> : vector<1xf32>
    %145 = vector.multi_reduction <add>, %144, %cst_109 [1] : vector<1x16xf32> to vector<1xf32>
    %146 = vector.shape_cast %145 : vector<1xf32> to vector<1x1xf32>
    %147 = vector.broadcast %146 : vector<1x1xf32> to vector<1x16xf32>
    %148 = arith.divf %144, %147 : vector<1x16xf32>
    %149 = vector.broadcast %139 : vector<1x16xf32> to vector<272x16xf32>
    %150 = arith.mulf %90, %149 : vector<272x16xf32>
    %151 = arith.truncf %150 : vector<272x16xf32> to vector<272x16xbf16>
    %152 = arith.truncf %148 : vector<1x16xf32> to vector<1x16xbf16>
    %153 = vector.broadcast %152 : vector<1x16xbf16> to vector<272x16xbf16>
    %154 = arith.mulf %92, %153 : vector<272x16xbf16>
    %155 = arith.addf %151, %154 : vector<272x16xbf16>
    %c0_110 = arith.constant 0 : index
    %c0_111 = arith.constant 0 : index
    %c0_112 = arith.constant 0 : index
    %156 = vector.load %arg9[%c0_110, %c0_111, %c0_112] : memref<1x272x16xbf16, #tpu.memory_space<vmem>>, vector<1x272x16xbf16>
    %157 = vector.shape_cast %156 : vector<1x272x16xbf16> to vector<272x16xbf16>
    %158 = vector.shape_cast %155 : vector<272x16xbf16> to vector<1x272x16xbf16>
    tpu.vector_store %arg9[%c0_110, %c0_111, %c0_112], %158 {strides = array<i32>} : memref<1x272x16xbf16, #tpu.memory_space<vmem>>, vector<1x272x16xbf16>,
    return
  }
  func.func @transform_0(%arg0: i32) -> (i32, i32, i32, i32) {
    %c0_i32 = arith.constant 0 : i32
    %c0_i32_0 = arith.constant 0 : i32
    %c0_i32_1 = arith.constant 0 : i32
    %c0_i32_2 = arith.constant 0 : i32
    return %arg0, %c0_i32, %c0_i32_0, %c0_i32_1 : i32, i32, i32, i32
  }
  func.func @transform_1(%arg0: i32) -> (i32, i32, i32) {
    %c0_i32 = arith.constant 0 : i32
    %c0_i32_0 = arith.constant 0 : i32
    %c0_i32_1 = arith.constant 0 : i32
    return %arg0, %c0_i32, %c0_i32_0 : i32, i32, i32
  }
  func.func @transform_2(%arg0: i32) -> (i32, i32, i32, i32) {
    %c0_i32 = arith.constant 0 : i32
    %c0_i32_0 = arith.constant 0 : i32
    %c0_i32_1 = arith.constant 0 : i32
    %c0_i32_2 = arith.constant 0 : i32
    %c0_i32_3 = arith.constant 0 : i32
    return %c0_i32, %c0_i32_0, %c0_i32_1, %c0_i32_2 : i32, i32, i32, i32
  }
  func.func @transform_3(%arg0: i32) -> (i32, i32) {
    %c0_i32 = arith.constant 0 : i32
    %c0_i32_0 = arith.constant 0 : i32
    %c0_i32_1 = arith.constant 0 : i32
    return %c0_i32, %c0_i32_0 : i32, i32
  }
  func.func @transform_4(%arg0: i32) -> (i32, i32) {
    %c0_i32 = arith.constant 0 : i32
    %c0_i32_0 = arith.constant 0 : i32
    %c0_i32_1 = arith.constant 0 : i32
    return %c0_i32, %c0_i32_0 : i32, i32
  }
  func.func @transform_5(%arg0: i32) -> (i32, i32) {
    %c0_i32 = arith.constant 0 : i32
    %c0_i32_0 = arith.constant 0 : i32
    %c0_i32_1 = arith.constant 0 : i32
    return %c0_i32, %c0_i32_0 : i32, i32
  }
  func.func @transform_6(%arg0: i32) -> (i32, i32) {
    %c0_i32 = arith.constant 0 : i32
    %c0_i32_0 = arith.constant 0 : i32
    %c0_i32_1 = arith.constant 0 : i32
    return %c0_i32, %c0_i32_0 : i32, i32
  }
  func.func @transform_7(%arg0: i32) -> (i32, i32) {
    %c0_i32 = arith.constant 0 : i32
    %c0_i32_0 = arith.constant 0 : i32
    %c0_i32_1 = arith.constant 0 : i32
    return %c0_i32, %c0_i32_0 : i32, i32
  }
  func.func @transform_8(%arg0: i32) -> (i32, i32, i32) {
    %c0_i32 = arith.constant 0 : i32
    %c0_i32_0 = arith.constant 0 : i32
    %c0_i32_1 = arith.constant 0 : i32
    return %arg0, %c0_i32, %c0_i32_0 : i32, i32, i32
  }
}

</mosaic_0001>

<bundles_post_ra>
// kernel: tpu_custom_call.1
= control target key start
LH: loop header
LB: loop body
LE: loop exit
PB: predicated region body
PF: predicated region fallthrough
CT: control target
= control target key end

     0   :  { %s8335_s27 = smov 0   ;;  %s11342_s0 = inlined_call_operand.vmem [shape: bf16[2,4,306,8], index: 0, kind: input, shape index: {}]   ;;  %s11343_s1 = inlined_call_operand.vmem [shape: bf16[2,272,16], index: 1, kind: input, shape index: {}]   ;;  %s11344_s2 = inlined_call_operand.vmem [shape: bf16[3,3,8,16], index: 2, kind: input, shape index: {}]   ;;  %s11345_s3 = inlined_call_operand.vmem [shape: f32[1,16], index: 3, kind: input, shape index: {}]   ;;  %s11346_s4 = inlined_call_operand.vmem [shape: f32[1,16], index: 4, kind: input, shape index: {}]   ;;  %s11347_s5 = inlined_call_operand.vmem [shape: bf16[16,4], index: 5, kind: input, shape index: {}]   ;;  %s11348_s6 = inlined_call_operand.vmem [shape: bf16[4,16], index: 6, kind: input, shape index: {}]   ;;  %s11349_s7 = inlined_call_operand.vmem [shape: bf16[4,16], index: 7, kind: input, shape index: {}]   ;;  %s11350_s8 = inlined_call_operand.vmem [shape: bf16[2,272,16], index: 8, kind: output, shape index: {}]  }
   0x1 LB: > { %s6009_s28 = sadd.s32 4294967295, %s8286_s27   ;;  %p6013_p0 = scmp.ge.s32.totalorder %s8286_s27, 1  ;;  %s8286_s27 = sphi %s8335_s27, %s18_s27  }
   0x2   : > { %p272_p1 = scmp.lt.s32.totalorder %s8286_s27, 3 }
   0x4   : > { %p273_p2 = pnand %p6013_p0, %p272_p1 }
   0x6   : > { %276 = sbr.rel (%p273_p2) target bundleno = 1794 (0x702), region = 52 }
   0xd   : > { %vm536_vm0 = vcmask 1043456   ;;  %v6259_v0 = vld [vmem:[%s11344_s2 + $0x10] sm:$0xf]  ;;  %v6051_v1 = vld [vmem:[%s11344_s2 + $0x4] sm:$0xf]  ;;  %v11353_v2 = vmov 0.0  }
   0xe   : > { %6999 = vmatprep.subr.bf16.mxu0 %v11353_v2  ;;  %6719 = vmatprep.subr.bf16.mxu1 %v11353_v2  ;;  %v8352_v3 = vsel %vm536_vm0, %v6259_v0, 0  ;;  %v538_v4 = vsel %vm536_vm0, %v6051_v1, 0  ;;  %p311_p3 = scmp.lt.s32.totalorder %s6009_s28, 1  ;;  %vm11351_vm1 = vmmov 0   ;;  %v6329_v5 = vld [vmem:[%s11344_s2 + $0x14] sm:$0xf] }
   0xf   : > { %7000 = vmatpush3.bf16.msra.mxu0 %v8352_v3  ;;  %6720 = vmatpush3.bf16.msra.mxu1 %v538_v4  ;;  %vm484_vm2 = vcmask 64512   ;;  %v361_v6 = vld [vmem:[%s11344_s2] sm:$0xf]  ;;  %v2615_v9 = vsel %vm536_vm0, %v6329_v5, 0  ;;  %vm1142_vm3 = vsmask.f32 7424 }
  0x10   : > { %6721 = vmatprep.mubr.msk.bf16.mxu1 %vm11351_vm1, %v11353_v2  ;;  %7001 = vmatprep.mubr.msk.bf16.mxu0 %vm11351_vm1, %v11353_v2  ;;  %s11951_s28 = smov (!%p311_p3, %s6009_s28), 1  ;;  %v846_v10 = vsel %vm536_vm0, %v361_v6, 0  ;;  %v6365_v37 = vld [vmem:[%s11344_s2 + $0x18] sm:$0xf]  ;;  %vm3870_vm4 = vcmask 1046528  }
  0x11   : > { %7069 = vmatprep.subr.bf16.mxu0 %v11353_v2  ;;  %6789 = vmatprep.subr.bf16.mxu1 %v11353_v2  ;;  %s7879_s11 = smul.u32 624, %s11951_s28  ;;  %v3137_v43 = vsel %vm536_vm0, %v6365_v37, 0 }
  0x12   : > { %s7880_s9 = smul.u32 136, %s11951_s28 }
  0x13   : > { %s8371_s16 = scalar_lea.vmem %s11342_s0, %s7879_s11 }
  0x14   : > { %v7959_v7 = vld [vmem:[%s8371_s16 + $0x9c] sm:$0xff]   ;;  %v7960_v8 = vld [vmem:[%s8371_s16 + $0x1d4] sm:$0xff]   ;;  %v7961_v11 = vld [vmem:[%s8371_s16 + $0xa4] sm:$0xff]   ;;  %s9570_s12 = scalar_lea.vmem %s11343_s1, %s7880_s9  ;;  %s11233_s10 = scalar_lea.vmem %s11350_s8, %s7880_s9 }
  0x15   : > { %6722 = vmatmul.mubr.msk.bf16.vlgmr.msra.gmra.mrb[0].mxu1 %vm484_vm2, %v7959_v7  ;;  %7002 = vmatmul.mubr.msk.bf16.vlgmr.msra.gmra.mrb[0].mxu0 %vm484_vm2, %v7960_v8  ;;  %v7962_v12 = vld [vmem:[%s8371_s16 + $0x1dc] sm:$0xff]   ;;  %v7963_v13 = vld [vmem:[%s8371_s16 + $0xac] sm:$0xff]   ;;  %v7964_v14 = vld [vmem:[%s8371_s16 + $0x1e4] sm:$0xff]  }
  0x16   : > { %6725 = vmatprep.mubr.msk.bf16.mxu1 %vm11351_vm1, %v11353_v2  ;;  %7070 = vmatpush3.bf16.msra.mxu0 %v2615_v9  ;;  %v7965_v15 = vld [vmem:[%s8371_s16 + $0xb4] sm:$0xff]   ;;  %v7966_v16 = vld [vmem:[%s8371_s16 + $0x1ec] sm:$0xff]   ;;  %v7967_v17 = vld [vmem:[%s8371_s16 + $0xbc] sm:$0xff]  }
  0x17   : > { %7005 = vmatprep.mubr.msk.bf16.mxu0 %vm11351_vm1, %v11353_v2  ;;  %6790 = vmatpush3.bf16.msra.mxu1 %v846_v10  ;;  %v7968_v18 = vld [vmem:[%s8371_s16 + $0x1f4] sm:$0xff]   ;;  %v7969_v19 = vld [vmem:[%s8371_s16 + $0xc4] sm:$0xff]   ;;  %v7970_v20 = vld [vmem:[%s8371_s16 + $0x1fc] sm:$0xff]  }
  0x18   : > { %7139 = vmatprep.subr.bf16.mxu0 %v11353_v2  ;;  %6859 = vmatprep.subr.bf16.mxu1 %v11353_v2  ;;  %v7971_v21 = vld [vmem:[%s8371_s16 + $0xcc] sm:$0xff]   ;;  %v7972_v22 = vld [vmem:[%s8371_s16 + $0x204] sm:$0xff]   ;;  %v7973_v23 = vld [vmem:[%s8371_s16 + $0xd4] sm:$0xff]  }
  0x19   : > { %v7974_v24 = vld [vmem:[%s8371_s16 + $0x20c] sm:$0xff]   ;;  %v7975_v25 = vld [vmem:[%s8371_s16 + $0xdc] sm:$0xff]   ;;  %v7976_v26 = vld [vmem:[%s8371_s16 + $0x214] sm:$0xff]  }
  0x1a   : > { %v7980_v27 = vld [vmem:[%s8371_s16 + $0x138] sm:$0xff]   ;;  %v7977_v28 = vld [vmem:[%s8371_s16 + $0xe4] sm:$0xff]   ;;  %v7979_v39 = vld [vmem:[%s8371_s16 + $0xec] sm:$0xff]  }
  0x1b   : > { %v7981_v29 = vld [vmem:[%s8371_s16 + $0x140] sm:$0xff]   ;;  %v2426_v30 = vshll.u32 %v7980_v27, 16  ;;  %v2424_v32 = vshrl.u32 %v7980_v27, 16  ;;  %v7983_v38 = vld [vmem:[%s8371_s16 + $0x148] sm:$0xff]   ;;  %v7985_v46 = vld [vmem:[%s8371_s16 + $0x150] sm:$0xff]  }
  0x1c   : > { %v7978_v31 = vld [vmem:[%s8371_s16 + $0x21c] sm:$0xff]   ;;  %v2431_v34 = vshll.u32 %v7981_v29, 16  ;;  %v2435_v41 = vshrl.u32 %v7981_v29, 16  ;;  %v2439_v42 = vshll.u32 %v7983_v38, 16  ;;  %v7982_v47 = vld [vmem:[%s8371_s16 + $0xf4] sm:$0xff]   ;;  %v2443_v49 = vshrl.u32 %v7983_v38, 16 }
  0x1d   : > { %6726 = vmatmul.mubr.msk.bf16.gmra.mrb[4].mxu1 %vm484_vm2, %v7961_v11  ;;  %7006 = vmatmul.mubr.msk.bf16.gmra.mrb[4].mxu0 %vm484_vm2, %v7962_v12  ;;  %v2428_v33 = vrot.slane %v2426_v30, 1  ;;  %v2447_v50 = vshll.u32 %v7985_v46, 16  ;;  %v7987_v53 = vld [vmem:[%s8371_s16 + $0x158] sm:$0xff]   ;;  %v2451_v56 = vshrl.u32 %v7985_v46, 16  ;;  %v7989_v60 = vld [vmem:[%s8371_s16 + $0x160] sm:$0xff]   ;;  %v7991_v5 = vld [vmem:[%s8371_s16 + $0x168] sm:$0xff]  }
  0x1e   : > { %6729 = vmatprep.mubr.msk.bf16.mxu1 %vm11351_vm1, %v11353_v2  ;;  %7009 = vmatprep.mubr.msk.bf16.mxu0 %vm11351_vm1, %v11353_v2  ;;  %v2433_v36 = vrot.slane %v2431_v34, 1  ;;  %v2441_v45 = vrot.slane %v2439_v42, 1  ;;  %v7984_v54 = vld [vmem:[%s8371_s16 + $0xfc] sm:$0xff]   ;;  %v2455_v57 = vshll.u32 %v7987_v53, 16  ;;  %v7986_v61 = vld [vmem:[%s8371_s16 + $0x104] sm:$0xff]   ;;  %v2459_v63 = vshrl.u32 %v7987_v53, 16 }
  0x1f   : > { %v2429_v35 = vor.u32 %v2428_v33, %v2424_v32  ;;  %v2449_v52 = vrot.slane %v2447_v50, 1  ;;  %v2463_v0 = vshll.u32 %v7989_v60, 16  ;;  %v7988_v6 = vld [vmem:[%s8371_s16 + $0x10c] sm:$0xff]   ;;  %v2467_v8 = vshrl.u32 %v7989_v60, 16  ;;  %v7994_v27 = vld [vmem:[%s8371_s16] sm:$0xff]   ;;  %v8000_v50 = vld [vmem:[%s8371_s16 + $0x18] sm:$0xff]  }
  0x20   : > { %v2437_v44 = vor.u32 %v2435_v41, %v2433_v36  ;;  %v2445_v51 = vor.u32 %v2443_v49, %v2441_v45  ;;  %v2457_v59 = vrot.slane %v2455_v57, 1  ;;  %v2471_v9 = vshll.u32 %v7991_v5, 16  ;;  %v7993_v12 = vld [vmem:[%s8371_s16 + $0x170] sm:$0xff]   ;;  %v8003_v49 = vld [vmem:[%s8371_s16 + $0x198] sm:$0xff]   ;;  %v8002_v57 = vld [vmem:[%s8371_s16 + $0x20] sm:$0xff]  }
  0x21   : > { %v2434_v40 = vsel %vm1142_vm3, %v2429_v35, %v2433_v36  ;;  %v2453_v58 = vor.u32 %v2451_v56, %v2449_v52  ;;  %v2465_v4 = vrot.slane %v2463_v0, 1  ;;  %v7999_v35 = vld [vmem:[%s8371_s16 + $0x188] sm:$0xff]   ;;  %v8001_v42 = vld [vmem:[%s8371_s16 + $0x190] sm:$0xff]   ;;  %v2519_v53 = vshll.u32 %v8003_v49, 16  ;;  %v8005_v56 = vld [vmem:[%s8371_s16 + $0x1a0] sm:$0xff]  }
  0x22   : > { %v2442_v48 = vsel %vm1142_vm3, %v2437_v44, %v2441_v45  ;;  %v2450_v55 = vsel %vm1142_vm3, %v2445_v51, %v2449_v52  ;;  %v2461_v1 = vor.u32 %v2459_v63, %v2457_v59  ;;  %v2473_v11 = vrot.slane %v2471_v9, 1  ;;  %v7996_v36 = vld [vmem:[%s8371_s16 + $0x8] sm:$0xff]   ;;  %v8006_v9 = vld [vmem:[%s8371_s16 + $0x30] sm:$0xff]  }
  0x23   : > { %v2458_v62 = vsel %vm1142_vm3, %v2453_v58, %v2457_v59  ;;  %v2469_v10 = vor.u32 %v2467_v8, %v2465_v4  ;;  %v2507_v45 = vshrl.u32 %v7999_v35, 16  ;;  %v2511_v46 = vshll.u32 %v8001_v42, 16  ;;  %v8007_v63 = vld [vmem:[%s8371_s16 + $0x1a8] sm:$0xff]   ;;  %v8009_v8 = vld [vmem:[%s8371_s16 + $0x1b0] sm:$0xff]  }
  0x24   : > { %v2466_v7 = vsel %vm1142_vm3, %v2461_v1, %v2465_v4  ;;  %v2515_v52 = vshrl.u32 %v8001_v42, 16  ;;  %v2523_v59 = vshrl.u32 %v8003_v49, 16  ;;  %v2527_v60 = vshll.u32 %v8005_v56, 16  ;;  %v8004_v0 = vld [vmem:[%s8371_s16 + $0x28] sm:$0xff]   ;;  %v8014_v42 = vld [vmem:[%s8371_s16 + $0x50] sm:$0xff]  }
  0x25   : > { %6730 = vmatmul.mubr.msk.bf16.gmra.mrb[8].mxu1 %vm484_vm2, %v7963_v13  ;;  %7010 = vmatmul.mubr.msk.bf16.gmra.mrb[8].mxu0 %vm484_vm2, %v7964_v14  ;;  %v7990_v13 = vld [vmem:[%s8371_s16 + $0x114] sm:$0xff]   ;;  %v2474_v14 = vsel %vm1142_vm3, %v2469_v10, %v2473_v11  ;;  %v2531_v4 = vshrl.u32 %v8005_v56, 16 }
  0x26   : > { %6733 = vmatprep.mubr.msk.bf16.mxu1 %vm11351_vm1, %v11353_v2  ;;  %7013 = vmatprep.mubr.msk.bf16.mxu0 %vm11351_vm1, %v11353_v2 }
  0x2d   : > { %6734 = vmatmul.mubr.msk.bf16.gmra.mrb[12].mxu1 %vm484_vm2, %v7965_v15  ;;  %7014 = vmatmul.mubr.msk.bf16.gmra.mrb[12].mxu0 %vm484_vm2, %v7966_v16  ;;  %v2475_v15 = vshrl.u32 %v7991_v5, 16  ;;  %v2479_v16 = vshll.u32 %v7993_v12, 16  ;;  %v2535_v5 = vshll.u32 %v8007_v63, 16 }
  0x2e   : > { %6737 = vmatprep.mubr.msk.bf16.mxu1 %vm11351_vm1, %v11353_v2  ;;  %7017 = vmatprep.mubr.msk.bf16.mxu0 %vm11351_vm1, %v11353_v2 }
  0x35   : > { %6738 = vmatmul.mubr.msk.bf16.gmra.mrb[16].mxu1 %vm484_vm2, %v7967_v17  ;;  %7018 = vmatmul.mubr.msk.bf16.gmra.mrb[16].mxu0 %vm484_vm2, %v7968_v18  ;;  %v2477_v17 = vor.u32 %v2475_v15, %v2473_v11  ;;  %v2481_v18 = vrot.slane %v2479_v16, 1  ;;  %v2539_v11 = vshrl.u32 %v8007_v63, 16  ;;  %v8011_v15 = vld [vmem:[%s8371_s16 + $0x1b8] sm:$0xff]  }
  0x36   : > { %6741 = vmatprep.mubr.msk.bf16.mxu1 %vm11351_vm1, %v11353_v2  ;;  %7021 = vmatprep.mubr.msk.bf16.mxu0 %vm11351_vm1, %v11353_v2  ;;  %v8008_v16 = vld [vmem:[%s8371_s16 + $0x38] sm:$0xff]  }
  0x3d   : > { %6742 = vmatmul.mubr.msk.bf16.gmra.mrb[20].mxu1 %vm484_vm2, %v7969_v19  ;;  %7022 = vmatmul.mubr.msk.bf16.gmra.mrb[20].mxu0 %vm484_vm2, %v7970_v20  ;;  %v7995_v19 = vld [vmem:[%s8371_s16 + $0x178] sm:$0xff]  }
  0x3e   : > { %6745 = vmatprep.mubr.msk.bf16.mxu1 %vm11351_vm1, %v11353_v2  ;;  %7025 = vmatprep.mubr.msk.bf16.mxu0 %vm11351_vm1, %v11353_v2  ;;  %v7992_v20 = vld [vmem:[%s8371_s16 + $0x11c] sm:$0xff]   ;;  %v2491_v30 = vshrl.u32 %v7995_v19, 16 }
  0x45   : > { %6746 = vmatmul.mubr.msk.bf16.gmra.mrb[24].mxu1 %vm484_vm2, %v7971_v21  ;;  %7026 = vmatmul.mubr.msk.bf16.gmra.mrb[24].mxu0 %vm484_vm2, %v7972_v22  ;;  %v2482_v21 = vsel %vm1142_vm3, %v2477_v17, %v2481_v18  ;;  %v2483_v22 = vshrl.u32 %v7993_v12, 16  ;;  %v2543_v12 = vshll.u32 %v8009_v8, 16 }
  0x46   : > { %6749 = vmatprep.mubr.msk.bf16.mxu1 %vm11351_vm1, %v11353_v2  ;;  %7029 = vmatprep.mubr.msk.bf16.mxu0 %vm11351_vm1, %v11353_v2 }
  0x4d   : > { %6750 = vmatmul.mubr.msk.bf16.gmra.mrb[28].mxu1 %vm484_vm2, %v7973_v23  ;;  %7030 = vmatmul.mubr.msk.bf16.gmra.mrb[28].mxu0 %vm484_vm2, %v7974_v24  ;;  %v2487_v23 = vshll.u32 %v7995_v19, 16  ;;  %v2485_v24 = vor.u32 %v2483_v22, %v2481_v18  ;;  %v2547_v18 = vshrl.u32 %v8009_v8, 16  ;;  %v2551_v19 = vshll.u32 %v8011_v15, 16  ;;  %v8013_v22 = vld [vmem:[%s8371_s16 + $0x1c0] ss:$0 sps:$4 sm:$0x11]  }
  0x4e   : > { %6753 = vmatprep.mubr.msk.bf16.mxu1 %vm11351_vm1, %v11353_v2  ;;  %7033 = vmatprep.mubr.msk.bf16.mxu0 %vm11351_vm1, %v11353_v2 }
  0x55   : > { %6754 = vmatmul.mubr.msk.bf16.gmra.mrb[32].mxu1 %vm484_vm2, %v7975_v25  ;;  %7034 = vmatmul.mubr.msk.bf16.gmra.mrb[32].mxu0 %vm484_vm2, %v7976_v26  ;;  %v2489_v25 = vrot.slane %v2487_v23, 1  ;;  %v7997_v26 = vld [vmem:[%s8371_s16 + $0x180] sm:$0xff]   ;;  %v2820_v23 = vld [vmem:[%s8371_s16 + $0x8] sm:$0xf] }
  0x56   : > { %6757 = vmatprep.mubr.msk.bf16.mxu1 %vm11351_vm1, %v11353_v2  ;;  %7037 = vmatprep.mubr.msk.bf16.mxu0 %vm11351_vm1, %v11353_v2  ;;  %v2499_v38 = vshrl.u32 %v7997_v26, 16 }
  0x57   : > { %v2490_v29 = vsel %vm1142_vm3, %v2485_v24, %v2489_v25  ;;  %v2493_v33 = vor.u32 %v2491_v30, %v2489_v25  ;;  %v8610_v24 = vld [vmem:[%s8371_s16 + $0xc] sm:$0xf]  ;;  %v8010_v25 = vld [vmem:[%s8371_s16 + $0x40] sm:$0xff]  }
  0x5d   : > { %6758 = vmatmul.mubr.msk.bf16.gmra.mrb[36].mxu1 %vm484_vm2, %v7977_v28  ;;  %7038 = vmatmul.mubr.msk.bf16.gmra.mrb[36].mxu0 %vm484_vm2, %v7978_v31  ;;  %v6120_v28 = vld [vmem:[%s11344_s2 + $0x8] sm:$0xf]  ;;  %v2495_v31 = vshll.u32 %v7997_v26, 16 }
  0x5e   : > { %6761 = vmatprep.mubr.msk.bf16.mxu1 %vm11351_vm1, %v11353_v2  ;;  %7071 = vmatprep.mubr.msk.bf16.mxu0 %vm11351_vm1, %v11353_v2  ;;  %v1335_v32 = vsel %vm536_vm0, %v6120_v28, 0  ;;  %v2559_v28 = vshll.u32 %v8013_v22, 16  ;;  %v8030_v22 = vld [vmem:[%s8371_s16 + $0x8] sm:$0xff]  }
  0x5f   : > { %v2497_v34 = vrot.slane %v2495_v31, 1 }
  0x60   : > { %v2561_v31 = vrot.slane %v2559_v28, 1  ;;  %v8027_v28 = vld [vmem:[%s8371_s16 + $0x80] sm:$0xff]  }
  0x61   : > { %v2498_v37 = vsel %vm1142_vm3, %v2493_v33, %v2497_v34 }
  0x65   : > { %6762 = vmatmul.mubr.msk.bf16.gmra.mrb[40].mxu1 %vm484_vm2, %v7979_v39  ;;  %7072 = vmatmul.mubr.msk.bf16.vlgmr.msra.gmra.mrb[0].mxu0 %vm484_vm2, %v2434_v40  ;;  %v2503_v39 = vshll.u32 %v7999_v35, 16  ;;  %v2501_v40 = vor.u32 %v2499_v38, %v2497_v34  ;;  %v8012_v34 = vld [vmem:[%s8371_s16 + $0x48] sm:$0xff]  }
  0x66   : > { %6765 = vmatprep.mubr.msk.bf16.mxu1 %vm11351_vm1, %v11353_v2  ;;  %7140 = vmatpush3.bf16.msra.mxu0 %v3137_v43  ;;  %v7998_v43 = vld [vmem:[%s8371_s16 + $0x10] sm:$0xff]  }
  0x67   : > { %7075 = vmatprep.mubr.msk.bf16.mxu0 %vm11351_vm1, %v11353_v2  ;;  %7209 = vmatprep.subr.bf16.mxu0 %v11353_v2  ;;  %v2505_v41 = vrot.slane %v2503_v39, 1 }
  0x69   : > { %v2506_v44 = vsel %vm1142_vm3, %v2501_v40, %v2505_v41 }
  0x6d   : > { %6766 = vmatmul.mubr.msk.bf16.gmra.mrb[44].mxu1 %vm484_vm2, %v7982_v47  ;;  %7076 = vmatmul.mubr.msk.bf16.gmra.mrb[4].mxu0 %vm484_vm2, %v2442_v48  ;;  %v2509_v47 = vor.u32 %v2507_v45, %v2505_v41  ;;  %v2513_v48 = vrot.slane %v2511_v46, 1  ;;  %v8634_v41 = vld [vmem:[%s8371_s16 + $0x18] sm:$0xff]  }
  0x6e   : > { %6769 = vmatprep.mubr.msk.bf16.mxu1 %vm11351_vm1, %v11353_v2  ;;  %7079 = vmatprep.mubr.msk.bf16.mxu0 %vm11351_vm1, %v11353_v2  ;;  %v2961_v46 = vshll.u32 %v8634_v41, 16 }
  0x6f   : > { %v2514_v51 = vsel %vm1142_vm3, %v2509_v47, %v2513_v48 }
  0x70   : > { %v2963_v49 = vrot.slane %v2961_v46, 1 }
  0x75   : > { %6770 = vmatmul.mubr.msk.bf16.gmra.mrb[48].mxu1 %vm484_vm2, %v7984_v54  ;;  %7080 = vmatmul.mubr.msk.bf16.gmra.mrb[8].mxu0 %vm484_vm2, %v2450_v55  ;;  %v2517_v54 = vor.u32 %v2515_v52, %v2513_v48  ;;  %v2521_v55 = vrot.slane %v2519_v53, 1  ;;  %v2965_v53 = vshrl.u32 %v8634_v41, 16 }
  0x76   : > { %6773 = vmatprep.mubr.msk.bf16.mxu1 %vm11351_vm1, %v11353_v2  ;;  %7083 = vmatprep.mubr.msk.bf16.mxu0 %vm11351_vm1, %v11353_v2 }
  0x77   : > { %v2522_v58 = vsel %vm1142_vm3, %v2517_v54, %v2521_v55 }
  0x7d   : > { %6774 = vmatmul.mubr.msk.bf16.gmra.mrb[52].mxu1 %vm484_vm2, %v7986_v61  ;;  %7084 = vmatmul.mubr.msk.bf16.gmra.mrb[12].mxu0 %vm484_vm2, %v2458_v62  ;;  %v2525_v61 = vor.u32 %v2523_v59, %v2521_v55  ;;  %v2529_v62 = vrot.slane %v2527_v60, 1  ;;  %v2967_v55 = vor.u32 %v2965_v53, %v2963_v49 }
  0x7e   : > { %6777 = vmatprep.mubr.msk.bf16.mxu1 %vm11351_vm1, %v11353_v2  ;;  %7087 = vmatprep.mubr.msk.bf16.mxu0 %vm11351_vm1, %v11353_v2 }
  0x7f   : > { %v2530_v1 = vsel %vm1142_vm3, %v2525_v61, %v2529_v62 }
  0x85   : > { %6778 = vmatmul.mubr.msk.bf16.gmra.mrb[56].mxu1 %vm484_vm2, %v7988_v6  ;;  %7088 = vmatmul.mubr.msk.bf16.gmra.mrb[16].mxu0 %vm484_vm2, %v2466_v7  ;;  %v2533_v6 = vor.u32 %v2531_v4, %v2529_v62  ;;  %v2537_v7 = vrot.slane %v2535_v5, 1 }
  0x86   : > { %6781 = vmatprep.mubr.msk.bf16.mxu1 %vm11351_vm1, %v11353_v2  ;;  %7091 = vmatprep.mubr.msk.bf16.mxu0 %vm11351_vm1, %v11353_v2 }
  0x87   : > { %v2538_v10 = vsel %vm1142_vm3, %v2533_v6, %v2537_v7 }
  0x8d   : > { %6782 = vmatmul.mubr.msk.bf16.gmra.mrb[60].mxu1 %vm484_vm2, %v7990_v13  ;;  %7092 = vmatmul.mubr.msk.bf16.gmra.mrb[20].mxu0 %vm484_vm2, %v2474_v14  ;;  %v2541_v13 = vor.u32 %v2539_v11, %v2537_v7  ;;  %v2545_v14 = vrot.slane %v2543_v12, 1 }
  0x8e   : > { %6785 = vmatprep.mubr.msk.bf16.mxu1 %vm11351_vm1, %v11353_v2  ;;  %7095 = vmatprep.mubr.msk.bf16.mxu0 %vm11351_vm1, %v11353_v2 }
  0x8f   : > { %v2546_v17 = vsel %vm1142_vm3, %v2541_v13, %v2545_v14 }
  0x95   : > { %6786 = vmatmul.mubr.msk.bf16.gmra.mrb[64].mxu1 %vm484_vm2, %v7992_v20  ;;  %7096 = vmatmul.mubr.msk.bf16.gmra.mrb[24].mxu0 %vm484_vm2, %v2482_v21  ;;  %v2549_v20 = vor.u32 %v2547_v18, %v2545_v14  ;;  %v2553_v21 = vrot.slane %v2551_v19, 1  ;;  %v8029_v18 = vld [vmem:[%s8371_s16] sm:$0xff]  }
  0x96   : > { %6791 = vmatprep.mubr.msk.bf16.mxu1 %vm11351_vm1, %v11353_v2  ;;  %7099 = vmatprep.mubr.msk.bf16.mxu0 %vm11351_vm1, %v11353_v2 }
  0x97   : > { %v2554_v26 = vsel %vm1142_vm3, %v2549_v20, %v2553_v21 }
  0x9d   : > { %6792 = vmatmul.mubr.msk.bf16.vlgmr.msra.gmra.mrb[0].mxu1 %vm484_vm2, %v7994_v27  ;;  %7100 = vmatmul.mubr.msk.bf16.gmra.mrb[28].mxu0 %vm484_vm2, %v2490_v29  ;;  %v2555_v27 = vshrl.u32 %v8011_v15, 16  ;;  %v6366_v29 = vcombine.low %v2820_v23, %v8610_v24  ;;  %v1146_v23 = vshll.u32 %v8029_v18, 16 }
  0x9e   : > { %6795 = vmatprep.mubr.msk.bf16.mxu1 %vm11351_vm1, %v11353_v2  ;;  %7103 = vmatprep.mubr.msk.bf16.mxu0 %vm11351_vm1, %v11353_v2 }
  0x9f   : > { %6860 = vmatpush3.bf16.msra.mxu1 %v1335_v32  ;;  %v2557_v30 = vor.u32 %v2555_v27, %v2553_v21  ;;  %v8622_v32 = vld [vmem:[%s8371_s16 + $0x10] sm:$0xff]   ;;  %v2948_v33 = vshll.u32 %v6366_v29, 16  ;;  %v8719_v27 = vld [vmem:[%s8371_s16 + $0x48] sm:$0xff]  }
  0xa0   : > { %6929 = vmatprep.subr.bf16.mxu1 %v11353_v2  ;;  %v2953_v38 = vshll.u32 %v8622_v32, 16  ;;  %v2957_v45 = vshrl.u32 %v8622_v32, 16 }
  0xa1   : > { %v2562_v35 = vsel %vm1142_vm3, %v2557_v30, %v2561_v31  ;;  %v1148_v30 = vrot.slane %v1146_v23, 1  ;;  %v1151_v31 = vshll.u32 %v8030_v22, 16  ;;  %v8780_v23 = vld [vmem:[%s8371_s16 + $0x68] sm:$0xff]  }
  0xa2   : > { %v2955_v40 = vrot.slane %v2953_v38, 1  ;;  %v8032_v38 = vld [vmem:[%s8371_s16 + $0x10] sm:$0xff]  }
  0xa3   : > { %v1159_v46 = vshll.u32 %v8032_v38, 16 }
  0xa4   : > { %v2959_v48 = vor.u32 %v2957_v45, %v2955_v40  ;;  %v1155_v45 = vshrl.u32 %v8030_v22, 16 }
  0xa5   : > { %6796 = vmatmul.mubr.msk.bf16.gmra.mrb[4].mxu1 %vm484_vm2, %v7996_v36  ;;  %7104 = vmatmul.mubr.msk.bf16.gmra.mrb[32].mxu0 %vm484_vm2, %v2498_v37  ;;  %v2946_v36 = vshrl.u32 %v6366_v29, 16  ;;  %v2950_v37 = vrot.slane %v2948_v33, 1  ;;  %v1144_v29 = vshrl.u32 %v8029_v18, 16  ;;  %v1161_v53 = vrot.slane %v1159_v46, 1 }
  0xa6   : > { %6799 = vmatprep.mubr.msk.bf16.mxu1 %vm11351_vm1, %v11353_v2  ;;  %7107 = vmatprep.mubr.msk.bf16.mxu0 %vm11351_vm1, %v11353_v2  ;;  %v2964_v52 = vsel %vm1142_vm3, %v2959_v48, %v2963_v49  ;;  %v3013_v48 = vshrl.u32 %v8719_v27, 16 }
  0xa7   : > { %v2951_v39 = vor.u32 %v2950_v37, %v2946_v36  ;;  %v1149_v36 = vor.u32 %v1148_v30, %v1144_v29  ;;  %v1153_v37 = vrot.slane %v1151_v31, 1  ;;  %v3041_v31 = vshll.u32 %v8780_v23, 16 }
  0xad   : > { %6800 = vmatmul.mubr.msk.bf16.gmra.mrb[8].mxu1 %vm484_vm2, %v7998_v43  ;;  %7108 = vmatmul.mubr.msk.bf16.gmra.mrb[36].mxu0 %vm484_vm2, %v2506_v44  ;;  %v6436_v43 = vld [vmem:[%s11344_s2 + $0x1c] sm:$0xf]  ;;  %v2956_v44 = vsel %vm1142_vm3, %v2951_v39, %v2955_v40 }
  0xae   : > { %6803 = vmatprep.mubr.msk.bf16.mxu1 %vm11351_vm1, %v11353_v2  ;;  %7111 = vmatprep.mubr.msk.bf16.mxu0 %vm11351_vm1, %v11353_v2  ;;  %v3659_v47 = vsel %vm536_vm0, %v6436_v43, 0  ;;  %v6190_v43 = vld [vmem:[%s11344_s2 + $0xc] sm:$0xf] }
  0xb5   : > { %6804 = vmatmul.mubr.msk.bf16.gmra.mrb[12].mxu1 %vm484_vm2, %v8000_v50  ;;  %7112 = vmatmul.mubr.msk.bf16.gmra.mrb[40].mxu0 %vm484_vm2, %v2514_v51  ;;  %v8651_v50 = vld [vmem:[%s8371_s16 + $0x20] sm:$0xff]   ;;  %v8017_v51 = vld [vmem:[%s8371_s16 + $0x58] sm:$0xff]  }
  0xb6   : > { %6807 = vmatprep.mubr.msk.bf16.mxu1 %vm11351_vm1, %v11353_v2  ;;  %7115 = vmatprep.mubr.msk.bf16.mxu0 %vm11351_vm1, %v11353_v2  ;;  %v2969_v54 = vshll.u32 %v8651_v50, 16  ;;  %v2973_v60 = vshrl.u32 %v8651_v50, 16 }
  0xb8   : > { %v2971_v56 = vrot.slane %v2969_v54, 1  ;;  %v8034_v54 = vld [vmem:[%s8371_s16 + $0x18] sm:$0xff]  }
  0xba   : > { %v2972_v59 = vsel %vm1142_vm3, %v2967_v55, %v2971_v56  ;;  %v2975_v62 = vor.u32 %v2973_v60, %v2971_v56  ;;  %v1163_v60 = vshrl.u32 %v8032_v38, 16  ;;  %v8794_v38 = vld [vmem:[%s8371_s16 + $0x70] sm:$0xff]  }
  0xbb   : > { %v3049_v46 = vshll.u32 %v8794_v38, 16 }
  0xbd   : > { %6808 = vmatmul.mubr.msk.bf16.gmra.mrb[16].mxu1 %vm484_vm2, %v8002_v57  ;;  %7116 = vmatmul.mubr.msk.bf16.gmra.mrb[44].mxu0 %vm484_vm2, %v2522_v58  ;;  %v8665_v57 = vld [vmem:[%s8371_s16 + $0x28] sm:$0xff]   ;;  %v8019_v58 = vld [vmem:[%s8371_s16 + $0x60] sm:$0xff]  }
  0xbe   : > { %6811 = vmatprep.mubr.msk.bf16.mxu1 %vm11351_vm1, %v11353_v2  ;;  %7119 = vmatprep.mubr.msk.bf16.mxu0 %vm11351_vm1, %v11353_v2  ;;  %v2977_v61 = vshll.u32 %v8665_v57, 16  ;;  %v2981_v5 = vshrl.u32 %v8665_v57, 16 }
  0xc0   : > { %v2979_v63 = vrot.slane %v2977_v61, 1  ;;  %v1167_v61 = vshll.u32 %v8034_v54, 16 }
  0xc2   : > { %v2980_v4 = vsel %vm1142_vm3, %v2975_v62, %v2979_v63  ;;  %v2983_v7 = vor.u32 %v2981_v5, %v2979_v63  ;;  %v1169_v5 = vrot.slane %v1167_v61, 1 }
  0xc5   : > { %6812 = vmatmul.mubr.msk.bf16.gmra.mrb[20].mxu1 %vm484_vm2, %v8004_v0  ;;  %7120 = vmatmul.mubr.msk.bf16.gmra.mrb[48].mxu0 %vm484_vm2, %v2530_v1  ;;  %v8678_v0 = vld [vmem:[%s8371_s16 + $0x30] sm:$0xff]   ;;  %v8021_v1 = vld [vmem:[%s8371_s16 + $0x68] sm:$0xff]  }
  0xc6   : > { %6815 = vmatprep.mubr.msk.bf16.mxu1 %vm11351_vm1, %v11353_v2  ;;  %7123 = vmatprep.mubr.msk.bf16.mxu0 %vm11351_vm1, %v11353_v2  ;;  %v2985_v6 = vshll.u32 %v8678_v0, 16  ;;  %v2989_v12 = vshrl.u32 %v8678_v0, 16 }
  0xc8   : > { %v2987_v8 = vrot.slane %v2985_v6, 1  ;;  %v8036_v6 = vld [vmem:[%s8371_s16 + $0x20] sm:$0xff]  }
  0xca   : > { %v2988_v11 = vsel %vm1142_vm3, %v2983_v7, %v2987_v8  ;;  %v2991_v14 = vor.u32 %v2989_v12, %v2987_v8  ;;  %v1171_v12 = vshrl.u32 %v8034_v54, 16 }
  0xcc   : > { %v1173_v18 = vor.u32 %v1171_v12, %v1169_v5 }
  0xcd   : > { %6816 = vmatmul.mubr.msk.bf16.gmra.mrb[24].mxu1 %vm484_vm2, %v8006_v9  ;;  %7124 = vmatmul.mubr.msk.bf16.gmra.mrb[52].mxu0 %vm484_vm2, %v2538_v10  ;;  %v8691_v9 = vld [vmem:[%s8371_s16 + $0x38] sm:$0xff]   ;;  %v8023_v10 = vld [vmem:[%s8371_s16 + $0x70] sm:$0xff]  }
  0xce   : > { %6819 = vmatprep.mubr.msk.bf16.mxu1 %vm11351_vm1, %v11353_v2  ;;  %7127 = vmatprep.mubr.msk.bf16.mxu0 %vm11351_vm1, %v11353_v2  ;;  %v2993_v13 = vshll.u32 %v8691_v9, 16  ;;  %v2997_v20 = vshrl.u32 %v8691_v9, 16 }
  0xd0   : > { %v2995_v15 = vrot.slane %v2993_v13, 1  ;;  %v1175_v13 = vshll.u32 %v8036_v6, 16 }
  0xd2   : > { %v2996_v19 = vsel %vm1142_vm3, %v2991_v14, %v2995_v15 }
  0xd5   : > { %6820 = vmatmul.mubr.msk.bf16.gmra.mrb[28].mxu1 %vm484_vm2, %v8008_v16  ;;  %7128 = vmatmul.mubr.msk.bf16.gmra.mrb[56].mxu0 %vm484_vm2, %v2546_v17  ;;  %v8704_v16 = vld [vmem:[%s8371_s16 + $0x40] sm:$0xff]   ;;  %v8025_v17 = vld [vmem:[%s8371_s16 + $0x78] sm:$0xff]  }
  0xd6   : > { %6823 = vmatprep.mubr.msk.bf16.mxu1 %vm11351_vm1, %v11353_v2  ;;  %7131 = vmatprep.mubr.msk.bf16.mxu0 %vm11351_vm1, %v11353_v2  ;;  %v3001_v21 = vshll.u32 %v8704_v16, 16 }
  0xdd   : > { %6824 = vmatmul.mubr.msk.bf16.gmra.mrb[32].mxu1 %vm484_vm2, %v8010_v25  ;;  %7132 = vmatmul.mubr.msk.bf16.gmra.mrb[60].mxu0 %vm484_vm2, %v2554_v26  ;;  %v2999_v25 = vor.u32 %v2997_v20, %v2995_v15  ;;  %v3003_v26 = vrot.slane %v3001_v21, 1  ;;  %v8038_v20 = vld [vmem:[%s8371_s16 + $0x28] sm:$0xff]  }
  0xde   : > { %6827 = vmatprep.mubr.msk.bf16.mxu1 %vm11351_vm1, %v11353_v2  ;;  %7135 = vmatprep.mubr.msk.bf16.mxu0 %vm11351_vm1, %v11353_v2 }
  0xdf   : > { %v3004_v33 = vsel %vm1142_vm3, %v2999_v25, %v3003_v26 }
  0xe5   : > { %6828 = vmatmul.mubr.msk.bf16.gmra.mrb[36].mxu1 %vm484_vm2, %v8012_v34  ;;  %7136 = vmatmul.mubr.msk.bf16.gmra.mrb[64].mxu0 %vm484_vm2, %v2562_v35  ;;  %v3005_v34 = vshrl.u32 %v8704_v16, 16  ;;  %v3009_v35 = vshll.u32 %v8719_v27, 16 }
  0xe6   : > { %6831 = vmatprep.mubr.msk.bf16.mxu1 %vm11351_vm1, %v11353_v2  ;;  %7141 = vmatprep.mubr.msk.bf16.mxu0 %vm11351_vm1, %v11353_v2 }
  0xe7   : > { %v3007_v39 = vor.u32 %v3005_v34, %v3003_v26  ;;  %v3011_v40 = vrot.slane %v3009_v35, 1  ;;  %v1179_v26 = vshrl.u32 %v8036_v6, 16  ;;  %v8040_v35 = vld [vmem:[%s8371_s16 + $0x30] sm:$0xff]   ;;  %v8822_v6 = vld [vmem:[%s8371_s16 + $0x80] sm:$0xff]  }
  0xe9   : > { %v3015_v55 = vor.u32 %v3013_v48, %v3011_v40 }
  0xed   : > { %6832 = vmatmul.mubr.msk.bf16.gmra.mrb[40].mxu1 %vm484_vm2, %v8014_v42  ;;  %7142 = vmatmul.mubr.msk.bf16.vlgmr.msra.gmra.mrb[0].mxu0 %vm484_vm2, %v2956_v44  ;;  %v8733_v42 = vld [vmem:[%s8371_s16 + $0x50] sm:$0xff]   ;;  %v1154_v44 = vsel %vm1142_vm3, %v1149_v36, %v1153_v37 }
  0xee   : > { %6835 = vmatprep.mubr.msk.bf16.mxu1 %vm11351_vm1, %v11353_v2  ;;  %7210 = vmatpush3.bf16.msra.mxu0 %v3659_v47  ;;  %v3012_v47 = vsel %vm1142_vm3, %v3007_v39, %v3011_v40  ;;  %v3017_v49 = vshll.u32 %v8733_v42, 16  ;;  %v3021_v63 = vshrl.u32 %v8733_v42, 16  ;;  %v1187_v40 = vshrl.u32 %v8038_v20, 16 }
  0xef   : > { %7145 = vmatprep.mubr.msk.bf16.mxu0 %vm11351_vm1, %v11353_v2  ;;  %7279 = vmatprep.subr.bf16.mxu0 %v11353_v2 }
  0xf0   : > { %v3019_v56 = vrot.slane %v3017_v49, 1  ;;  %v8042_v49 = vld [vmem:[%s8371_s16 + $0x38] sm:$0xff]  }
  0xf2   : > { %v3020_v62 = vsel %vm1142_vm3, %v3015_v55, %v3019_v56  ;;  %v3023_v7 = vor.u32 %v3021_v63, %v3019_v56  ;;  %v1195_v55 = vshrl.u32 %v8040_v35, 16  ;;  %v1199_v56 = vshll.u32 %v8042_v49, 16 }
  0xf4   : > { %v1201_v63 = vrot.slane %v1199_v56, 1 }
  0xf5   : > { %6836 = vmatmul.mubr.msk.bf16.gmra.mrb[44].mxu1 %vm484_vm2, %v8017_v51  ;;  %7146 = vmatmul.mubr.msk.bf16.gmra.mrb[4].mxu0 %vm484_vm2, %v2964_v52  ;;  %v1714_v51 = vsel %vm536_vm0, %v6190_v43, 0  ;;  %v1157_v52 = vor.u32 %v1155_v45, %v1153_v37  ;;  %v3043_v37 = vrot.slane %v3041_v31, 1  ;;  %v1191_v43 = vshll.u32 %v8040_v35, 16 }
  0xf6   : > { %6839 = vmatprep.mubr.msk.bf16.mxu1 %vm11351_vm1, %v11353_v2  ;;  %7149 = vmatprep.mubr.msk.bf16.mxu0 %vm11351_vm1, %v11353_v2  ;;  %v3045_v45 = vshrl.u32 %v8780_v23, 16 }
  0xf7   : > { %v1193_v48 = vrot.slane %v1191_v43, 1 }
  0xfd   : > { %6840 = vmatmul.mubr.msk.bf16.gmra.mrb[48].mxu1 %vm484_vm2, %v8019_v58  ;;  %7150 = vmatmul.mubr.msk.bf16.gmra.mrb[8].mxu0 %vm484_vm2, %v2972_v59  ;;  %v8751_v58 = vld [vmem:[%s8371_s16 + $0x58] sm:$0xff]   ;;  %v1162_v59 = vsel %vm1142_vm3, %v1157_v52, %v1161_v53  ;;  %v3051_v52 = vrot.slane %v3049_v46, 1 }
  0xfe   : > { %6843 = vmatprep.mubr.msk.bf16.mxu1 %vm11351_vm1, %v11353_v2  ;;  %7153 = vmatprep.mubr.msk.bf16.mxu0 %vm11351_vm1, %v11353_v2  ;;  %v3029_v15 = vshrl.u32 %v8751_v58, 16 }
 0x105   : > { %6844 = vmatmul.mubr.msk.bf16.gmra.mrb[52].mxu1 %vm484_vm2, %v8021_v1  ;;  %7154 = vmatmul.mubr.msk.bf16.gmra.mrb[12].mxu0 %vm484_vm2, %v2980_v4  ;;  %v3025_v1 = vshll.u32 %v8751_v58, 16  ;;  %v1165_v4 = vor.u32 %v1163_v60, %v1161_v53  ;;  %v8808_v53 = vld [vmem:[%s8371_s16 + $0x78] sm:$0xff]   ;;  %v3053_v60 = vshrl.u32 %v8794_v38, 16 }
 0x106   : > { %6847 = vmatprep.mubr.msk.bf16.mxu1 %vm11351_vm1, %v11353_v2  ;;  %7157 = vmatprep.mubr.msk.bf16.mxu0 %vm11351_vm1, %v11353_v2  ;;  %v3057_v61 = vshll.u32 %v8808_v53, 16 }
 0x107   : > { %v3027_v8 = vrot.slane %v3025_v1, 1  ;;  %v8044_v1 = vld [vmem:[%s8371_s16 + $0x40] sm:$0xff]  }
 0x109   : > { %v3028_v14 = vsel %vm1142_vm3, %v3023_v7, %v3027_v8  ;;  %v3031_v21 = vor.u32 %v3029_v15, %v3027_v8  ;;  %v1203_v8 = vshrl.u32 %v8042_v49, 16 }
 0x10b   : > { %v1205_v15 = vor.u32 %v1203_v8, %v1201_v63  ;;  %v8053_v8 = vld [vmem:[%s8371_s16 + $0x60] sm:$0xff]  }
 0x10d   : > { %6848 = vmatmul.mubr.msk.bf16.gmra.mrb[56].mxu1 %vm484_vm2, %v8023_v10  ;;  %7158 = vmatmul.mubr.msk.bf16.gmra.mrb[16].mxu0 %vm484_vm2, %v2988_v11  ;;  %v8766_v10 = vld [vmem:[%s8371_s16 + $0x60] sm:$0xff]   ;;  %v1170_v11 = vsel %vm1142_vm3, %v1165_v4, %v1169_v5  ;;  %v3055_v4 = vor.u32 %v3053_v60, %v3051_v52  ;;  %v3059_v5 = vrot.slane %v3057_v61, 1 }
 0x10e   : > { %6851 = vmatprep.mubr.msk.bf16.mxu1 %vm11351_vm1, %v11353_v2  ;;  %7161 = vmatprep.mubr.msk.bf16.mxu0 %vm11351_vm1, %v11353_v2  ;;  %v3037_v30 = vshrl.u32 %v8766_v10, 16 }
 0x10f   : > { %v3060_v12 = vsel %vm1142_vm3, %v3055_v4, %v3059_v5 }
 0x115   : > { %6852 = vmatmul.mubr.msk.bf16.gmra.mrb[60].mxu1 %vm484_vm2, %v8025_v17  ;;  %7162 = vmatmul.mubr.msk.bf16.gmra.mrb[20].mxu0 %vm484_vm2, %v2996_v19  ;;  %v3033_v17 = vshll.u32 %v8766_v10, 16  ;;  %v1177_v19 = vrot.slane %v1175_v13, 1  ;;  %v3061_v13 = vshrl.u32 %v8808_v53, 16 }
 0x116   : > { %6855 = vmatprep.mubr.msk.bf16.mxu1 %vm11351_vm1, %v11353_v2  ;;  %7165 = vmatprep.mubr.msk.bf16.mxu0 %vm11351_vm1, %v11353_v2 }
 0x117   : > { %v3035_v22 = vrot.slane %v3033_v17, 1  ;;  %v1178_v25 = vsel %vm1142_vm3, %v1173_v18, %v1177_v19  ;;  %v8046_v18 = vld [vmem:[%s8371_s16 + $0x48] sm:$0xff]  }
 0x119   : > { %v3036_v29 = vsel %vm1142_vm3, %v3031_v21, %v3035_v22  ;;  %v3039_v36 = vor.u32 %v3037_v30, %v3035_v22  ;;  %v8836_v21 = vld [vmem:[%s8371_s16 + $0x88] sm:$0xff]  }
 0x11a   : > { %v3073_v30 = vshll.u32 %v8836_v21, 16 }
 0x11d   : > { %6856 = vmatmul.mubr.msk.bf16.gmra.mrb[64].mxu1 %vm484_vm2, %v8027_v28  ;;  %7166 = vmatmul.mubr.msk.bf16.gmra.mrb[24].mxu0 %vm484_vm2, %v3004_v33  ;;  %v1183_v28 = vshll.u32 %v8038_v20, 16  ;;  %v1181_v33 = vor.u32 %v1179_v26, %v1177_v19  ;;  %v3063_v19 = vor.u32 %v3061_v13, %v3059_v5  ;;  %v1215_v26 = vshll.u32 %v8046_v18, 16  ;;  %v8054_v13 = vld [vmem:[%s8371_s16 + $0xb4] sm:$0xff]  }
 0x11e   : > { %6861 = vmatprep.mubr.msk.bf16.mxu1 %vm11351_vm1, %v11353_v2  ;;  %7169 = vmatprep.mubr.msk.bf16.mxu0 %vm11351_vm1, %v11353_v2 }
 0x11f   : > { %v1185_v34 = vrot.slane %v1183_v28, 1 }
 0x121   : > { %v1186_v39 = vsel %vm1142_vm3, %v1181_v33, %v1185_v34  ;;  %v1217_v33 = vrot.slane %v1215_v26, 1 }
 0x125   : > { %6862 = vmatmul.mubr.msk.bf16.vlgmr.msra.gmra.mrb[0].mxu1 %vm484_vm2, %v1154_v44  ;;  %7170 = vmatmul.mubr.msk.bf16.gmra.mrb[28].mxu0 %vm484_vm2, %v3012_v47  ;;  %v3044_v44 = vsel %vm1142_vm3, %v3039_v36, %v3043_v37  ;;  %v1189_v47 = vor.u32 %v1187_v40, %v1185_v34  ;;  %v8048_v34 = vld [vmem:[%s8371_s16 + $0x50] sm:$0xff]   ;;  %v3075_v36 = vrot.slane %v3073_v30, 1  ;;  %v1219_v40 = vshrl.u32 %v8046_v18, 16 }
 0x126   : > { %6865 = vmatprep.mubr.msk.bf16.mxu1 %vm11351_vm1, %v11353_v2  ;;  %7173 = vmatprep.mubr.msk.bf16.mxu0 %vm11351_vm1, %v11353_v2  ;;  %v1223_v43 = vshll.u32 %v8048_v34, 16  ;;  %v1227_v60 = vshrl.u32 %v8048_v34, 16  ;;  %v1239_v18 = vshll.u32 %v8053_v8, 16 }
 0x127   : > { %6930 = vmatpush3.bf16.msra.mxu1 %v1714_v51  ;;  %v3047_v51 = vor.u32 %v3045_v45, %v3043_v37  ;;  %v1194_v54 = vsel %vm1142_vm3, %v1189_v47, %v1193_v48  ;;  %v8850_v37 = vld [vmem:[%s8371_s16 + $0x90] ss:$0 sps:$4 sm:$0x11]   ;;  %v3077_v45 = vshrl.u32 %v8836_v21, 16  ;;  %v8051_v47 = vld [vmem:[%s8371_s16 + $0xa4] sm:$0xff]  }
 0x128   : > { %7367 = vmatprep.subr.bf16.mxu1 %v11353_v2  ;;  %v3081_v46 = vshll.u32 %v8850_v37, 16  ;;  %v1225_v49 = vrot.slane %v1223_v43, 1  ;;  %v3470_v56 = vshll.u32 %v8051_v47, 16 }
 0x12a   : > { %v1229_v5 = vor.u32 %v1227_v60, %v1225_v49 }
 0x12d   : > { %6866 = vmatmul.mubr.msk.bf16.gmra.mrb[4].mxu1 %vm484_vm2, %v1162_v59  ;;  %7174 = vmatmul.mubr.msk.bf16.gmra.mrb[32].mxu0 %vm484_vm2, %v3020_v62  ;;  %v3052_v59 = vsel %vm1142_vm3, %v3047_v51, %v3051_v52  ;;  %v1197_v62 = vor.u32 %v1195_v55, %v1193_v48  ;;  %v1221_v48 = vor.u32 %v1219_v40, %v1217_v33  ;;  %v8050_v51 = vld [vmem:[%s8371_s16 + $0x58] sm:$0xff]   ;;  %v8052_v55 = vld [vmem:[%s8371_s16 + $0xac] sm:$0xff]   ;;  %v3487_v40 = vshrl.u32 %v8054_v13, 16 }
 0x12e   : > { %6869 = vmatprep.mubr.msk.bf16.mxu1 %vm11351_vm1, %v11353_v2  ;;  %7177 = vmatprep.mubr.msk.bf16.mxu0 %vm11351_vm1, %v11353_v2  ;;  %v3079_v52 = vor.u32 %v3077_v45, %v3075_v36  ;;  %v1231_v61 = vshll.u32 %v8050_v51, 16  ;;  %v3475_v4 = vshll.u32 %v8052_v55, 16 }
 0x12f   : > { %v1202_v7 = vsel %vm1142_vm3, %v1197_v62, %v1201_v63  ;;  %v3468_v63 = vshrl.u32 %v8051_v47, 16 }
 0x135   : > { %6870 = vmatmul.mubr.msk.bf16.gmra.mrb[8].mxu1 %vm484_vm2, %v1170_v11  ;;  %7178 = vmatmul.mubr.msk.bf16.gmra.mrb[36].mxu0 %vm484_vm2, %v3028_v14  ;;  %v1207_v11 = vshll.u32 %v8044_v1, 16  ;;  %v3065_v14 = vshll.u32 %v8822_v6, 16 }
 0x136   : > { %6873 = vmatprep.mubr.msk.bf16.mxu1 %vm11351_vm1, %v11353_v2  ;;  %7181 = vmatprep.mubr.msk.bf16.mxu0 %vm11351_vm1, %v11353_v2 }
 0x137   : > { %v1209_v17 = vrot.slane %v1207_v11, 1  ;;  %v3067_v20 = vrot.slane %v3065_v14, 1  ;;  %v6472_v14 = vld [vmem:[%s11344_s2 + $0x20] sm:$0xf] }
 0x139   : > { %v1210_v22 = vsel %vm1142_vm3, %v1205_v15, %v1209_v17  ;;  %v3068_v28 = vsel %vm1142_vm3, %v3063_v19, %v3067_v20 }
 0x13d   : > { %6874 = vmatmul.mubr.msk.bf16.gmra.mrb[12].mxu1 %vm484_vm2, %v1178_v25  ;;  %7182 = vmatmul.mubr.msk.bf16.gmra.mrb[40].mxu0 %vm484_vm2, %v3036_v29  ;;  %v1211_v25 = vshrl.u32 %v8044_v1, 16  ;;  %v3069_v29 = vshrl.u32 %v8822_v6, 16  ;;  %v3472_v1 = vrot.slane %v3470_v56, 1 }
 0x13e   : > { %6877 = vmatprep.mubr.msk.bf16.mxu1 %vm11351_vm1, %v11353_v2  ;;  %7185 = vmatprep.mubr.msk.bf16.mxu0 %vm11351_vm1, %v11353_v2 }
 0x13f   : > { %v1213_v31 = vor.u32 %v1211_v25, %v1209_v17  ;;  %v3071_v35 = vor.u32 %v3069_v29, %v3067_v20  ;;  %v3473_v11 = vor.u32 %v3472_v1, %v3468_v63  ;;  %v1235_v17 = vshrl.u32 %v8050_v51, 16  ;;  %v8055_v29 = vld [vmem:[%s8371_s16 + $0x68] sm:$0xff]  }
 0x140   : > { %v3479_v20 = vshrl.u32 %v8052_v55, 16  ;;  %v3958_v25 = vsel %vm536_vm0, %v6472_v14, 0 }
 0x145   : > { %6878 = vmatmul.mubr.msk.bf16.gmra.mrb[16].mxu1 %vm484_vm2, %v1186_v39  ;;  %7186 = vmatmul.mubr.msk.bf16.gmra.mrb[44].mxu0 %vm484_vm2, %v3044_v44  ;;  %v1218_v39 = vsel %vm1142_vm3, %v1213_v31, %v1217_v33  ;;  %v3076_v44 = vsel %vm1142_vm3, %v3071_v35, %v3075_v36  ;;  %v8056_v33 = vld [vmem:[%s8371_s16 + $0xbc] sm:$0xff]   ;;  %v1243_v35 = vshrl.u32 %v8053_v8, 16  ;;  %v1247_v36 = vshll.u32 %v8055_v29, 16 }
 0x146   : > { %6881 = vmatprep.mubr.msk.bf16.mxu1 %vm11351_vm1, %v11353_v2  ;;  %7189 = vmatprep.mubr.msk.bf16.mxu0 %vm11351_vm1, %v11353_v2  ;;  %v3491_v43 = vshll.u32 %v8056_v33, 16  ;;  %v3495_v56 = vshrl.u32 %v8056_v33, 16 }
 0x147   : > { %v1249_v45 = vrot.slane %v1247_v36, 1 }
 0x14d   : > { %6882 = vmatmul.mubr.msk.bf16.gmra.mrb[20].mxu1 %vm484_vm2, %v1194_v54  ;;  %7190 = vmatmul.mubr.msk.bf16.gmra.mrb[48].mxu0 %vm484_vm2, %v3052_v59  ;;  %v3083_v54 = vrot.slane %v3081_v46, 1  ;;  %v1226_v59 = vsel %vm1142_vm3, %v1221_v48, %v1225_v49  ;;  %v8057_v46 = vld [vmem:[%s8371_s16 + $0x70] sm:$0xff]   ;;  %v3493_v48 = vrot.slane %v3491_v43, 1  ;;  %v8058_v49 = vld [vmem:[%s8371_s16 + $0xc4] sm:$0xff]  }
 0x14e   : > { %6885 = vmatprep.mubr.msk.bf16.mxu1 %vm11351_vm1, %v11353_v2  ;;  %7193 = vmatprep.mubr.msk.bf16.mxu0 %vm11351_vm1, %v11353_v2 }
 0x14f   : > { %v3084_v62 = vsel %vm1142_vm3, %v3079_v52, %v3083_v54  ;;  %v1251_v52 = vshrl.u32 %v8055_v29, 16  ;;  %v1255_v54 = vshll.u32 %v8057_v46, 16  ;;  %v3497_v63 = vor.u32 %v3495_v56, %v3493_v48 }
 0x151   : > { %v1253_v60 = vor.u32 %v1251_v52, %v1249_v45 }
 0x155   : > { %6886 = vmatmul.mubr.msk.bf16.gmra.mrb[24].mxu1 %vm484_vm2, %v1202_v7  ;;  %7194 = vmatmul.mubr.msk.bf16.gmra.mrb[52].mxu0 %vm484_vm2, %v3060_v12  ;;  %v1233_v7 = vrot.slane %v1231_v61, 1  ;;  %v3477_v12 = vrot.slane %v3475_v4, 1  ;;  %v1257_v61 = vrot.slane %v1255_v54, 1  ;;  %v8060_v4 = vld [vmem:[%s8371_s16 + $0xcc] sm:$0xff]   ;;  %v8066_v54 = vld [vmem:[%s8371_s16 + $0xe4] sm:$0xff]  }
 0x156   : > { %6889 = vmatprep.mubr.msk.bf16.mxu1 %vm11351_vm1, %v11353_v2  ;;  %7197 = vmatprep.mubr.msk.bf16.mxu0 %vm11351_vm1, %v11353_v2  ;;  %v3511_v29 = vshrl.u32 %v8060_v4, 16 }
 0x157   : > { %v1234_v15 = vsel %vm1142_vm3, %v1229_v5, %v1233_v7  ;;  %v3478_v19 = vsel %vm1142_vm3, %v3473_v11, %v3477_v12  ;;  %v1237_v26 = vor.u32 %v1235_v17, %v1233_v7  ;;  %v3481_v30 = vor.u32 %v3479_v20, %v3477_v12  ;;  %v8061_v17 = vld [vmem:[%s8371_s16 + $0x80] sm:$0xff]   ;;  %v8062_v20 = vld [vmem:[%s8371_s16 + $0xd4] sm:$0xff]  }
 0x158   : > { %v1258_v5 = vsel %vm1142_vm3, %v1253_v60, %v1257_v61  ;;  %v1259_v7 = vshrl.u32 %v8057_v46, 16  ;;  %v3503_v12 = vshrl.u32 %v8058_v49, 16  ;;  %v1275_v43 = vshrl.u32 %v8061_v17, 16 }
 0x159   : > { %v3519_v46 = vshrl.u32 %v8062_v20, 16  ;;  %v3531_v60 = vshll.u32 %v8066_v54, 16 }
 0x15a   : > { %v1261_v14 = vor.u32 %v1259_v7, %v1257_v61 }
 0x15d   : > { %6890 = vmatmul.mubr.msk.bf16.gmra.mrb[28].mxu1 %vm484_vm2, %v1210_v22  ;;  %7198 = vmatmul.mubr.msk.bf16.gmra.mrb[56].mxu0 %vm484_vm2, %v3068_v28  ;;  %v3483_v22 = vshll.u32 %v8054_v13, 16  ;;  %v1241_v28 = vrot.slane %v1239_v18, 1  ;;  %v3507_v13 = vshll.u32 %v8060_v4, 16 }
 0x15e   : > { %6893 = vmatprep.mubr.msk.bf16.mxu1 %vm11351_vm1, %v11353_v2  ;;  %7201 = vmatprep.mubr.msk.bf16.mxu0 %vm11351_vm1, %v11353_v2 }
 0x15f   : > { %v3485_v31 = vrot.slane %v3483_v22, 1  ;;  %v1242_v34 = vsel %vm1142_vm3, %v1237_v26, %v1241_v28  ;;  %v1271_v26 = vshll.u32 %v8061_v17, 16 }
 0x161   : > { %v3489_v47 = vor.u32 %v3487_v40, %v3485_v31  ;;  %v1273_v33 = vrot.slane %v1271_v26, 1 }
 0x163   : > { %v3494_v55 = vsel %vm1142_vm3, %v3489_v47, %v3493_v48  ;;  %v1277_v48 = vor.u32 %v1275_v43, %v1273_v33  ;;  %v8073_v43 = vld [vmem:[%s8371_s16 + $0x158] sm:$0xff]  }
 0x165   : > { %6894 = vmatmul.mubr.msk.bf16.gmra.mrb[32].mxu1 %vm484_vm2, %v1218_v39  ;;  %7202 = vmatmul.mubr.msk.bf16.gmra.mrb[60].mxu0 %vm484_vm2, %v3076_v44  ;;  %v3486_v39 = vsel %vm1142_vm3, %v3481_v30, %v3485_v31  ;;  %v1245_v44 = vor.u32 %v1243_v35, %v1241_v28  ;;  %v3515_v30 = vshll.u32 %v8062_v20, 16  ;;  %v8069_v20 = vld [vmem:[%s8371_s16 + $0x148] sm:$0xff]  }
 0x166   : > { %6897 = vmatprep.mubr.msk.bf16.mxu1 %vm11351_vm1, %v11353_v2  ;;  %7205 = vmatprep.mubr.msk.bf16.mxu0 %vm11351_vm1, %v11353_v2 }
 0x167   : > { %v1250_v51 = vsel %vm1142_vm3, %v1245_v44, %v1249_v45  ;;  %v3517_v36 = vrot.slane %v3515_v30, 1  ;;  %v8074_v30 = vld [vmem:[%s8371_s16 + $0x104] sm:$0xff]  }
 0x16d   : > { %6898 = vmatmul.mubr.msk.bf16.gmra.mrb[36].mxu1 %vm484_vm2, %v1226_v59  ;;  %7206 = vmatmul.mubr.msk.bf16.gmra.mrb[64].mxu0 %vm484_vm2, %v3084_v62  ;;  %v3499_v59 = vshll.u32 %v8058_v49, 16  ;;  %v8059_v62 = vld [vmem:[%s8371_s16 + $0x78] sm:$0xff]  }
 0x16e   : > { %6901 = vmatprep.mubr.msk.bf16.mxu1 %vm11351_vm1, %v11353_v2  ;;  %7211 = vmatprep.mubr.msk.bf16.mxu0 %vm11351_vm1, %v11353_v2  ;;  %v1263_v8 = vshll.u32 %v8059_v62, 16 }
 0x16f   : > { %v3501_v1 = vrot.slane %v3499_v59, 1 }
 0x171   : > { %v3502_v11 = vsel %vm1142_vm3, %v3497_v63, %v3501_v1  ;;  %v3505_v18 = vor.u32 %v3503_v12, %v3501_v1  ;;  %v8068_v63 = vld [vmem:[%s8371_s16 + $0xec] sm:$0xff]   ;;  %v8065_v1 = vld [vmem:[%s8371_s16 + $0x138] sm:$0xff]  }
 0x172   : > { %v3539_v7 = vshll.u32 %v8068_v63, 16  ;;  %v8070_v12 = vld [vmem:[%s8371_s16 + $0xf4] sm:$0xff]  }
 0x173   : > { %v3547_v17 = vshll.u32 %v8070_v12, 16 }
 0x175   : > { %6902 = vmatmul.mubr.msk.bf16.gmra.mrb[40].mxu1 %vm484_vm2, %v1234_v15  ;;  %7212 = vmatmul.mubr.msk.bf16.vlgmr.msra.gmra.mrb[0].mxu0 %vm484_vm2, %v3478_v19  ;;  %v1265_v15 = vrot.slane %v1263_v8, 1  ;;  %v3509_v19 = vrot.slane %v3507_v13, 1  ;;  %v8067_v13 = vld [vmem:[%s8371_s16 + $0x140] sm:$0xff]  }
 0x176   : > { %6905 = vmatprep.mubr.msk.bf16.mxu1 %vm11351_vm1, %v11353_v2  ;;  %7280 = vmatpush3.bf16.msra.mxu0 %v3958_v25  ;;  %v1267_v25 = vshrl.u32 %v8059_v62, 16  ;;  %v3533_v62 = vrot.slane %v3531_v60, 1  ;;  %v8080_v60 = vld [vmem:[%s8371_s16 + $0x11c] sm:$0xff]  }
 0x177   : > { %7215 = vmatprep.mubr.msk.bf16.mxu0 %vm11351_vm1, %v11353_v2  ;;  %v1266_v22 = vsel %vm1142_vm3, %v1261_v14, %v1265_v15  ;;  %v3510_v28 = vsel %vm1142_vm3, %v3505_v18, %v3509_v19  ;;  %v3513_v35 = vor.u32 %v3511_v29, %v3509_v19  ;;  %v3549_v18 = vrot.slane %v3547_v17, 1  ;;  %v8072_v19 = vld [vmem:[%s8371_s16 + $0xfc] sm:$0xff]   ;;  %v8084_v17 = vld [vmem:[%s8371_s16 + $0x12c] ss:$0 sps:$4 sm:$0x11]  }
 0x178   : > { %v1269_v31 = vor.u32 %v1267_v25, %v1265_v15  ;;  %v3543_v15 = vshrl.u32 %v8068_v63, 16  ;;  %v3551_v25 = vshrl.u32 %v8070_v12, 16  ;;  %v3555_v26 = vshll.u32 %v8072_v19, 16 }
 0x179   : > { %v3518_v45 = vsel %vm1142_vm3, %v3513_v35, %v3517_v36  ;;  %v3563_v35 = vshll.u32 %v8074_v30, 16  ;;  %v3591_v12 = vshrl.u32 %v8080_v60, 16 }
 0x17a   : > { %v1274_v40 = vsel %vm1142_vm3, %v1269_v31, %v1273_v33  ;;  %v3557_v29 = vrot.slane %v3555_v26, 1  ;;  %v8071_v31 = vld [vmem:[%s8371_s16 + $0x150] sm:$0xff]   ;;  %v3864_v26 = vld [vmem:[%s8371_s16 + $0x8] sm:$0xe] }
 0x17d   : > { %6906 = vmatmul.mubr.msk.bf16.gmra.mrb[44].mxu1 %vm484_vm2, %v1242_v34  ;;  %7216 = vmatmul.mubr.msk.bf16.gmra.mrb[4].mxu0 %vm484_vm2, %v3486_v39  ;;  %v8063_v34 = vld [vmem:[%s8371_s16 + $0x88] ss:$0 sps:$4 sm:$0x11]   ;;  %v8064_v39 = vld [vmem:[%s8371_s16 + $0xdc] sm:$0xff]  }
 0x17e   : > { %6909 = vmatprep.mubr.msk.bf16.mxu1 %vm11351_vm1, %v11353_v2  ;;  %7219 = vmatprep.mubr.msk.bf16.mxu0 %vm11351_vm1, %v11353_v2  ;;  %v1279_v44 = vshll.u32 %v8063_v34, 16  ;;  %v3523_v47 = vshll.u32 %v8064_v39, 16  ;;  %v3527_v59 = vshrl.u32 %v8064_v39, 16  ;;  %v3559_v34 = vshrl.u32 %v8072_v19, 16 }
 0x17f   : > { %v3565_v39 = vrot.slane %v3563_v35, 1 }
 0x180   : > { %v1281_v49 = vrot.slane %v1279_v44, 1  ;;  %v3525_v52 = vrot.slane %v3523_v47, 1 }
 0x182   : > { %v3529_v61 = vor.u32 %v3527_v59, %v3525_v52 }
 0x184   : > { %v3534_v4 = vsel %vm1142_vm3, %v3529_v61, %v3533_v62  ;;  %v8077_v61 = vld [vmem:[%s8371_s16 + $0x168] sm:$0xff]  }
 0x185   : > { %6910 = vmatmul.mubr.msk.bf16.gmra.mrb[48].mxu1 %vm484_vm2, %v1250_v51  ;;  %7220 = vmatmul.mubr.msk.bf16.gmra.mrb[8].mxu0 %vm484_vm2, %v3494_v55  ;;  %v3521_v51 = vor.u32 %v3519_v46, %v3517_v36  ;;  %v1282_v55 = vsel %vm1142_vm3, %v1277_v48, %v1281_v49  ;;  %v3561_v36 = vor.u32 %v3559_v34, %v3557_v29  ;;  %v8078_v49 = vld [vmem:[%s8371_s16 + $0x114] sm:$0xff]   ;;  %v8085_v34 = vld [vmem:[%s8371_s16 + $0x188] sm:$0xff]  }
 0x186   : > { %6913 = vmatprep.mubr.msk.bf16.mxu1 %vm11351_vm1, %v11353_v2  ;;  %7223 = vmatprep.mubr.msk.bf16.mxu0 %vm11351_vm1, %v11353_v2  ;;  %v3583_v63 = vshrl.u32 %v8078_v49, 16 }
 0x187   : > { %v3526_v56 = vsel %vm1142_vm3, %v3521_v51, %v3525_v52  ;;  %v3566_v44 = vsel %vm1142_vm3, %v3561_v36, %v3565_v39  ;;  %v8075_v51 = vld [vmem:[%s8371_s16 + $0x160] sm:$0xff]   ;;  %v8087_v36 = vld [vmem:[%s8371_s16 + $0x190] sm:$0xff]  }
 0x18d   : > { %6914 = vmatmul.mubr.msk.bf16.gmra.mrb[52].mxu1 %vm484_vm2, %v1258_v5  ;;  %7224 = vmatmul.mubr.msk.bf16.gmra.mrb[12].mxu0 %vm484_vm2, %v3502_v11  ;;  %v3535_v5 = vshrl.u32 %v8066_v54, 16  ;;  %v3541_v11 = vrot.slane %v3539_v7, 1  ;;  %v8082_v7 = vld [vmem:[%s8371_s16 + $0x124] sm:$0xff]  }
 0x18e   : > { %6917 = vmatprep.mubr.msk.bf16.mxu1 %vm11351_vm1, %v11353_v2  ;;  %7227 = vmatprep.mubr.msk.bf16.mxu0 %vm11351_vm1, %v11353_v2  ;;  %v3599_v19 = vshrl.u32 %v8082_v7, 16 }
 0x18f   : > { %v3537_v8 = vor.u32 %v3535_v5, %v3533_v62 }
 0x191   : > { %v3542_v14 = vsel %vm1142_vm3, %v3537_v8, %v3541_v11  ;;  %v8079_v8 = vld [vmem:[%s8371_s16 + $0x170] sm:$0xff]  }
 0x195   : > { %6918 = vmatmul.mubr.msk.bf16.gmra.mrb[56].mxu1 %vm484_vm2, %v1266_v22  ;;  %7228 = vmatmul.mubr.msk.bf16.gmra.mrb[16].mxu0 %vm484_vm2, %v3510_v28  ;;  %v3553_v28 = vor.u32 %v3551_v25, %v3549_v18 }
 0x196   : > { %6921 = vmatprep.mubr.msk.bf16.mxu1 %vm11351_vm1, %v11353_v2  ;;  %7231 = vmatprep.mubr.msk.bf16.mxu0 %vm11351_vm1, %v11353_v2 }
 0x197   : > { %v3558_v33 = vsel %vm1142_vm3, %v3553_v28, %v3557_v29  ;;  %v8083_v28 = vld [vmem:[%s8371_s16 + $0x180] sm:$0xff]  }
 0x19d   : > { %6922 = vmatmul.mubr.msk.bf16.gmra.mrb[60].mxu1 %vm484_vm2, %v1274_v40  ;;  %7232 = vmatmul.mubr.msk.bf16.gmra.mrb[20].mxu0 %vm484_vm2, %v3518_v45  ;;  %v8076_v40 = vld [vmem:[%s8371_s16 + $0x10c] sm:$0xff]   ;;  %v3567_v45 = vshrl.u32 %v8074_v30, 16  ;;  %v6473_v30 = vcombine.low %v3864_v26, %v8610_v24  ;;  %v3874_v24 = vrot.slane %v8634_v41, 1  ;;  %v3878_v41 = vrot.slane %v8665_v57, 1 }
 0x19e   : > { %6925 = vmatprep.mubr.msk.bf16.mxu1 %vm11351_vm1, %v11353_v2  ;;  %7235 = vmatprep.mubr.msk.bf16.mxu0 %vm11351_vm1, %v11353_v2  ;;  %v3571_v46 = vshll.u32 %v8076_v40, 16  ;;  %v3575_v54 = vshrl.u32 %v8076_v40, 16  ;;  %v8088_v40 = vld [vmem:[%s8371_s16 + $0x198] sm:$0xff]   ;;  %v3882_v57 = vrot.slane %v8691_v9, 1  ;;  %v3886_v9 = vrot.slane %v8719_v27, 1 }
 0x19f   : > { %v3569_v47 = vor.u32 %v3567_v45, %v3565_v39  ;;  %v3876_v39 = vrot.slane %v8651_v50, 1  ;;  %v3880_v50 = vrot.slane %v8678_v0, 1  ;;  %v3884_v0 = vrot.slane %v8704_v16, 1 }
 0x1a0   : > { %v3573_v48 = vrot.slane %v3571_v46, 1  ;;  %v8090_v46 = vld [vmem:[%s8371_s16 + $0x1a8] sm:$0xff]   ;;  %v3888_v16 = vrot.slane %v8733_v42, 1  ;;  %v3890_v27 = vrot.slane %v8751_v58, 1  ;;  %v3892_v42 = vrot.slane %v8766_v10, 1 }
 0x1a1   : > { %v3879_v45 = vsel %vm3870_vm4, %v3876_v39, %v3878_v41  ;;  %v3894_v58 = vrot.slane %v8780_v23, 1  ;;  %v3896_v10 = vrot.slane %v8794_v38, 1  ;;  %v3898_v23 = vrot.slane %v8808_v53, 1 }
 0x1a2   : > { %v3574_v52 = vsel %vm1142_vm3, %v3569_v47, %v3573_v48  ;;  %v3881_v47 = vsel %vm3870_vm4, %v3878_v41, %v3880_v50  ;;  %v3900_v38 = vrot.slane %v8822_v6, 1  ;;  %v3902_v53 = vrot.slane %v8836_v21, 1 }
 0x1a3   : > { %v4449_v21 = vlaneseq }
 0x1a5   : > { %6926 = vmatmul.mubr.msk.bf16.gmra.mrb[64].mxu1 %vm484_vm2, %v1282_v55  ;;  %7236 = vmatmul.mubr.msk.bf16.gmra.mrb[24].mxu0 %vm484_vm2, %v3526_v56  ;;  %v3579_v55 = vshll.u32 %v8078_v49, 16  ;;  %v3577_v56 = vor.u32 %v3575_v54, %v3573_v48  ;;  %v8091_v48 = vld [vmem:[%s8371_s16 + $0x1b0] sm:$0xff]   ;;  %v3883_v49 = vsel %vm3870_vm4, %v3880_v50, %v3882_v57  ;;  %v8093_v54 = vld [vmem:[%s8371_s16 + $0x224] sm:$0xff]  }
 0x1a6   : > { %6931 = vmatprep.mubr.msk.bf16.mxu1 %vm11351_vm1, %v11353_v2  ;;  %7239 = vmatprep.mubr.msk.bf16.mxu0 %vm11351_vm1, %v11353_v2 }
 0x1a7   : > { %v3581_v59 = vrot.slane %v3579_v55, 1  ;;  %v3887_v55 = vsel %vm3870_vm4, %v3884_v0, %v3886_v9 }
 0x1a9   : > { %v3582_v62 = vsel %vm1142_vm3, %v3577_v56, %v3581_v59  ;;  %v8094_v56 = vld [vmem:[%s8371_s16 + $0x22c] sm:$0xff]  }
 0x1ad   : > { %6932 = vmatmul.mubr.msk.bf16.vlgmr.msra.gmra.mrb[0].mxu1 %vm484_vm2, %v8065_v1  ;;  %7240 = vmatmul.mubr.msk.bf16.gmra.mrb[28].mxu0 %vm484_vm2, %v3534_v4  ;;  %v3587_v1 = vshll.u32 %v8080_v60, 16  ;;  %v3585_v4 = vor.u32 %v3583_v63, %v3581_v59  ;;  %v3889_v59 = vsel %vm3870_vm4, %v3886_v9, %v3888_v16  ;;  %v8095_v60 = vld [vmem:[%s8371_s16 + $0x234] sm:$0xff]   ;;  %v3893_v63 = vsel %vm3870_vm4, %v3890_v27, %v3892_v42 }
 0x1ae   : > { %6935 = vmatprep.mubr.msk.bf16.mxu1 %vm11351_vm1, %v11353_v2  ;;  %7243 = vmatprep.mubr.msk.bf16.mxu0 %vm11351_vm1, %v11353_v2 }
 0x1af   : > { %7368 = vmatpush3.bf16.msra.mxu1 %v8352_v3  ;;  %v3545_v3 = vor.u32 %v3543_v15, %v3541_v11  ;;  %v3589_v5 = vrot.slane %v3587_v1, 1  ;;  %v8097_v1 = vld [vmem:[%s8371_s16 + $0x244] sm:$0xff]  }
 0x1b0   : > { %7349 = vmatprep.subr.bf16.mxu1 %v11353_v2 }
 0x1b1   : > { %v3550_v22 = vsel %vm1142_vm3, %v3545_v3, %v3549_v18  ;;  %v3590_v11 = vsel %vm1142_vm3, %v3585_v4, %v3589_v5  ;;  %v8081_v3 = vld [vmem:[%s8371_s16 + $0x178] sm:$0xff]   ;;  %v3895_v4 = vsel %vm3870_vm4, %v3892_v42, %v3894_v58 }
 0x1b5   : > { %6936 = vmatmul.mubr.msk.bf16.gmra.mrb[4].mxu1 %vm484_vm2, %v8067_v13  ;;  %7244 = vmatmul.mubr.msk.bf16.gmra.mrb[32].mxu0 %vm484_vm2, %v3542_v14  ;;  %v3595_v13 = vshll.u32 %v8082_v7, 16  ;;  %v3593_v14 = vor.u32 %v3591_v12, %v3589_v5  ;;  %v8098_v5 = vld [vmem:[%s8371_s16 + $0x24c] sm:$0xff]   ;;  %v3897_v7 = vsel %vm3870_vm4, %v3894_v58, %v3896_v10  ;;  %v3901_v12 = vsel %vm3870_vm4, %v3898_v23, %v3900_v38 }
 0x1b6   : > { %6939 = vmatprep.mubr.msk.bf16.mxu1 %vm11351_vm1, %v11353_v2  ;;  %7247 = vmatprep.mubr.msk.bf16.mxu0 %vm11351_vm1, %v11353_v2 }
 0x1b7   : > { %v3597_v15 = vrot.slane %v3595_v13, 1  ;;  %v3903_v13 = vsel %vm3870_vm4, %v3900_v38, %v3902_v53 }
 0x1b9   : > { %v3598_v18 = vsel %vm1142_vm3, %v3593_v14, %v3597_v15  ;;  %v3904_v14 = vrot.slane %v8850_v37, 1 }
 0x1bb   : > { %v3905_v6 = vsel %vm3870_vm4, %v3902_v53, %v3904_v14 }
 0x1bd   : > { %6940 = vmatmul.mubr.msk.bf16.gmra.mrb[8].mxu1 %vm484_vm2, %v8069_v20  ;;  %7248 = vmatmul.mubr.msk.bf16.gmra.mrb[36].mxu0 %vm484_vm2, %v3550_v22  ;;  %v3603_v20 = vshll.u32 %v8084_v17, 16  ;;  %v3601_v22 = vor.u32 %v3599_v19, %v3597_v15 }
 0x1be   : > { %6943 = vmatprep.mubr.msk.bf16.mxu1 %vm11351_vm1, %v11353_v2  ;;  %7251 = vmatprep.mubr.msk.bf16.mxu0 %vm11351_vm1, %v11353_v2 }
 0x1bf   : > { %v3605_v25 = vrot.slane %v3603_v20, 1 }
 0x1c1   : > { %v3606_v29 = vsel %vm1142_vm3, %v3601_v22, %v3605_v25  ;;  %v9184_v22 = vshrl.u32 %v4449_v21, 7 }
 0x1c3   : > { %v4451_v37 = vadd.s32 8, %v9184_v22 }
 0x1c5   : > { %6944 = vmatmul.mubr.msk.bf16.gmra.mrb[12].mxu1 %vm484_vm2, %v8071_v31  ;;  %7252 = vmatmul.mubr.msk.bf16.gmra.mrb[40].mxu0 %vm484_vm2, %v3558_v33  ;;  %v3871_v31 = vrot.slane %v6473_v30, 1  ;;  %v3872_v33 = vrot.slane %v8622_v32, 1 }
 0x1c6   : > { %6947 = vmatprep.mubr.msk.bf16.mxu1 %vm11351_vm1, %v11353_v2  ;;  %7255 = vmatprep.mubr.msk.bf16.mxu0 %vm11351_vm1, %v11353_v2 }
 0x1c7   : > { %v3873_v35 = vsel %vm3870_vm4, %v3871_v31, %v3872_v33  ;;  %v3875_v32 = vsel %vm3870_vm4, %v3872_v33, %v3874_v24 }
 0x1cd   : > { %6948 = vmatmul.mubr.msk.bf16.gmra.mrb[16].mxu1 %vm484_vm2, %v8073_v43  ;;  %7256 = vmatmul.mubr.msk.bf16.gmra.mrb[44].mxu0 %vm484_vm2, %v3566_v44  ;;  %v3877_v43 = vsel %vm3870_vm4, %v3874_v24, %v3876_v39  ;;  %v8089_v44 = vld [vmem:[%s8371_s16 + $0x1a0] sm:$0xff]  }
 0x1ce   : > { %6951 = vmatprep.mubr.msk.bf16.mxu1 %vm11351_vm1, %v11353_v2  ;;  %7259 = vmatprep.mubr.msk.bf16.mxu0 %vm11351_vm1, %v11353_v2 }
 0x1d5   : > { %6952 = vmatmul.mubr.msk.bf16.gmra.mrb[20].mxu1 %vm484_vm2, %v8075_v51  ;;  %7260 = vmatmul.mubr.msk.bf16.gmra.mrb[48].mxu0 %vm484_vm2, %v3574_v52  ;;  %v8092_v51 = vld [vmem:[%s8371_s16 + $0x1b8] sm:$0xff]   ;;  %v3885_v52 = vsel %vm3870_vm4, %v3882_v57, %v3884_v0  ;;  %v9212_v57 = vadd.s32 32, %v9184_v22  ;;  %v9218_v0 = vadd.s32 40, %v9184_v22 }
 0x1d6   : > { %6955 = vmatprep.mubr.msk.bf16.mxu1 %vm11351_vm1, %v11353_v2  ;;  %7263 = vmatprep.mubr.msk.bf16.mxu0 %vm11351_vm1, %v11353_v2 }
 0x1dd   : > { %6956 = vmatmul.mubr.msk.bf16.gmra.mrb[24].mxu1 %vm484_vm2, %v8077_v61  ;;  %7264 = vmatmul.mubr.msk.bf16.gmra.mrb[52].mxu0 %vm484_vm2, %v3582_v62  ;;  %v3891_v61 = vsel %vm3870_vm4, %v3888_v16, %v3890_v27  ;;  %v8096_v62 = vld [vmem:[%s8371_s16 + $0x23c] sm:$0xff]   ;;  %v9237_v27 = vadd.s32 56, %v9184_v22 }
 0x1de   : > { %6959 = vmatprep.mubr.msk.bf16.mxu1 %vm11351_vm1, %v11353_v2  ;;  %7267 = vmatprep.mubr.msk.bf16.mxu0 %vm11351_vm1, %v11353_v2 }
 0x1e5   : > { %6960 = vmatmul.mubr.msk.bf16.gmra.mrb[28].mxu1 %vm484_vm2, %v8079_v8  ;;  %7268 = vmatmul.mubr.msk.bf16.gmra.mrb[56].mxu0 %vm484_vm2, %v3590_v11  ;;  %v8099_v8 = vld [vmem:[%s8371_s16 + $0x254] sm:$0xff]   ;;  %v3899_v11 = vsel %vm3870_vm4, %v3896_v10, %v3898_v23 }
 0x1e6   : > { %6963 = vmatprep.mubr.msk.bf16.mxu1 %vm11351_vm1, %v11353_v2  ;;  %7271 = vmatprep.mubr.msk.bf16.mxu0 %vm11351_vm1, %v11353_v2 }
 0x1ed   : > { %6964 = vmatmul.mubr.msk.bf16.gmra.mrb[32].mxu1 %vm484_vm2, %v8081_v3  ;;  %7272 = vmatmul.mubr.msk.bf16.gmra.mrb[60].mxu0 %vm484_vm2, %v3598_v18 }
 0x1ee   : > { %6967 = vmatprep.mubr.msk.bf16.mxu1 %vm11351_vm1, %v11353_v2  ;;  %7275 = vmatprep.mubr.msk.bf16.mxu0 %vm11351_vm1, %v11353_v2 }
 0x1f5   : > { %6968 = vmatmul.mubr.msk.bf16.gmra.mrb[36].mxu1 %vm484_vm2, %v8083_v28  ;;  %7276 = vmatmul.mubr.msk.bf16.gmra.mrb[64].mxu0 %vm484_vm2, %v3606_v29  ;;  %v9190_v28 = vmul.u32.u64.low 4042322161, %v9184_v22  ;;  %v9191_v29 = vmul.u32.u64.high 4042322161, %v9184_v22, %v9190_v28 }
 0x1f6   : > { %6971 = vmatprep.mubr.msk.bf16.mxu1 %vm11351_vm1, %v11353_v2  ;;  %7281 = vmatprep.mubr.msk.bf16.mxu0 %vm11351_vm1, %v11353_v2 }
 0x1fd   : > { %6972 = vmatmul.mubr.msk.bf16.gmra.mrb[40].mxu1 %vm484_vm2, %v8085_v34  ;;  %7282 = vmatmul.mubr.msk.bf16.vlgmr.msra.gmra.mrb[0].mxu0 %vm484_vm2, %v3873_v35  ;;  %v9195_v33 = vmul.u32.u64.low 4042322161, %v4451_v37  ;;  %v9196_v34 = vmul.u32.u64.high 4042322161, %v4451_v37, %v9195_v33 }
 0x1fe   : > { %6975 = vmatprep.mubr.msk.bf16.mxu1 %vm11351_vm1, %v11353_v2  ;;  %7285 = vmatprep.mubr.msk.bf16.mxu0 %vm11351_vm1, %v11353_v2 }
 0x1ff   : > { %v4501_v41 = vshrl.u32 %v9196_v34, 4 }
 0x205   : > { %6976 = vmatmul.mubr.msk.bf16.gmra.mrb[44].mxu1 %vm484_vm2, %v8087_v36  ;;  %7286 = vmatmul.mubr.msk.bf16.gmra.mrb[4].mxu0 %vm484_vm2, %v3875_v32  ;;  %v4452_v36 = vadd.s32 16, %v9184_v22  ;;  %v4490_v32 = vshrl.u32 %v9191_v29, 4 }
 0x206   : > { %6979 = vmatprep.mubr.msk.bf16.mxu1 %vm11351_vm1, %v11353_v2  ;;  %7289 = vmatprep.mubr.msk.bf16.mxu0 %vm11351_vm1, %v11353_v2 }
 0x20d   : > { %6980 = vmatmul.mubr.msk.bf16.gmra.mrb[48].mxu1 %vm484_vm2, %v8088_v40  ;;  %7290 = vmatmul.mubr.msk.bf16.gmra.mrb[8].mxu0 %vm484_vm2, %v3877_v43  ;;  %v4453_v40 = vadd.s32 24, %v9184_v22 }
 0x20e   : > { %6983 = vmatprep.mubr.msk.bf16.mxu1 %vm11351_vm1, %v11353_v2  ;;  %7293 = vmatprep.mubr.msk.bf16.mxu0 %vm11351_vm1, %v11353_v2 }
 0x215   : > { %6984 = vmatmul.mubr.msk.bf16.gmra.mrb[52].mxu1 %vm484_vm2, %v8089_v44  ;;  %7294 = vmatmul.mubr.msk.bf16.gmra.mrb[12].mxu0 %vm484_vm2, %v3879_v45  ;;  %v9208_v45 = vmul.u32.u64.low 4042322161, %v4452_v36  ;;  %v9209_v50 = vmul.u32.u64.high 4042322161, %v4452_v36, %v9208_v45 }
 0x216   : > { %6987 = vmatprep.mubr.msk.bf16.mxu1 %vm11351_vm1, %v11353_v2  ;;  %7297 = vmatprep.mubr.msk.bf16.mxu0 %vm11351_vm1, %v11353_v2 }
 0x217   : > { %v4512_v58 = vshrl.u32 %v9209_v50, 4 }
 0x21d   : > { %6988 = vmatmul.mubr.msk.bf16.gmra.mrb[56].mxu1 %vm484_vm2, %v8090_v46  ;;  %7298 = vmatmul.mubr.msk.bf16.gmra.mrb[16].mxu0 %vm484_vm2, %v3881_v47  ;;  %v4491_v47 = vmul.u32 17, %v4490_v32 }
 0x21e   : > { %6991 = vmatprep.mubr.msk.bf16.mxu1 %vm11351_vm1, %v11353_v2  ;;  %7301 = vmatprep.mubr.msk.bf16.mxu0 %vm11351_vm1, %v11353_v2 }
 0x21f   : > { %v9224_v9 = vsub.s32 %v9184_v22, %v4491_v47 }
 0x221   : > { %vm4858_vm5 = vcmp.ne.s32.totalorder %v9224_v9, 0  ;;  %vm4892_vm6 = vcmp.lt.s32.totalorder %v9224_v9, 0  ;;  %v9261_v23 = vadd.s32 17, %v9224_v9 }
 0x222   : > { %vm9267_vm9 = vmand %vm4892_vm6, %vm4858_vm5 }
 0x225   : > { %6992 = vmatmul.mubr.msk.bf16.gmra.mrb[60].mxu1 %vm484_vm2, %v8091_v48  ;;  %7302 = vmatmul.mubr.msk.bf16.gmra.mrb[20].mxu0 %vm484_vm2, %v3883_v49  ;;  %v9214_v48 = vmul.u32.u64.low 4042322161, %v4453_v40  ;;  %v9215_v49 = vmul.u32.u64.high 4042322161, %v4453_v40, %v9214_v48 }
 0x226   : > { %6995 = vmatprep.mubr.msk.bf16.mxu1 %vm11351_vm1, %v11353_v2  ;;  %7305 = vmatprep.mubr.msk.bf16.mxu0 %vm11351_vm1, %v11353_v2 }
 0x227   : > { %v4523_v10 = vshrl.u32 %v9215_v49, 4  ;;  %v9316_v49 = vadd.s32 96, %v9184_v22 }
 0x22d   : > { %6996 = vmatmul.mubr.msk.bf16.gmra.mrb[64].mxu1 %vm484_vm2, %v8092_v51  ;;  %7306 = vmatmul.mubr.msk.bf16.gmra.mrb[24].mxu0 %vm484_vm2, %v3885_v52  ;;  %v4502_v51 = vmul.u32 17, %v4501_v41  ;;  %v9221_v52 = vadd.s32 48, %v9184_v22 }
 0x22e   : > { %7041 = vmatprep.mubr.msk.bf16.mxu1 %vm11351_vm1, %v11353_v2  ;;  %7309 = vmatprep.mubr.msk.bf16.mxu0 %vm11351_vm1, %v11353_v2 }
 0x235   : > { %7042 = vmatmul.mubr.msk.bf16.vlgmr.msra.gmra.mrb[40].mxu1 %vm484_vm2, %v8093_v54  ;;  %7310 = vmatmul.mubr.msk.bf16.gmra.mrb[28].mxu0 %vm484_vm2, %v3887_v55  ;;  %v9227_v54 = vmul.u32.u64.low 4042322161, %v9212_v57  ;;  %v9228_v55 = vmul.u32.u64.high 4042322161, %v9212_v57, %v9227_v54 }
 0x236   : > { %7045 = vmatprep.mubr.msk.bf16.mxu1 %vm11351_vm1, %v11353_v2  ;;  %7313 = vmatprep.mubr.msk.bf16.mxu0 %vm11351_vm1, %v11353_v2 }
 0x23d   : > { %7046 = vmatmul.mubr.msk.bf16.gmra.mrb[44].mxu1 %vm484_vm2, %v8094_v56  ;;  %7314 = vmatmul.mubr.msk.bf16.gmra.mrb[32].mxu0 %vm484_vm2, %v3889_v59  ;;  %v9233_v56 = vmul.u32.u64.low 4042322161, %v9218_v0  ;;  %v9234_v59 = vmul.u32.u64.high 4042322161, %v9218_v0, %v9233_v56 }
 0x23e   : > { %7049 = vmatprep.mubr.msk.bf16.mxu1 %vm11351_vm1, %v11353_v2  ;;  %7317 = vmatprep.mubr.msk.bf16.mxu0 %vm11351_vm1, %v11353_v2 }
 0x23f   : > { %v4545_v21 = vshrl.u32 %v9234_v59, 4  ;;  %v9332_v59 = vadd.s32 112, %v9184_v22 }
 0x241   : > { %v4546_v50 = vmul.u32 17, %v4545_v21 }
 0x245   : > { %7050 = vmatmul.mubr.msk.bf16.gmra.mrb[48].mxu1 %vm484_vm2, %v8095_v60  ;;  %7318 = vmatmul.mubr.msk.bf16.gmra.mrb[36].mxu0 %vm484_vm2, %v3891_v61  ;;  %v9239_v61 = vsub.s32 %v4451_v37, %v4502_v51  ;;  %v9287_v37 = vadd.s32 80, %v9184_v22 }
 0x246   : > { %7053 = vmatprep.mubr.msk.bf16.mxu1 %vm11351_vm1, %v11353_v2  ;;  %7321 = vmatprep.mubr.msk.bf16.mxu0 %vm11351_vm1, %v11353_v2 }
 0x247   : > { %vm4859_vm7 = vcmp.ne.s32.totalorder %v9239_v61, 0  ;;  %vm4893_vm8 = vcmp.lt.s32.totalorder %v9239_v61, 0  ;;  %v9272_v53 = vadd.s32 17, %v9239_v61 }
 0x248   : > { %vm9279_vm10 = vmand %vm4893_vm8, %vm4859_vm7  ;;  %v9312_v47 = vmul.u32.u64.low 4042322161, %v9287_v37  ;;  %v9313_v48 = vmul.u32.u64.high 4042322161, %v9287_v37, %v9312_v47 }
 0x24d   : > { %7054 = vmatmul.mubr.msk.bf16.gmra.mrb[52].mxu1 %vm484_vm2, %v8096_v62  ;;  %7322 = vmatmul.mubr.msk.bf16.gmra.mrb[40].mxu0 %vm484_vm2, %v3893_v63  ;;  %v9242_v42 = vmul.u32.u64.low 4042322161, %v9221_v52  ;;  %v9243_v62 = vmul.u32.u64.high 4042322161, %v9221_v52, %v9242_v42 }
 0x24e   : > { %7057 = vmatprep.mubr.msk.bf16.mxu1 %vm11351_vm1, %v11353_v2  ;;  %7325 = vmatprep.mubr.msk.bf16.mxu0 %vm11351_vm1, %v11353_v2 }
 0x255   : > { %7058 = vmatmul.mubr.msk.bf16.gmra.mrb[56].mxu1 %vm484_vm2, %v8097_v1  ;;  %7326 = vmatmul.mubr.msk.bf16.gmra.mrb[44].mxu0 %vm484_vm2, %v3895_v4  ;;  %v9249_v1 = vadd.s32 64, %v9184_v22 }
 0x256   : > { %7061 = vmatprep.mubr.msk.bf16.mxu1 %vm11351_vm1, %v11353_v2  ;;  %7329 = vmatprep.mubr.msk.bf16.mxu0 %vm11351_vm1, %v11353_v2 }
 0x25d   : > { %7062 = vmatmul.mubr.msk.bf16.gmra.mrb[60].mxu1 %vm484_vm2, %v8098_v5  ;;  %7330 = vmatmul.mubr.msk.bf16.gmra.mrb[48].mxu0 %vm484_vm2, %v3897_v7  ;;  %v9255_v5 = vmul.u32.u64.low 4042322161, %v9237_v27  ;;  %v9256_v7 = vmul.u32.u64.high 4042322161, %v9237_v27, %v9255_v5 }
 0x25e   : > { %7065 = vmatprep.mubr.msk.bf16.mxu1 %vm11351_vm1, %v11353_v2  ;;  %7333 = vmatprep.mubr.msk.bf16.mxu0 %vm11351_vm1, %v11353_v2 }
 0x265   : > { %7066 = vmatmul.mubr.msk.bf16.gmra.mrb[64].mxu1 %vm484_vm2, %v8099_v8  ;;  %7334 = vmatmul.mubr.msk.bf16.gmra.mrb[52].mxu0 %vm484_vm2, %v3899_v11  ;;  %v4513_v8 = vmul.u32 17, %v4512_v58  ;;  %v9264_v11 = vmul.u32.u64.low 4042322161, %v9249_v1  ;;  %v9265_v38 = vmul.u32.u64.high 4042322161, %v9249_v1, %v9264_v11 }
 0x266   : > { %7351 = vmatprep.mubr.msk.bf16.mxu1 %vm11351_vm1, %v11353_v2  ;;  %7337 = vmatprep.mubr.msk.bf16.mxu0 %vm11351_vm1, %v11353_v2 }
 0x267   : > { %v4578_v51 = vshrl.u32 %v9265_v38, 4 }
 0x269   : > { %v4579_v11 = vmul.u32 17, %v4578_v51 }
 0x26d   : > { %7338 = vmatmul.mubr.msk.bf16.gmra.mrb[56].mxu0 %vm484_vm2, %v3901_v12 }
 0x26e   : > { %7341 = vmatprep.mubr.msk.bf16.mxu0 %vm11351_vm1, %v11353_v2 }
 0x275   : > { %7342 = vmatmul.mubr.msk.bf16.gmra.mrb[60].mxu0 %vm484_vm2, %v3903_v13  ;;  %v9275_v13 = vadd.s32 72, %v9184_v22 }
 0x276   : > { %7345 = vmatprep.mubr.msk.bf16.mxu0 %vm11351_vm1, %v11353_v2 }
 0x27d   : > { %7346 = vmatmul.mubr.msk.bf16.gmra.mrb[64].mxu0 %vm484_vm2, %v3905_v6 }
 0x280   : > { %v9178_v15 = vpop.f32.mrb[0].mxu1 }
 0x281   : > { %v6933_v17 = vpop.f32.mrb[1].mxu1 }
 0x282   : > { %v9180_v3 = vpop.f32.mrb[2].mxu1  ;;  %v4524_v17 = vmul.u32 17, %v4523_v10 }
 0x283   : > { %v6934_v18 = vpop.f32.mrb[3].mxu1 }
 0x284   : > { %v4534_v18 = vshrl.u32 %v9228_v55, 4  ;;  %v9308_v41 = vsub.s32 %v4453_v40, %v4524_v17  ;;  %v9322_v40 = vadd.s32 104, %v9184_v22 }
 0x286   : > { %v4535_v45 = vmul.u32 17, %v4534_v18  ;;  %vm4861_vm13 = vcmp.ne.s32.totalorder %v9308_v41, 0  ;;  %vm4895_vm14 = vcmp.lt.s32.totalorder %v9308_v41, 0 }
 0x287   : > { %v9354_v38 = vmul.u32.u64.low 4042322161, %v9322_v40  ;;  %v9355_v17 = vmul.u32.u64.high 4042322161, %v9322_v40, %v9354_v38  ;;  %vm9417_vm1 = vmand %vm4895_vm14, %vm4861_vm13 }
 0x288   : > { %v9182_v19 = vpop.f32.mrb[4].mxu1  ;;  %v9339_v42 = vsub.s32 %v9212_v57, %v4535_v45  ;;  %v9358_v57 = vadd.s32 120, %v9184_v22  ;;  %v9384_v45 = vsub.s32 %v9249_v1, %v4579_v11  ;;  %v9426_v38 = vadd.s32 144, %v9184_v22 }
 0x289   : > { %v6937_v20 = vpop.f32.mrb[5].mxu1 }
 0x28a   : > { %v9186_v25 = vpop.f32.mrb[6].mxu1  ;;  %vm4862_vm15 = vcmp.ne.s32.totalorder %v9339_v42, 0  ;;  %vm4896_vm0 = vcmp.lt.s32.totalorder %v9339_v42, 0  ;;  %11473 = vst [vmem:[#allocation10_spill] sm:$0xff] %v9384_v45  ;;  %vm4900_vm13 = vcmp.lt.s32.totalorder %v9384_v45, 0 }
 0x28b   : > { %v6938_v26 = vpop.f32.mrb[7].mxu1 }
 0x28c   : > { %v4556_v26 = vshrl.u32 %v9243_v62, 4 }
 0x290   : > { %v9193_v30 = vpop.f32.mrb[8].mxu1 }
 0x291   : > { %v6941_v31 = vpop.f32.mrb[9].mxu1 }
 0x292   : > { %v9198_v35 = vpop.f32.mrb[10].mxu1  ;;  %v9295_v31 = vsub.s32 %v4452_v36, %v4513_v8  ;;  %v4567_v36 = vshrl.u32 %v9256_v7, 4  ;;  %v9348_v5 = vmul.u32.u64.low 4042322161, %v9316_v49  ;;  %v9349_v7 = vmul.u32.u64.high 4042322161, %v9316_v49, %v9348_v5 }
 0x293   : > { %v6942_v24 = vpop.f32.mrb[11].mxu1 }
 0x294   : > { %v9302_v24 = vmul.u32.u64.low 4042322161, %v9275_v13  ;;  %v9303_v32 = vmul.u32.u64.high 4042322161, %v9275_v13, %v9302_v24  ;;  %vm4860_vm11 = vcmp.ne.s32.totalorder %v9295_v31, 0  ;;  %vm4894_vm12 = vcmp.lt.s32.totalorder %v9295_v31, 0 }
 0x295   : > { %v9325_v54 = vadd.s32 17, %v9295_v31  ;;  %v4568_v62 = vmul.u32 17, %v4567_v36  ;;  %vm9401_vm6 = vmand %vm4894_vm12, %vm4860_vm11  ;;  %v4622_v11 = vshrl.u32 %v9349_v7, 4  ;;  %vm4866_vm12 = vcmp.ne.s32.totalorder %v9384_v45, 0 }
 0x296   : > { %vm9434_vm11 = vmand %vm4896_vm0, %vm4862_vm15  ;;  %v9442_v7 = vadd.s32 152, %v9184_v22 }
 0x298   : > { %v9202_v39 = vpop.f32.mrb[12].mxu1 }
 0x299   : > { %v6945_v43 = vpop.f32.mrb[13].mxu1 }
 0x29a   : > { %v9206_v44 = vpop.f32.mrb[14].mxu1  ;;  %v9306_v43 = vadd.s32 88, %v9184_v22 }
 0x29b   : > { %v6946_v46 = vpop.f32.mrb[15].mxu1 }
 0x29c   : > { %v4557_v46 = vmul.u32 17, %v4556_v26  ;;  %v9328_v55 = vmul.u32.u64.low 4042322161, %v9306_v43  ;;  %v9329_v56 = vmul.u32.u64.high 4042322161, %v9306_v43, %v9328_v55  ;;  %v9371_v26 = vadd.s32 17, %v9339_v42 }
 0x29d   : > { %v9411_v55 = vadd.s32 136, %v9184_v22 }
 0x29e   : > { %v9345_v10 = vsub.s32 %v9221_v52, %v4557_v46  ;;  %v4589_v52 = vshrl.u32 %v9303_v32, 4  ;;  %v4600_v32 = vshrl.u32 %v9313_v48, 4  ;;  %v4611_v47 = vshrl.u32 %v9329_v56, 4 }
 0x29f   : > { %v9408_v48 = vadd.s32 128, %v9184_v22 }
 0x2a0   : > { %v9230_v16 = vpop.f32.mrb[16].mxu1  ;;  %11469 = vst [vmem:[#allocation6_spill] sm:$0xff] %v9345_v10  ;;  %vm4864_vm4 = vcmp.ne.s32.totalorder %v9345_v10, 0  ;;  %vm4898_vm5 = vcmp.lt.s32.totalorder %v9345_v10, 0  ;;  %v4590_v46 = vmul.u32 17, %v4589_v52  ;;  %v4601_v5 = vmul.u32 17, %v4600_v32 }
 0x2a1   : > { %v6949_v60 = vpop.f32.mrb[17].mxu1  ;;  %v4612_v29 = vmul.u32 17, %v4611_v47  ;;  %vm9463_vm15 = vmand %vm4898_vm5, %vm4864_vm4 }
 0x2a2   : > { %v9245_v63 = vpop.f32.mrb[18].mxu1  ;;  %v9456_v2 = vsub.s32 %v9275_v13, %v4590_v46  ;;  %v11492_v13 = vmov 0  ;;  %v4623_v46 = vmul.u32 17, %v4622_v11 }
 0x2a3   : > { %v6950_v4 = vpop.f32.mrb[19].mxu1 }
 0x2a4   : > { %v9342_v4 = vsub.s32 %v9218_v0, %v4546_v50  ;;  %v9361_v0 = vadd.s32 17, %v9308_v41  ;;  %v9387_v50 = vmul.u32.u64.low 4042322161, %v9358_v57  ;;  %v9388_v36 = vmul.u32.u64.high 4042322161, %v9358_v57, %v9387_v50  ;;  %11488 = vst [vmem:[#allocation17_spill] sm:$0xff] %v9456_v2 }
 0x2a5   : > { %v11484_v50 = vmov 0  ;;  %vm4901_vm4 = vcmp.lt.s32.totalorder %v9456_v2, 0  ;;  %v9540_v11 = vsub.s32 %v9316_v49, %v4623_v46  ;;  %v9559_v46 = vadd.s32 160, %v9184_v22 }
 0x2a6   : > { %11468 = vst [vmem:[#allocation5_spill] sm:$0xff] %v9342_v4  ;;  %vm4863_vm2 = vcmp.ne.s32.totalorder %v9342_v4, 0  ;;  %vm4897_vm3 = vcmp.lt.s32.totalorder %v9342_v4, 0  ;;  %v9379_v24 = vadd.s32 17, %v9342_v4  ;;  %v5166_v4 = vld [vmem:[%s9570_s12 + $0x8] sm:$0xf] }
 0x2a7   : > { %vm9448_vm14 = vmand %vm4897_vm3, %vm4863_vm2  ;;  %vm4867_vm3 = vcmp.ne.s32.totalorder %v9456_v2, 0  ;;  %11501 = vst [vmem:[#allocation24_spill] sm:$0xff] %v9540_v11 }
 0x2a8   : > { %v9277_v14 = vpop.f32.mrb[20].mxu1  ;;  %11472 = vst [vmem:[#allocation9_spill] sm:$0xff] %v9379_v24  ;;  %v11485_v50 = vsel %vm9448_vm14, 4294967295, %v11484_v50  ;;  %vm9494_vm2 = vmand %vm4900_vm13, %vm4866_vm12  ;;  %vm4870_vm12 = vcmp.ne.s32.totalorder %v9540_v11, 0  ;;  %vm11522_vm13 = vcmp.lt.s32.totalorder %v9540_v11, 0 }
 0x2a9   : > { %11463 = vst [vmem:[#allocation2_spill] sm:$0xff] %v9277_v14  ;;  %v6953_v20 = vpop.f32.mrb[21].mxu1  ;;  %11486 = vst [vmem:[#allocation15_spill] sm:$0xff] %v11485_v50 }
 0x2aa   : > { %v9289_v28 = vpop.f32.mrb[22].mxu1  ;;  %v9365_v21 = vmul.u32.u64.low 4042322161, %v9332_v59  ;;  %v9366_v20 = vmul.u32.u64.high 4042322161, %v9332_v59, %v9365_v21 }
 0x2ab   : > { %11466 = vst [vmem:[#allocation3_spill] sm:$0xff] %v9289_v28  ;;  %v6954_v33 = vpop.f32.mrb[23].mxu1  ;;  %v4633_v21 = vshrl.u32 %v9355_v17, 4  ;;  %v4655_v28 = vshrl.u32 %v9388_v36, 4 }
 0x2ac   : > { %v9374_v33 = vsub.s32 %v9237_v27, %v4568_v62  ;;  %v9392_v27 = vadd.s32 17, %v9345_v10  ;;  %v4644_v17 = vshrl.u32 %v9366_v20, 4  ;;  %v9484_v20 = vsub.s32 %v9287_v37, %v4601_v5 }
 0x2ad   : > { %v9500_v37 = vmul.u32.u64.low 4042322161, %v9442_v7  ;;  %v9501_v5 = vmul.u32.u64.high 4042322161, %v9442_v7, %v9500_v37  ;;  %v10136_v62 = vadd.s32 232, %v9184_v22 }
 0x2ae   : > { %11471 = vst [vmem:[#allocation8_spill] sm:$0xff] %v9374_v33  ;;  %11474 = vst [vmem:[#allocation11_spill] sm:$0xff] %v9392_v27  ;;  %vm4865_vm7 = vcmp.ne.s32.totalorder %v9374_v33, 0  ;;  %vm4899_vm8 = vcmp.lt.s32.totalorder %v9374_v33, 0  ;;  %v4645_v36 = vmul.u32 17, %v4644_v17 }
 0x2af   : > { %vm9479_vm0 = vmand %vm4899_vm8, %vm4865_vm7  ;;  %11495 = vst [vmem:[#allocation20_spill] sm:$0xff] %v9484_v20 }
 0x2b0   : > { %v9334_v60 = vpop.f32.mrb[24].mxu1  ;;  %v11493_v13 = vsel %vm9479_vm0, 4294967295, %v11492_v13  ;;  %v9556_v49 = vsub.s32 %v9332_v59, %v4645_v36  ;;  %vm9576_vm7 = vmand %vm4901_vm4, %vm4867_vm3  ;;  %v11507_v59 = vmov 0  ;;  %v4699_v36 = vshrl.u32 %v9501_v5, 4 }
 0x2b1   : > { %11467 = vst [vmem:[#allocation4_spill] sm:$0xff] %v9334_v60  ;;  %v6957_v58 = vpop.f32.mrb[25].mxu1  ;;  %11494 = vst [vmem:[#allocation19_spill] sm:$0xff] %v11493_v13  ;;  %v4634_v60 = vmul.u32 17, %v4633_v21  ;;  %v9530_v21 = vsub.s32 %v9306_v43, %v4612_v29  ;;  %v9545_v29 = vadd.s32 17, %v9456_v2  ;;  %v11508_v59 = vsel %vm9576_vm7, 4294967295, %v11507_v59 }
 0x2b2   : > { %v9351_v8 = vpop.f32.mrb[26].mxu1  ;;  %v9422_v58 = vadd.s32 17, %v9374_v33  ;;  %11506 = vst [vmem:[#allocation29_spill] sm:$0xff] %v9556_v49  ;;  %11509 = vst [vmem:[#allocation30_spill] sm:$0xff] %v11508_v59  ;;  %vm11512_vm3 = vcmp.ne.s32.totalorder %v9484_v20, 0  ;;  %vm11513_vm4 = vcmp.lt.s32.totalorder %v9484_v20, 0 }
 0x2b3   : > { %11470 = vst [vmem:[#allocation7_spill] sm:$0xff] %v9351_v8  ;;  %v6958_v18 = vpop.f32.mrb[27].mxu1  ;;  %11500 = vst [vmem:[#allocation23_spill] sm:$0xff] %v9530_v21  ;;  %v9549_v43 = vsub.s32 %v9322_v40, %v4634_v60  ;;  %v9581_v60 = vadd.s32 17, %v9530_v21  ;;  %v5165_v33 = vld [vmem:[%s9570_s12 + $0x4] sm:$0xf] }
 0x2b4   : > { %11480 = vst [vmem:[#allocation13_spill] sm:$0xff] %v9422_v58  ;;  %11503 = vst [vmem:[#allocation26_spill] sm:$0xff] %v9545_v29  ;;  %v11523_v5 = vmov 0  ;;  %v11532_v29 = vmov 0  ;;  %v4700_v59 = vmul.u32 17, %v4699_v36  ;;  %vm11535_vm0 = vcmp.ne.s32.totalorder %v9556_v49, 0 }
 0x2b5   : > { %11504 = vst [vmem:[#allocation27_spill] sm:$0xff] %v9549_v43  ;;  %11510 = vst [vmem:[#allocation31_spill] sm:$0xff] %v9581_v60  ;;  %v9637_v2 = vadd.s32 17, %v9549_v43  ;;  %v5273_v24 = vunpack.c.l.bf16 %v5165_v33 }
 0x2b6   : > { %vm9629_vm7 = vmand %vm11522_vm13, %vm4870_vm12  ;;  %v9711_v33 = vsub.s32 %v9442_v7, %v4700_v59  ;;  %v5167_v7 = vld [vmem:[%s9570_s12 + $0xc] sm:$0xf]  ;;  %v9743_v59 = vld [vmem:[%s11346_s4] ss:$0 sm:$0xff] }
 0x2b7   : > { %v11524_v5 = vsel %vm9629_vm7, 4294967295, %v11523_v5  ;;  %11527 = vst [vmem:[#allocation37_spill] sm:$0xff] %v9637_v2 }
 0x2b8   : > { %v9395_v51 = vpop.f32.mrb[28].mxu1  ;;  %11525 = vst [vmem:[#allocation35_spill] sm:$0xff] %v11524_v5  ;;  %11546 = vst [vmem:[#allocation46_spill] sm:$0xff] %v9711_v33 }
 0x2b9   : > { %11475 = vst [vmem:[#allocation12_spill] sm:$0xff] %v9395_v51  ;;  %v6961_v56 = vpop.f32.mrb[29].mxu1  ;;  %v9472_v51 = vmul.u32.u64.low 4042322161, %v9411_v55  ;;  %v9473_v8 = vmul.u32.u64.high 4042322161, %v9411_v55, %v9472_v51 }
 0x2ba   : > { %v9428_v18 = vpop.f32.mrb[30].mxu1  ;;  %v9453_v56 = vadd.s32 17, %v9384_v45  ;;  %v11496_v51 = vmov 0  ;;  %v9606_v45 = vadd.s32 168, %v9184_v22 }
 0x2bb   : > { %11481 = vst [vmem:[#allocation14_spill] sm:$0xff] %v9428_v18  ;;  %v6962_v32 = vpop.f32.mrb[31].mxu1  ;;  %v9468_v34 = vmul.u32.u64.low 4042322161, %v9408_v48  ;;  %v9469_v18 = vmul.u32.u64.high 4042322161, %v9408_v48, %v9468_v34  ;;  %v11497_v51 = vsel %vm9494_vm2, 4294967295, %v11496_v51  ;;  %vm9596_vm2 = vmand %vm11513_vm4, %vm11512_vm3  ;;  %vm11517_vm3 = vcmp.ne.s32.totalorder %v9530_v21, 0 }
 0x2bc   : > { %11487 = vst [vmem:[#allocation16_spill] sm:$0xff] %v9453_v56  ;;  %v11489_v32 = vmov 0  ;;  %v9487_v47 = vmul.u32.u64.low 4042322161, %v9426_v38  ;;  %v9488_v34 = vmul.u32.u64.high 4042322161, %v9426_v38, %v9487_v47  ;;  %11498 = vst [vmem:[#allocation21_spill] sm:$0xff] %v11497_v51  ;;  %vm11518_vm4 = vcmp.lt.s32.totalorder %v9530_v21, 0 }
 0x2bd   : > { %v11490_v32 = vsel %vm9463_vm15, 4294967295, %v11489_v32  ;;  %v9553_v47 = vadd.s32 17, %v9484_v20  ;;  %v4666_v40 = vshrl.u32 %v9469_v18, 4  ;;  %vm9619_vm8 = vmand %vm11518_vm4, %vm11517_vm3  ;;  %v11519_v56 = vmov 0 }
 0x2be   : > { %11491 = vst [vmem:[#allocation18_spill] sm:$0xff] %v11490_v32  ;;  %v11520_v56 = vsel %vm9619_vm8, 4294967295, %v11519_v56  ;;  %vm11530_vm3 = vcmp.ne.s32.totalorder %v9549_v43, 0  ;;  %vm11531_vm4 = vcmp.lt.s32.totalorder %v9549_v43, 0  ;;  %vm11536_vm15 = vcmp.lt.s32.totalorder %v9556_v49, 0 }
 0x2bf   : > { %11505 = vst [vmem:[#allocation28_spill] sm:$0xff] %v9553_v47  ;;  %11521 = vst [vmem:[#allocation34_spill] sm:$0xff] %v11520_v56  ;;  %v9667_v32 = vadd.s32 176, %v9184_v22 }
 0x2c0   : > { %v9515_v14 = vpop.f32.mrb[32].mxu1  ;;  %vm9648_vm12 = vmand %vm11531_vm4, %vm11530_vm3 }
 0x2c1   : > { %11499 = vst [vmem:[#allocation22_spill] sm:$0xff] %v9515_v14  ;;  %v6965_v17 = vpop.f32.mrb[33].mxu1  ;;  %v11533_v29 = vsel %vm9648_vm12, 4294967295, %v11532_v29  ;;  %vm9658_vm14 = vmand %vm11536_vm15, %vm11535_vm0  ;;  %vm11547_vm0 = vcmask 130048  }
 0x2c2   : > { %v9542_v14 = vpop.f32.mrb[34].mxu1  ;;  %v4656_v17 = vmul.u32 17, %v4655_v28  ;;  %v4677_v28 = vshrl.u32 %v9473_v8, 4  ;;  %v4688_v8 = vshrl.u32 %v9488_v34, 4  ;;  %11534 = vst [vmem:[#allocation40_spill] sm:$0xff] %v11533_v29  ;;  %v11567_v29 = vmov 0 }
 0x2c3   : > { %11502 = vst [vmem:[#allocation25_spill] sm:$0xff] %v9542_v14  ;;  %v6966_v37 = vpop.f32.mrb[35].mxu1  ;;  %v9602_v34 = vmul.u32.u64.low 4042322161, %v9559_v46  ;;  %v9603_v14 = vmul.u32.u64.high 4042322161, %v9559_v46, %v9602_v34 }
 0x2c4   : > { %v9589_v18 = vsub.s32 %v9358_v57, %v4656_v17  ;;  %v5164_v57 = vld [vmem:[%s9570_s12] sm:$0xf]  ;;  %v4667_v34 = vmul.u32 17, %v4666_v40  ;;  %v4678_v51 = vmul.u32 17, %v4677_v28  ;;  %v9640_v40 = vadd.s32 17, %v9556_v49 }
 0x2c5   : > { %v4689_v28 = vmul.u32 17, %v4688_v8  ;;  %v5272_v13 = vunpack.c.l.bf16 %v5164_v57  ;;  %v11537_v8 = vmov 0  ;;  %v4710_v43 = vshrl.u32 %v9603_v14, 4 }
 0x2c6   : > { %11511 = vst [vmem:[#allocation32_spill] sm:$0xff] %v9589_v18  ;;  %11528 = vst [vmem:[#allocation38_spill] sm:$0xff] %v9640_v40  ;;  %vm4873_vm13 = vcmp.ne.s32.totalorder %v9589_v18, 0  ;;  %vm4907_vm5 = vcmp.lt.s32.totalorder %v9589_v18, 0  ;;  %v11538_v8 = vsel %vm9658_vm14, 4294967295, %v11537_v8  ;;  %v9675_v36 = vadd.s32 17, %v9589_v18 }
 0x2c7   : > { %11539 = vst [vmem:[#allocation41_spill] sm:$0xff] %v11538_v8  ;;  %v9678_v57 = vsub.s32 %v9408_v48, %v4667_v34  ;;  %v9681_v50 = vsub.s32 %v9411_v55, %v4678_v51  ;;  %vm9699_vm15 = vmand %vm4907_vm5, %vm4873_vm13  ;;  %v11542_v55 = vmov 0  ;;  %v9704_v51 = vsub.s32 %v9426_v38, %v4689_v28 }
 0x2c8   : > { %v9609_v17 = vpop.f32.mrb[36].mxu1  ;;  %11540 = vst [vmem:[#allocation42_spill] sm:$0xff] %v9675_v36  ;;  %v11543_v55 = vsel %vm9699_vm15, 4294967295, %v11542_v55  ;;  %v5274_v48 = vunpack.c.l.bf16 %v5166_v4  ;;  %v9721_v38 = vmul.u32.u64.low 4042322161, %v9667_v32  ;;  %v9722_v28 = vmul.u32.u64.high 4042322161, %v9667_v32, %v9721_v38  ;;  %vm11548_vm5 = vmmov %vm11547_vm0 }
 0x2c9   : > { %11516 = vst [vmem:[#allocation33_spill] sm:$0xff] %v9609_v17  ;;  %v6969_v58 = vpop.f32.mrb[37].mxu1  ;;  %v9634_v17 = vadd.s32 17, %v9540_v11  ;;  %11541 = vst [vmem:[#allocation43_spill] sm:$0xff] %v9681_v50  ;;  %v5307_v8 = vsel %vm11548_vm5, %v5273_v24, 0.0  ;;  %vm4874_vm3 = vcmp.ne.s32.totalorder %v9678_v57, 0 }
 0x2ca   : > { %v9642_v58 = vpop.f32.mrb[38].mxu1  ;;  %11544 = vst [vmem:[#allocation44_spill] sm:$0xff] %v11543_v55  ;;  %11545 = vst [vmem:[#allocation45_spill] sm:$0xff] %v9704_v51  ;;  %v9737_v24 = vadd.s32 184, %v9184_v22  ;;  %vm11549_vm5 = vcmp.lt.s32.totalorder %v9678_v57, 0  ;;  %v11550_v18 = vmov 0 }
 0x2cb   : > { %11526 = vst [vmem:[#allocation36_spill] sm:$0xff] %v9634_v17  ;;  %11529 = vst [vmem:[#allocation39_spill] sm:$0xff] %v9642_v58  ;;  %v6970_v10 = vpop.f32.mrb[39].mxu1  ;;  %v9663_v58 = vmul.u32.u64.low 4042322161, %v9606_v45  ;;  %v9664_v27 = vmul.u32.u64.high 4042322161, %v9606_v45, %v9663_v58  ;;  %v5309_v55 = vsel %vm11547_vm0, %v5274_v48, 0.0 }
 0x2cc   : > { %v5306_v58 = vsel %vm11547_vm0, %v5272_v13, 0.0  ;;  %v9717_v10 = vld [vmem:[%s11345_s3] ss:$0 sm:$0xff]  ;;  %vm9751_vm14 = vmand %vm11549_vm5, %vm4874_vm3  ;;  %v5168_v36 = vld [vmem:[%s9570_s12 + $0x10] sm:$0xf]  ;;  %v9761_v40 = vadd.s32 17, %v9678_v57 }
 0x2cd   : > { %v5308_v4 = vadd.f32 %v5307_v8, %v5306_v58  ;;  %v11551_v18 = vsel %vm9751_vm14, 4294967295, %v11550_v18  ;;  %vm11552_vm3 = vcmp.ne.s32.totalorder %v9681_v50, 0  ;;  %vm11553_vm5 = vcmp.lt.s32.totalorder %v9681_v50, 0  ;;  %v5169_v11 = vld [vmem:[%s9570_s12 + $0x14] sm:$0xf] }
 0x2ce   : > { %vm9767_vm4 = vmand %vm11553_vm5, %vm11552_vm3  ;;  %vm11558_vm0 = vcmp.ne.s32.totalorder %v9704_v51, 0  ;;  %vm11559_vm13 = vcmp.lt.s32.totalorder %v9704_v51, 0  ;;  %v9786_v48 = vadd.s32 17, %v9711_v33  ;;  %vm11566_vm3 = vcmp.lt.s32.totalorder %v9711_v33, 0  ;;  %v9806_v17 = vld [vmem:[%s9570_s12 + $0x18] sm:$0xf] }
 0x2cf   : > { %vm9778_vm15 = vmand %vm11559_vm13, %vm11558_vm0  ;;  %vm11565_vm13 = vcmp.ne.s32.totalorder %v9711_v33, 0  ;;  %v5276_v5 = vunpack.c.l.bf16 %v5168_v36  ;;  %v5310_v21 = vadd.f32 %v5309_v55, %v5308_v4  ;;  %v4732_v60 = vshrl.u32 %v9722_v28, 4 }
 0x2d0   : > { %v3994_v14 = vpop.f32.mrb[0].mxu0  ;;  %11564 = vst [vmem:[#allocation51_spill] sm:$0xff] %v9786_v48  ;;  %vm9800_vm5 = vmand %vm11566_vm3, %vm11565_vm13  ;;  %vm11571_vm0 = vcmask 130048   ;;  %v5277_v28 = vunpack.c.l.bf16 %v5169_v11  ;;  %v5278_v4 = vunpack.c.l.bf16 %v9806_v17 }
 0x2d1   : > { %v7369_v13 = vadd.f32 %v3994_v14, %v9178_v15  ;;  %v7283_v38 = vpop.f32.mrb[1].mxu0  ;;  %v4711_v15 = vmul.u32 17, %v4710_v43  ;;  %v4721_v14 = vshrl.u32 %v9664_v27, 4  ;;  %v11554_v27 = vmov 0  ;;  %vm11572_vm13 = vmmov %vm11571_vm0 }
 0x2d2   : > { %v3997_v34 = vpop.f32.mrb[2].mxu0  ;;  %v5275_v38 = vunpack.c.l.bf16 %v5167_v7  ;;  %v11555_v27 = vsel %vm9767_vm4, 4294967295, %v11554_v27  ;;  %v9772_v43 = vadd.s32 17, %v9681_v50  ;;  %v11568_v29 = vsel %vm9800_vm5, 4294967295, %v11567_v29 }
 0x2d3   : > { %v4170_v8 = vmul.f32 %v7369_v13, %v9717_v10  ;;  %v7370_v58 = vadd.f32 %v3997_v34, %v9180_v3  ;;  %v7284_v49 = vpop.f32.mrb[3].mxu0  ;;  %11556 = vst [vmem:[#allocation47_spill] sm:$0xff] %v11555_v27  ;;  %v11560_v3 = vmov 0  ;;  %11569 = vst [vmem:[#allocation52_spill] sm:$0xff] %v11568_v29  ;;  %v5313_v47 = vsel %vm11572_vm13, %v5276_v5, 0.0 }
 0x2d4   : > { %11557 = vst [vmem:[#allocation48_spill] sm:$0xff] %v9772_v43  ;;  %v11561_v3 = vsel %vm9778_vm15, 4294967295, %v11560_v3  ;;  %v9783_v49 = vadd.s32 17, %v9704_v51  ;;  %v9789_v34 = vmul.u32.u64.low 4042322161, %v9737_v24  ;;  %v9790_v7 = vmul.u32.u64.high 4042322161, %v9737_v24, %v9789_v34  ;;  %vm11575_vm13 = vmmov %vm11571_vm0 }
 0x2d5   : > { %11562 = vst [vmem:[#allocation49_spill] sm:$0xff] %v11561_v3  ;;  %v9793_v13 = vadd.f32 %v9743_v59, %v4170_v8  ;;  %v4171_v2 = vmul.f32 %v7370_v58, %v9717_v10  ;;  %v9809_v34 = vsub.s32 %v9559_v46, %v4711_v15  ;;  %v4722_v8 = vmul.u32 17, %v4721_v14 }
 0x2d6   : > { %11563 = vst [vmem:[#allocation50_spill] sm:$0xff] %v9783_v49  ;;  %v5311_v58 = vsel %vm11571_vm0, %v5275_v38, 0.0  ;;  %v4733_v51 = vmul.u32 17, %v4732_v60  ;;  %v9852_v60 = vadd.s32 200, %v9184_v22  ;;  %v9907_v49 = vld [vmem:[%s9570_s12 + $0x28] sm:$0xf] }
 0x2d7   : > { %11570 = vst [vmem:[#allocation53_spill] sm:$0xff] %v9809_v34  ;;  %v4245_v56 = vsub.f32 0.0, %v9793_v13  ;;  %v9815_v20 = vadd.f32 %v9743_v59, %v4171_v2  ;;  %v5312_v46 = vadd.f32 %v5311_v58, %v5310_v21  ;;  %v9839_v55 = vsub.s32 %v9606_v45, %v4722_v8 }
 0x2d8   : > { %v4002_v36 = vpop.f32.mrb[4].mxu0  ;;  %v9842_v2 = vadd.s32 192, %v9184_v22  ;;  %v9848_v5 = vadd.s32 17, %v9809_v34  ;;  %v4743_v45 = vshrl.u32 %v9790_v7, 4  ;;  %v9861_v58 = vsub.s32 %v9667_v32, %v4733_v51 }
 0x2d9   : > { %v4246_v15 = vsub.f32 0.0, %v9815_v20  ;;  %v7371_v14 = vadd.f32 %v4002_v36, %v9182_v19  ;;  %v7287_v38 = vpop.f32.mrb[5].mxu0  ;;  %11573 = vst [vmem:[#allocation54_spill] sm:$0xff] %v9839_v55  ;;  %v4279_v11 = vmul.f32 1.442695, %v4245_v56  ;;  %vm4913_vm3 = vcmp.lt.s32.totalorder %v9839_v55, 0 }
 0x2da   : > { %v4005_v50 = vpop.f32.mrb[6].mxu0  ;;  %11574 = vst [vmem:[#allocation55_spill] sm:$0xff] %v9848_v5  ;;  %11576 = vst [vmem:[#allocation56_spill] sm:$0xff] %v9861_v58  ;;  %v9864_v36 = vmul.u32.u64.low 4042322161, %v9842_v2  ;;  %v9865_v7 = vmul.u32.u64.high 4042322161, %v9842_v2, %v9864_v36  ;;  %vm11578_vm0 = vcmp.lt.s32.totalorder %v9809_v34, 0 }
 0x2db   : > { %v4172_v17 = vmul.f32 %v7371_v14, %v9717_v10  ;;  %v7372_v33 = vadd.f32 %v4005_v50, %v9186_v25  ;;  %v7288_v19 = vpop.f32.mrb[7].mxu0  ;;  %v4281_v21 = vmul.f32 1.442695, %v4246_v15  ;;  %v5314_v25 = vadd.f32 %v5313_v47, %v5312_v46  ;;  %v5171_v47 = vld [vmem:[%s9570_s12 + $0x1c] sm:$0xf] }
 0x2dc   : > { %v5315_v50 = vsel %vm11575_vm13, %v5277_v28, 0.0  ;;  %8101 = vpow2.f32 %v4279_v11  ;;  %v4744_v46 = vmul.u32 17, %v4743_v45  ;;  %v9878_v28 = vld [vmem:[%s9570_s12 + $0x20] sm:$0xf]  ;;  %vm11577_vm13 = vcmp.ne.s32.totalorder %v9809_v34, 0 }
 0x2dd   : > { %v9855_v8 = vadd.f32 %v9743_v59, %v4172_v17  ;;  %v4173_v56 = vmul.f32 %v7372_v33, %v9717_v10  ;;  %8103 = vpow2.f32 %v4281_v21  ;;  %vm9886_vm5 = vmand %vm11578_vm0, %vm11577_vm13  ;;  %v11579_v21 = vmov 0 }
 0x2de   : > { %v9874_v32 = vmul.u32.u64.low 4042322161, %v9852_v60  ;;  %v9875_v51 = vmul.u32.u64.high 4042322161, %v9852_v60, %v9874_v32  ;;  %v11580_v21 = vsel %vm9886_vm5, 4294967295, %v11579_v21  ;;  %v9891_v45 = vadd.s32 17, %v9839_v55 }
 0x2df   : > { %v4247_v15 = vsub.f32 0.0, %v9855_v8  ;;  %v9869_v14 = vadd.f32 %v9743_v59, %v4173_v56  ;;  %11581 = vst [vmem:[#allocation57_spill] sm:$0xff] %v11580_v21  ;;  %vm11583_vm15 = vcmp.ne.s32.totalorder %v9839_v55, 0  ;;  %v11584_v36 = vmov 0 }
 0x2e0   : > { %v4010_v33 = vpop.f32.mrb[8].mxu0  ;;  %11582 = vst [vmem:[#allocation58_spill] sm:$0xff] %v9891_v45  ;;  %vm9895_vm4 = vmand %vm4913_vm3, %vm11583_vm15  ;;  %vm4880_vm14 = vcmp.ne.s32.totalorder %v9861_v58, 0  ;;  %vm4914_vm12 = vcmp.lt.s32.totalorder %v9861_v58, 0  ;;  %v9914_v43 = vadd.s32 17, %v9861_v58  ;;  %vm11588_vm15 = vcmask 130048  }
 0x2e1   : > { %v4283_v38 = vmul.f32 1.442695, %v4247_v15  ;;  %v4248_v11 = vsub.f32 0.0, %v9869_v14  ;;  %v7373_v17 = vadd.f32 %v4010_v33, %v9193_v30  ;;  %v7291_v19 = vpop.f32.mrb[9].mxu0  ;;  %v11585_v36 = vsel %vm9895_vm4, 4294967295, %v11584_v36  ;;  %vm9935_vm3 = vmand %vm4914_vm12, %vm4880_vm14 }
 0x2e2   : > { %v4013_v56 = vpop.f32.mrb[10].mxu0  ;;  %11586 = vst [vmem:[#allocation59_spill] sm:$0xff] %v11585_v36  ;;  %v9902_v30 = vld [vmem:[%s9570_s12 + $0x24] sm:$0xf]  ;;  %v5279_v15 = vunpack.c.l.bf16 %v5171_v47  ;;  %v5316_v33 = vadd.f32 %v5315_v50, %v5314_v25  ;;  %11587 = vst [vmem:[#allocation60_spill] sm:$0xff] %v9914_v43  ;;  %v9917_v47 = vsub.s32 %v9737_v24, %v4744_v46  ;;  %v5317_v50 = vsel %vm11588_vm15, %v5278_v4, 0.0 }
 0x2e3   : > { %8105 = vpow2.f32 %v4283_v38  ;;  %v4285_v32 = vmul.f32 1.442695, %v4248_v11  ;;  %v4174_v19 = vmul.f32 %v7373_v17, %v9717_v10  ;;  %v7374_v48 = vadd.f32 %v4013_v56, %v9198_v35  ;;  %v7292_v29 = vpop.f32.mrb[11].mxu0  ;;  %v9920_v25 = vld [vmem:[%s9570_s12 + $0x2c] sm:$0xf]  ;;  %vm11592_vm0 = vmmov %vm11588_vm15 }
 0x2e4   : > { %v11589_v24 = vmov 0  ;;  %v5280_v4 = vunpack.c.l.bf16 %v9878_v28  ;;  %v9941_v46 = vadd.s32 208, %v9184_v22  ;;  %v5318_v38 = vadd.f32 %v5317_v50, %v5316_v33  ;;  %vm11596_vm15 = vmmov %vm11592_vm0 }
 0x2e5   : > { %v9924_v35 = vadd.f32 %v9743_v59, %v4174_v19  ;;  %v4175_v29 = vmul.f32 %v7374_v48, %v9717_v10  ;;  %v11590_v24 = vsel %vm9935_vm3, 4294967295, %v11589_v24  ;;  %8107 = vpow2.f32 %v4285_v32 }
 0x2e6   : > { %11591 = vst [vmem:[#allocation61_spill] sm:$0xff] %v11590_v24  ;;  %vm4881_vm14 = vcmp.ne.s32.totalorder %v9917_v47, 0  ;;  %v4754_v32 = vshrl.u32 %v9865_v7, 4  ;;  %v4765_v11 = vshrl.u32 %v9875_v51, 4  ;;  %v8102_v48 = vpop.eup %8101  ;;  %vm4915_vm12 = vcmp.lt.s32.totalorder %v9917_v47, 0 }
 0x2e7   : > { %v4249_v17 = vsub.f32 0.0, %v9924_v35  ;;  %v9947_v56 = vadd.f32 %v9743_v59, %v4175_v29  ;;  %v8104_v33 = vpop.eup %8103  ;;  %v9961_v28 = vmul.u32.u64.low 4042322161, %v9941_v46  ;;  %v9962_v58 = vmul.u32.u64.high 4042322161, %v9941_v46, %v9961_v28  ;;  %vm9984_vm13 = vmand %vm4915_vm12, %vm4881_vm14 }
 0x2e8   : > { %v4018_v3 = vpop.f32.mrb[12].mxu0  ;;  %v9965_v7 = vadd.s32 216, %v9184_v22  ;;  %v5319_v51 = vsel %vm11592_vm0, %v5279_v15, 0.0  ;;  %v9971_v24 = vadd.s32 17, %v9917_v47  ;;  %v4755_v36 = vmul.u32 17, %v4754_v32  ;;  %vm11600_vm12 = vmmov %vm11592_vm0 }
 0x2e9   : > { %v4287_v55 = vmul.f32 1.442695, %v4249_v17  ;;  %v4250_v29 = vsub.f32 0.0, %v9947_v56  ;;  %v7375_v45 = vadd.f32 %v4018_v3, %v9202_v39  ;;  %v7295_v19 = vpop.f32.mrb[13].mxu0  ;;  %v4766_v34 = vmul.u32 17, %v4765_v11 }
 0x2ea   : > { %v4021_v50 = vpop.f32.mrb[14].mxu0  ;;  %v4347_v19 = vadd.f32 1.0, %v8102_v48  ;;  %v9974_v28 = vld [vmem:[%s9570_s12 + $0x30] sm:$0xf]  ;;  %v4348_v21 = vadd.f32 1.0, %v8104_v33  ;;  %v5320_v32 = vadd.f32 %v5319_v51, %v5318_v38  ;;  %v10006_v51 = vsub.s32 %v9842_v2, %v4755_v36 }
 0x2eb   : > { %8109 = vpow2.f32 %v4287_v55  ;;  %v4289_v17 = vmul.f32 1.442695, %v4250_v29  ;;  %v4176_v43 = vmul.f32 %v7375_v45, %v9717_v10  ;;  %v7376_v39 = vadd.f32 %v4021_v50, %v9206_v44  ;;  %v7296_v3 = vpop.f32.mrb[15].mxu0  ;;  %v9997_v33 = vld [vmem:[%s9570_s12 + $0x34] sm:$0xf] }
 0x2ec   : > { %v11593_v44 = vmov 0  ;;  %v9989_v48 = vmul.u32.u64.low 4042322161, %v9965_v7  ;;  %v9990_v11 = vmul.u32.u64.high 4042322161, %v9965_v7, %v9989_v48  ;;  %11597 = vst [vmem:[#allocation63_spill] sm:$0xff] %v10006_v51  ;;  %v10009_v3 = vsub.s32 %v9852_v60, %v4766_v34 }
 0x2ed   : > { %v8106_v5 = vpop.eup %8105  ;;  %8111 = vpow2.f32 %v4289_v17  ;;  %v9977_v55 = vadd.f32 %v9743_v59, %v4176_v43  ;;  %v4177_v45 = vmul.f32 %v7376_v39, %v9717_v10  ;;  %v11594_v44 = vsel %vm9984_vm13, 4294967295, %v11593_v44 }
 0x2ee   : > { %11595 = vst [vmem:[#allocation62_spill] sm:$0xff] %v11594_v44  ;;  %v4349_v15 = vadd.f32 1.0, %v8106_v5  ;;  %v5321_v17 = vsel %vm11596_vm15, %v5280_v4, 0.0  ;;  %8113 = vrcp.f32 %v4347_v19  ;;  %11598 = vst [vmem:[#allocation64_spill] sm:$0xff] %v10009_v3  ;;  %v10014_v19 = vld [vmem:[%s9570_s12 + $0x38] sm:$0xf] }
 0x2ef   : > { %v4251_v29 = vsub.f32 0.0, %v9977_v55  ;;  %v9994_v43 = vadd.f32 %v9743_v59, %v4177_v45  ;;  %v8108_v39 = vpop.eup %8107  ;;  %8115 = vrcp.f32 %v4348_v21  ;;  %v4776_v44 = vshrl.u32 %v9962_v58, 4 }
 0x2f0   : > { %v4026_v5 = vpop.f32.mrb[16].mxu0  ;;  %8117 = vrcp.f32 %v4349_v15  ;;  %v5322_v2 = vadd.f32 %v5321_v17, %v5320_v32  ;;  %v4350_v36 = vadd.f32 1.0, %v8108_v39  ;;  %vm4916_vm0 = vcmp.lt.s32.totalorder %v10006_v51, 0  ;;  %v10031_v17 = vld [vmem:[%s9570_s12 + $0x3c] sm:$0xf] }
 0x2f1   : > { %v4291_v45 = vmul.f32 1.442695, %v4251_v29  ;;  %v4252_v48 = vsub.f32 0.0, %v9994_v43  ;;  %v7377_v4 = vadd.f32 %v4026_v5, %v9230_v16  ;;  %v7299_v50 = vpop.f32.mrb[17].mxu0  ;;  %v11599_v29 = vunpack.c.l.bf16 %v9902_v30  ;;  %v10037_v39 = vld [vmem:[%s9570_s12 + $0x40] sm:$0xf] }
 0x2f2   : > { %v4029_v27 = vpop.f32.mrb[18].mxu0  ;;  %v4787_v30 = vshrl.u32 %v9990_v11, 4  ;;  %v11605_v11 = vsel %vm9267_vm9, %v9261_v23, %v9224_v9  ;;  %v10073_v12 = vadd.s32 17, %v10009_v3  ;;  %v10076_v9 = vadd.s32 224, %v9184_v22 }
 0x2f3   : > { %8119 = vpow2.f32 %v4291_v45  ;;  %v4293_v34 = vmul.f32 1.442695, %v4252_v48  ;;  %v4178_v60 = vmul.f32 %v7377_v4, %v9717_v10  ;;  %v7300_v21 = vpop.f32.mrb[19].mxu0  ;;  %v7378_v16 = vadd.f32 %v4029_v27, %v9245_v63 }
 0x2f4   : > { %v5323_v58 = vsel %vm11600_vm12, %v11599_v29, 0.0  ;;  %v11601_v45 = vsel %vm9279_vm10, %v9272_v53, %v9239_v61  ;;  %vm10057_vm14 = vcmp.lt.s32.totalorder %v11605_v11, 16  ;;  %vm11608_vm10 = vcmp.ne.s32.totalorder %v10006_v51, 0  ;;  %11611 = vst [vmem:[#allocation66_spill] sm:$0xff] %v10073_v12 }
 0x2f5   : > { %v8110_v50 = vpop.eup %8109  ;;  %8121 = vpow2.f32 %v4293_v34  ;;  %v10026_v32 = vadd.f32 %v9743_v59, %v4178_v60  ;;  %v4179_v27 = vmul.f32 %v7378_v16, %v9717_v10  ;;  %vm10044_vm12 = vcmp.lt.s32.totalorder %v11601_v45, 16  ;;  %vm10068_vm15 = vmand %vm4916_vm0, %vm11608_vm10 }
 0x2f6   : > { %v4351_v63 = vadd.f32 1.0, %v8110_v50  ;;  %8123 = vrcp.f32 %v4350_v36  ;;  %v10050_v34 = vadd.s32 17, %v10006_v51  ;;  %v4777_v60 = vmul.u32 17, %v4776_v44  ;;  %v11615_v50 = vld [vmem:[#allocation2_spill] sm:$0xff] }
 0x2f7   : > { %v8112_v5 = vpop.eup %8111  ;;  %v4253_v4 = vsub.f32 0.0, %v10026_v32  ;;  %v10062_v61 = vadd.f32 %v9743_v59, %v4179_v27  ;;  %v11612_v44 = vsel %vm9401_vm6, %v9325_v54, %v9295_v31  ;;  %vm11616_vm0 = vcmp.ne.s32.totalorder %v10009_v3, 0 }
 0x2f8   : > { %11604 = vst [vmem:[#allocation65_spill] sm:$0xff] %v10050_v34  ;;  %v4034_v53 = vpop.f32.mrb[20].mxu0  ;;  %vm10084_vm9 = vcmp.lt.s32.totalorder %v11612_v44, 16  ;;  %v4352_v16 = vadd.f32 1.0, %v8112_v5  ;;  %vm11617_vm10 = vcmp.lt.s32.totalorder %v10009_v3, 0  ;;  %v11618_v11 = vmov 0  ;;  %v8114_v31 = vpop.eup %8113 }
 0x2f9   : > { %v4295_v29 = vmul.f32 1.442695, %v4253_v4  ;;  %v7379_v27 = vadd.f32 %v4034_v53, %v11615_v50  ;;  %v7303_v45 = vpop.f32.mrb[21].mxu0  ;;  %vm10093_vm13 = vmand %vm11617_vm10, %vm11616_vm0  ;;  %8125 = vrcp.f32 %v4351_v63  ;;  %v4254_v54 = vsub.f32 0.0, %v10062_v61  ;;  %v8116_v53 = vpop.eup %8115 }
 0x2fa   : > { %v11619_v11 = vsel %vm10093_vm13, 4294967295, %v11618_v11  ;;  %v4037_v44 = vpop.f32.mrb[22].mxu0  ;;  %v4788_v5 = vmul.u32 17, %v4787_v30  ;;  %v10099_v4 = vadd.f32 %v5323_v58, %v5322_v2  ;;  %v11621_v45 = vld [vmem:[#allocation3_spill] sm:$0xff]  ;;  %v10108_v63 = vsub.s32 %v9941_v46, %v4777_v60  ;;  %v8118_v1 = vpop.eup %8117 }
 0x2fb   : > { %11620 = vst [vmem:[#allocation2_spill] sm:$0xff] %v11619_v11  ;;  %v4180_v50 = vmul.f32 %v7379_v27, %v9717_v10  ;;  %v7380_v23 = vadd.f32 %v4037_v44, %v11621_v45  ;;  %v7304_v15 = vpop.f32.mrb[23].mxu0  ;;  %8127 = vpow2.f32 %v4295_v29  ;;  %v11623_v27 = vsel %vm9417_vm1, %v9361_v0, %v9308_v41  ;;  %v10139_v41 = vld [vmem:[%s9570_s12 + $0x44] sm:$0xf] }
 0x2fc   : > { %11622 = vst [vmem:[#allocation3_spill] sm:$0xff] %v10108_v63  ;;  %v10115_v58 = vmul.u32.u64.low 4042322161, %v10076_v9  ;;  %v10116_v30 = vmul.u32.u64.high 4042322161, %v10076_v9, %v10115_v58  ;;  %vm10123_vm6 = vcmp.lt.s32.totalorder %v11623_v27, 16  ;;  %8129 = vrcp.f32 %v4352_v16 }
 0x2fd   : > { %v8120_v15 = vpop.eup %8119  ;;  %v4297_v60 = vmul.f32 1.442695, %v4254_v54  ;;  %v10128_v29 = vadd.f32 %v9743_v59, %v4180_v50  ;;  %v4181_v44 = vmul.f32 %v7380_v23, %v9717_v10  ;;  %v4416_v45 = vmul.f32 %v8116_v53, %v9815_v20 }
 0x2fe   : > { %v4353_v58 = vadd.f32 1.0, %v8120_v15  ;;  %v10133_v2 = vsub.s32 %v9965_v7, %v4788_v5  ;;  %v4415_v16 = vmul.f32 %v8114_v31, %v9793_v13  ;;  %vm4884_vm1 = vcmp.ne.s32.totalorder %v10108_v63, 0 }
 0x2ff   : > { %v8122_v0 = vpop.eup %8121  ;;  %v4255_v54 = vsub.f32 0.0, %v10128_v29  ;;  %v10144_v50 = vadd.f32 %v9743_v59, %v4181_v44  ;;  %v4417_v20 = vmul.f32 %v8118_v1, %v9855_v8  ;;  %v11627_v7 = vsel %vm9434_vm11, %v9371_v26, %v9339_v42  ;;  %v11631_v8 = vld [vmem:[#allocation4_spill] sm:$0xff] }
 0x300   : > { %11626 = vst [vmem:[#allocation67_spill] sm:$0xff] %v10133_v2  ;;  %vm10153_vm0 = vcmp.lt.s32.totalorder %v11627_v7, 16  ;;  %v4354_v5 = vadd.f32 1.0, %v8122_v0  ;;  %v4042_v13 = vpop.f32.mrb[24].mxu0  ;;  %v10159_v31 = vadd.s32 17, %v10108_v63  ;;  %v8124_v53 = vpop.eup %8123  ;;  %8131 = vpow2.f32 %v4297_v60  ;;  %v11637_v7 = vld [vmem:[#allocation9_spill] sm:$0xff] }
 0x301   : > { %v4299_v15 = vmul.f32 1.442695, %v4255_v54  ;;  %v7381_v1 = vadd.f32 %v4042_v13, %v11631_v8  ;;  %v7307_v52 = vpop.f32.mrb[25].mxu0  ;;  %v10165_v42 = vsel %vm10044_vm12, %v4416_v45, 0.0  ;;  %8133 = vrcp.f32 %v4353_v58  ;;  %v11635_v54 = vld [vmem:[#allocation15_spill] sm:$0xff]  ;;  %v11638_v13 = vld [vmem:[#allocation5_spill] sm:$0xff] }
 0x302   : > { %11630 = vst [vmem:[#allocation68_spill] sm:$0xff] %v10159_v31  ;;  %11632 = vst [vmem:[#allocation4_spill] sm:$0xff] %v10165_v42  ;;  %v4256_v26 = vsub.f32 0.0, %v10144_v50  ;;  %v4045_v44 = vpop.f32.mrb[26].mxu0  ;;  %v10170_v0 = vadd.s32 240, %v9184_v22  ;;  %v10174_v60 = vsel %vm10057_vm14, %v4415_v16, 0.0  ;;  %vm11636_vm10 = vnez %v11635_v54 }
 0x303   : > { %11634 = vst [vmem:[#allocation70_spill] sm:$0xff] %v10174_v60  ;;  %v11639_v48 = vsel %vm11636_vm10, %v11637_v7, %v11638_v13  ;;  %v4182_v58 = vmul.f32 %v7381_v1, %v9717_v10  ;;  %v7308_v8 = vpop.f32.mrb[27].mxu0  ;;  %v10187_v52 = vmul.u32.u64.low 4042322161, %v10136_v62  ;;  %v10188_v38 = vmul.u32.u64.high 4042322161, %v10136_v62, %v10187_v52  ;;  %v8126_v6 = vpop.eup %8125  ;;  %v11643_v7 = vld [vmem:[#allocation7_spill] sm:$0xff] }
 0x304   : > { %11633 = vst [vmem:[#allocation69_spill] sm:$0xff] %v10170_v0  ;;  %vm10181_vm12 = vcmp.lt.s32.totalorder %v11639_v48, 16  ;;  %v10193_v16 = vsel %vm10084_vm9, %v4417_v20, 0.0  ;;  %v4418_v54 = vmul.f32 %v8124_v53, %v9869_v14  ;;  %8135 = vrcp.f32 %v4354_v5  ;;  %v8100_v14 = vld [vmem:[%s11347_s5] sm:$0xff]  }
 0x305   : > { %11642 = vst [vmem:[#allocation15_spill] sm:$0xff] %v10193_v16  ;;  %v7382_v13 = vadd.f32 %v4045_v44, %v11643_v7  ;;  %vm11644_vm14 = vcmask 130048   ;;  %8137 = vpow2.f32 %v4299_v15  ;;  %v10200_v1 = vadd.f32 %v9743_v59, %v4182_v58  ;;  %v8128_v8 = vpop.eup %8127  ;;  %7350 = vmatpush3.bf16.msra.mxu1 %v8100_v14 }
 0x306   : > { %v5200_v48 = vsel %vm11644_vm14, %v10165_v42, 0.0  ;;  %v4301_v52 = vmul.f32 1.442695, %v4256_v26  ;;  %v10205_v20 = vmul.u32.u64.low 4042322161, %v10170_v0  ;;  %v10206_v27 = vmul.u32.u64.high 4042322161, %v10170_v0, %v10205_v20  ;;  %v8130_v5 = vpop.eup %8129  ;;  %vm11645_vm9 = vmmov %vm11644_vm14  ;;  %v11650_v42 = vld [vmem:[#allocation11_spill] sm:$0xff] }
 0x307   : > { %v4183_v21 = vmul.f32 %v7382_v13, %v9717_v10  ;;  %v5199_v53 = vsel %vm11645_vm9, %v10174_v60, 0.0  ;;  %vm11646_vm14 = vmmov %vm11645_vm9  ;;  %v4419_v26 = vmul.f32 %v8126_v6, %v9924_v35  ;;  %v4257_v44 = vsub.f32 0.0, %v10200_v1  ;;  %v11648_v20 = vld [vmem:[#allocation18_spill] sm:$0xff] }
 0x308   : > { %v5202_v15 = vsel %vm11646_vm14, %v10193_v16, 0.0  ;;  %v10218_v58 = vpop.f32.mrb[40].mxu1  ;;  %v5201_v7 = vadd.f32 %v5200_v48, %v5199_v53  ;;  %v10222_v13 = vsel %vm10123_vm6, %v4418_v54, 0.0  ;;  %vm11649_vm10 = vnez %v11648_v20  ;;  %v11651_v0 = vld [vmem:[#allocation6_spill] sm:$0xff]  ;;  %v4050_v6 = vpop.f32.mrb[28].mxu0  ;;  %v11655_v53 = vld [vmem:[#allocation12_spill] sm:$0xff] }
 0x309   : > { %11647 = vst [vmem:[#allocation9_spill] sm:$0xff] %v10222_v13  ;;  %v11652_v3 = vsel %vm11649_vm10, %v11650_v42, %v11651_v0  ;;  %v10234_v35 = vadd.f32 %v9743_v59, %v4183_v21  ;;  %v7043_v16 = vpop.f32.mrb[41].mxu1  ;;  %v4798_v48 = vshrl.u32 %v10116_v30, 4  ;;  %v4355_v46 = vadd.f32 1.0, %v8128_v8  ;;  %v7311_v20 = vpop.f32.mrb[29].mxu0 }
 0x30a   : > { %vm10229_vm9 = vcmp.lt.s32.totalorder %v11652_v3, 16  ;;  %v4303_v54 = vmul.f32 1.442695, %v4257_v44  ;;  %v7383_v12 = vadd.f32 %v4050_v6, %v11655_v53  ;;  %v10238_v11 = vpop.f32.mrb[42].mxu1  ;;  %v10241_v3 = vadd.s32 17, %v10133_v2  ;;  %v4053_v30 = vpop.f32.mrb[30].mxu0 }
 0x30b   : > { %v11657_v42 = vmov 0.0   ;;  %v5203_v0 = vadd.f32 %v5202_v15, %v5201_v7  ;;  %v4420_v21 = vmul.f32 %v8130_v5, %v9947_v56  ;;  %8139 = vpow2.f32 %v4301_v52  ;;  %v7044_v14 = vpop.f32.mrb[43].mxu1  ;;  %v8132_v44 = vpop.eup %8131  ;;  %v11663_v52 = vld [vmem:[#allocation19_spill] sm:$0xff]  ;;  %v11665_v5 = vld [vmem:[#allocation13_spill] sm:$0xff]  ;;  %v11666_v15 = vld [vmem:[#allocation8_spill] sm:$0xff] }
 0x30c   : > { %11656 = vst [vmem:[#allocation5_spill] sm:$0xff] %v10241_v3  ;;  %7355 = vmatprep.subr.bf16.mxu1 %v11657_v42  ;;  %v4258_v16 = vsub.f32 0.0, %v10234_v35  ;;  %vm11658_vm6 = vcmp.lt.s32.totalorder %v10108_v63, 0  ;;  %v11659_v8 = vmov 0  ;;  %v5204_v6 = vsel %vm11646_vm14, %v10222_v13, 0.0  ;;  %v11670_v14 = vld [vmem:[#allocation14_spill] sm:$0xff]  ;;  %v8134_v34 = vpop.eup %8133 }
 0x30d   : > { %vm10250_vm10 = vmand %vm11658_vm6, %vm4884_vm1  ;;  %v10258_v56 = vsel %vm10153_vm0, %v4419_v26, 0.0  ;;  %vm11664_vm11 = vnez %v11663_v52  ;;  %v4184_v20 = vmul.f32 %v7383_v12, %v9717_v10  ;;  %v7384_v42 = vadd.f32 %v4053_v30, %v11670_v14  ;;  %v7312_v51 = vpop.f32.mrb[31].mxu0  ;;  %v11697_v3 = vld [vmem:[#allocation26_spill] sm:$0xff] }
 0x30e   : > { %v11660_v8 = vsel %vm10250_vm10, 4294967295, %v11659_v8  ;;  %11662 = vst [vmem:[#allocation18_spill] sm:$0xff] %v10258_v56  ;;  %v11667_v7 = vsel %vm11664_vm11, %v11665_v5, %v11666_v15  ;;  %8141 = vpow2.f32 %v4303_v54  ;;  %v4305_v13 = vmul.f32 1.442695, %v4258_v16  ;;  %vm11677_vm6 = vmmov %vm11646_vm14 }
 0x30f   : > { %11661 = vst [vmem:[#allocation7_spill] sm:$0xff] %v11660_v8  ;;  %vm10265_vm13 = vcmp.lt.s32.totalorder %v11667_v7, 16  ;;  %v4799_v23 = vmul.u32 17, %v4798_v48  ;;  %v10272_v26 = vadd.s32 248, %v9184_v22  ;;  %8143 = vrcp.f32 %v4355_v46  ;;  %v8136_v48 = vpop.eup %8135 }
 0x310   : > { %v10275_v52 = vadd.f32 %v9743_v59, %v4184_v20  ;;  %v4185_v5 = vmul.f32 %v7384_v42, %v9717_v10  ;;  %vm11672_vm1 = vcmp.ne.s32.totalorder %v10133_v2, 0  ;;  %vm11673_vm0 = vcmp.lt.s32.totalorder %v10133_v2, 0  ;;  %v8138_v30 = vpop.eup %8137  ;;  %v10301_v14 = vpop.f32.mrb[44].mxu1  ;;  %v11695_v2 = vld [vmem:[#allocation30_spill] sm:$0xff] }
 0x311   : > { %11671 = vst [vmem:[#allocation11_spill] sm:$0xff] %v10272_v26  ;;  %vm10286_vm11 = vmand %vm11673_vm0, %vm11672_vm1  ;;  %v11674_v51 = vmov 0  ;;  %v5205_v46 = vadd.f32 %v5204_v6, %v5203_v0  ;;  %v5206_v54 = vsel %vm11677_vm6, %v10258_v56, 0.0  ;;  %v10294_v42 = vsel %vm10181_vm12, %v4420_v21, 0.0  ;;  %v4058_v0 = vpop.f32.mrb[32].mxu0  ;;  %v7047_v6 = vpop.f32.mrb[45].mxu1 }
 0x312   : > { %v11675_v51 = vsel %vm10286_vm11, 4294967295, %v11674_v51  ;;  %11678 = vst [vmem:[#allocation12_spill] sm:$0xff] %v10294_v42  ;;  %v4356_v16 = vadd.f32 1.0, %v8132_v44  ;;  %v4421_v15 = vmul.f32 %v8134_v34, %v9977_v55  ;;  %8145 = vpow2.f32 %v4305_v13  ;;  %v10315_v13 = vld [vmem:[%s9570_s12 + $0x48] sm:$0xf]  ;;  %v11679_v56 = vld [vmem:[#allocation22_spill] sm:$0xff]  ;;  %vm11680_vm12 = vmmov %vm11677_vm6 }
 0x313   : > { %11676 = vst [vmem:[#allocation6_spill] sm:$0xff] %v11675_v51  ;;  %v4259_v7 = vsub.f32 0.0, %v10275_v52  ;;  %v10299_v20 = vadd.f32 %v9743_v59, %v4185_v5  ;;  %v10308_v21 = vsub.s32 %v10076_v9, %v4799_v23  ;;  %v5207_v44 = vadd.f32 %v5206_v54, %v5205_v46  ;;  %v7315_v63 = vpop.f32.mrb[33].mxu0  ;;  %v10319_v31 = vpop.f32.mrb[46].mxu1  ;;  %v11682_v54 = vld [vmem:[#allocation21_spill] sm:$0xff] }
 0x314   : > { %v10311_v55 = vmul.u32.u64.low 4042322161, %v10272_v26  ;;  %v10312_v34 = vmul.u32.u64.high 4042322161, %v10272_v26, %v10311_v55  ;;  %v7385_v6 = vadd.f32 %v4058_v0, %v11679_v56  ;;  %v5208_v45 = vsel %vm11680_vm12, %v10294_v42, 0.0  ;;  %v4061_v26 = vpop.f32.mrb[34].mxu0  ;;  %v11685_v56 = vld [vmem:[#allocation10_spill] sm:$0xff]  ;;  %vm11692_vm12 = vmmov %vm11677_vm6 }
 0x315   : > { %v4307_v5 = vmul.f32 1.442695, %v4259_v7  ;;  %v4260_v12 = vsub.f32 0.0, %v10299_v20  ;;  %v4422_v9 = vmul.f32 %v8136_v48, %v9994_v43  ;;  %8147 = vrcp.f32 %v4356_v16  ;;  %v7048_v55 = vpop.f32.mrb[47].mxu1  ;;  %v11684_v7 = vld [vmem:[#allocation16_spill] sm:$0xff]  ;;  %v7316_v48 = vpop.f32.mrb[35].mxu0 }
 0x316   : > { %v4357_v23 = vadd.f32 1.0, %v8138_v30  ;;  %v10326_v46 = vsel %vm10229_vm9, %v4421_v15, 0.0  ;;  %vm11683_vm14 = vnez %v11682_v54  ;;  %v4186_v43 = vmul.f32 %v7385_v6, %v9717_v10  ;;  %v8140_v16 = vpop.eup %8139  ;;  %v11689_v30 = vld [vmem:[#allocation25_spill] sm:$0xff] }
 0x317   : > { %11681 = vst [vmem:[#allocation19_spill] sm:$0xff] %v10326_v46  ;;  %v11686_v63 = vsel %vm11683_vm14, %v11684_v7, %v11685_v56  ;;  %8149 = vpow2.f32 %v4307_v5  ;;  %v4309_v42 = vmul.f32 1.442695, %v4260_v12  ;;  %v7386_v55 = vadd.f32 %v4061_v26, %v11689_v30 }
 0x318   : > { %vm10333_vm1 = vcmp.lt.s32.totalorder %v11686_v63, 16  ;;  %vm4886_vm9 = vcmp.ne.s32.totalorder %v10308_v21, 0  ;;  %v4809_v60 = vshrl.u32 %v10188_v38, 4  ;;  %v5209_v54 = vadd.f32 %v5208_v45, %v5207_v44  ;;  %v8142_v5 = vpop.eup %8141  ;;  %v10357_v63 = vpop.f32.mrb[48].mxu1 }
 0x319   : > { %v10343_v7 = vadd.f32 %v9743_v59, %v4186_v43  ;;  %vm4920_vm0 = vcmp.lt.s32.totalorder %v10308_v21, 0  ;;  %v10347_v12 = vadd.s32 17, %v10308_v21  ;;  %v5210_v6 = vsel %vm11677_vm6, %v10326_v46, 0.0  ;;  %v8144_v45 = vpop.eup %8143  ;;  %v4066_v53 = vpop.f32.mrb[36].mxu0 }
 0x31a   : > { %v10353_v26 = vsel %vm10265_vm13, %v4422_v9, 0.0  ;;  %8151 = vrcp.f32 %v4357_v23  ;;  %v4187_v38 = vmul.f32 %v7386_v55, %v9717_v10  ;;  %v4358_v44 = vadd.f32 1.0, %v8140_v16  ;;  %v7051_v9 = vpop.f32.mrb[49].mxu1  ;;  %vm11694_vm13 = vmmov %vm11677_vm6 }
 0x31b   : > { %11690 = vst [vmem:[#allocation13_spill] sm:$0xff] %v10353_v26  ;;  %8153 = vpow2.f32 %v4309_v42  ;;  %v4261_v56 = vsub.f32 0.0, %v10343_v7  ;;  %v11691_v43 = vunpack.c.l.bf16 %v9907_v49  ;;  %v4359_v30 = vadd.f32 1.0, %v8142_v5  ;;  %v11698_v49 = vld [vmem:[#allocation17_spill] sm:$0xff]  ;;  %v10378_v9 = vpop.f32.mrb[50].mxu1 }
 0x31c   : > { %v10363_v15 = vadd.f32 %v9743_v59, %v4187_v38  ;;  %v11693_v55 = vunpack.c.l.bf16 %v9920_v25  ;;  %v8146_v16 = vpop.eup %8145  ;;  %v5211_v46 = vadd.f32 %v5210_v6, %v5209_v54  ;;  %vm11696_vm14 = vnez %v11695_v2  ;;  %v11702_v6 = vld [vmem:[#allocation33_spill] sm:$0xff]  ;;  %v7052_v8 = vpop.f32.mrb[51].mxu1 }
 0x31d   : > { %v5325_v48 = vsel %vm11692_vm12, %v11691_v43, 0.0  ;;  %v11699_v51 = vsel %vm11696_vm14, %v11697_v3, %v11698_v49  ;;  %v4311_v38 = vmul.f32 1.442695, %v4261_v56  ;;  %v7319_v43 = vpop.f32.mrb[37].mxu0  ;;  %v7387_v2 = vadd.f32 %v4066_v53, %v11702_v6  ;;  %v11703_v56 = vld [vmem:[#allocation39_spill] sm:$0xff]  ;;  %vm11707_vm14 = vmmov %vm11692_vm12  ;;  %v11708_v6 = vld [vmem:[#allocation28_spill] sm:$0xff] }
 0x31e   : > { %v5326_v23 = vadd.f32 %v5325_v48, %v10099_v4  ;;  %v5327_v42 = vsel %vm11694_vm13, %v11693_v55, 0.0  ;;  %vm10374_vm6 = vcmp.lt.s32.totalorder %v11699_v51, 16  ;;  %v4810_v4 = vmul.u32 17, %v4809_v60  ;;  %v4069_v55 = vpop.f32.mrb[38].mxu0  ;;  %vm10391_vm13 = vmand %vm4920_vm0, %vm4886_vm9 }
 0x31f   : > { %v4423_v48 = vmul.f32 %v8144_v45, %v10026_v32  ;;  %v4262_v54 = vsub.f32 0.0, %v10363_v15  ;;  %v5212_v51 = vsel %vm11692_vm12, %v10353_v26, 0.0  ;;  %8155 = vrcp.f32 %v4358_v44  ;;  %v7320_v43 = vpop.f32.mrb[39].mxu0  ;;  %v8148_v45 = vpop.eup %8147  ;;  %vm11714_vm0 = vmmov %vm11692_vm12 }
 0x320   : > { %v5328_v3 = vadd.f32 %v5327_v42, %v5326_v23  ;;  %v7388_v49 = vadd.f32 %v4069_v55, %v11703_v56  ;;  %v11706_v60 = vunpack.c.l.bf16 %v9974_v28  ;;  %8157 = vrcp.f32 %v4359_v30  ;;  %v11709_v55 = vld [vmem:[#allocation20_spill] sm:$0xff] }
 0x321   : > { %v4360_v53 = vadd.f32 1.0, %v8146_v16  ;;  %v4188_v44 = vmul.f32 %v7387_v2, %v9717_v10  ;;  %v8150_v42 = vpop.eup %8149  ;;  %v11710_v56 = vsel %vm9596_vm2, %v11708_v6, %v11709_v55  ;;  %8159 = vpow2.f32 %v4311_v38  ;;  %vm11716_vm2 = vmmov %vm11714_vm0 }
 0x322   : > { %v5329_v8 = vsel %vm11707_vm14, %v11706_v60, 0.0  ;;  %vm10404_vm9 = vcmp.lt.s32.totalorder %v11710_v56, 16  ;;  %v4313_v28 = vmul.f32 1.442695, %v4262_v54  ;;  %v4189_v60 = vmul.f32 %v7388_v49, %v9717_v10  ;;  %v4074_v56 = vpop.f32.mrb[40].mxu0 }
 0x323   : > { %v5330_v23 = vadd.f32 %v5329_v8, %v5328_v3  ;;  %v11713_v30 = vunpack.c.l.bf16 %v9997_v33  ;;  %v10414_v2 = vsel %vm10333_vm1, %v4423_v48, 0.0  ;;  %v10417_v37 = vadd.f32 %v9743_v59, %v4188_v44  ;;  %v10427_v33 = vpop.f32.mrb[52].mxu1  ;;  %v7323_v38 = vpop.f32.mrb[41].mxu0  ;;  %vm11718_vm1 = vmmov %vm11714_vm0 }
 0x324   : > { %11715 = vst [vmem:[#allocation8_spill] sm:$0xff] %v10414_v2  ;;  %v4361_v54 = vadd.f32 1.0, %v8150_v42  ;;  %v10425_v49 = vadd.f32 %v9743_v59, %v4189_v60  ;;  %v10430_v0 = vsub.s32 %v10136_v62, %v4810_v4  ;;  %v8152_v8 = vpop.eup %8151  ;;  %v5213_v44 = vadd.f32 %v5212_v51, %v5211_v46  ;;  %v11720_v51 = vld [vmem:[#allocation31_spill] sm:$0xff] }
 0x325   : > { %v5331_v16 = vsel %vm11714_vm0, %v11713_v30, 0.0  ;;  %v4424_v6 = vmul.f32 %v8148_v45, %v10062_v61  ;;  %8161 = vrcp.f32 %v4360_v53  ;;  %v4263_v55 = vsub.f32 0.0, %v10417_v37  ;;  %v7055_v30 = vpop.f32.mrb[53].mxu1  ;;  %v8154_v3 = vpop.eup %8153  ;;  %v11721_v45 = vld [vmem:[#allocation23_spill] sm:$0xff] }
 0x326   : > { %v5332_v48 = vadd.f32 %v5331_v16, %v5330_v23  ;;  %v5214_v42 = vsel %vm11716_vm2, %v10414_v2, 0.0  ;;  %8163 = vpow2.f32 %v4313_v28  ;;  %v7389_v60 = vadd.f32 %v4074_v56, %v10218_v58  ;;  %v10437_v62 = vpop.f32.mrb[54].mxu1  ;;  %v11726_v28 = vld [vmem:[#allocation36_spill] sm:$0xff]  ;;  %v10555_v23 = vld [vmem:[%s11346_s4] ss:$0 sm:$0xff]  ;;  %v11785_v2 = vld [vmem:[#allocation43_spill] sm:$0xff] }
 0x327   : > { %v11717_v4 = vunpack.c.l.bf16 %v10014_v19  ;;  %v11722_v53 = vsel %vm9619_vm8, %v11720_v51, %v11721_v45  ;;  %v11727_v58 = vld [vmem:[#allocation24_spill] sm:$0xff]  ;;  %v4315_v19 = vmul.f32 1.442695, %v4263_v55  ;;  %v4264_v30 = vsub.f32 0.0, %v10425_v49  ;;  %v7056_v61 = vpop.f32.mrb[55].mxu1  ;;  %vm11732_vm8 = vmmov %vm11714_vm0 }
 0x328   : > { %vm10447_vm12 = vcmp.lt.s32.totalorder %v11722_v53, 16  ;;  %v11728_v38 = vsel %vm9629_vm7, %v11726_v28, %v11727_v58  ;;  %v11731_v45 = vunpack.c.l.bf16 %v10031_v17  ;;  %8165 = vrcp.f32 %v4361_v54  ;;  %vm11734_vm7 = vmmov %vm11714_vm0  ;;  %v5183_v17 = vld [vmem:[%s9570_s12 + $0x4c] sm:$0xf] }
 0x329   : > { %v5333_v46 = vsel %vm11718_vm1, %v11717_v4, 0.0  ;;  %vm10456_vm14 = vcmp.lt.s32.totalorder %v11728_v38, 16  ;;  %v4077_v4 = vpop.f32.mrb[42].mxu0  ;;  %v4190_v16 = vmul.f32 %v7389_v60, %v9717_v10  ;;  %v11733_v38 = vunpack.c.l.bf16 %v10037_v39  ;;  %v8156_v61 = vpop.eup %8155  ;;  %vm11745_vm1 = vmmov %vm11714_vm0 }
 0x32a   : > { %v5334_v51 = vadd.f32 %v5333_v46, %v5332_v48  ;;  %v5335_v53 = vsel %vm11732_vm8, %v11731_v45, 0.0  ;;  %v7390_v28 = vadd.f32 %v4077_v4, %v10238_v11  ;;  %v7324_v58 = vpop.f32.mrb[43].mxu0  ;;  %v10471_v55 = vsel %vm10374_vm6, %v4424_v6, 0.0  ;;  %v8158_v45 = vpop.eup %8157  ;;  %vm11748_vm8 = vmmov %vm11714_vm0 }
 0x32b   : > { %v5337_v25 = vsel %vm11734_vm7, %v11733_v38, 0.0  ;;  %11735 = vst [vmem:[#allocation14_spill] sm:$0xff] %v10471_v55  ;;  %v4425_v48 = vmul.f32 %v8152_v8, %v10128_v29  ;;  %8167 = vpow2.f32 %v4315_v19  ;;  %v4362_v54 = vadd.f32 1.0, %v8154_v3  ;;  %v8160_v19 = vpop.eup %8159  ;;  %v10502_v58 = vpop.f32.mrb[56].mxu1 }
 0x32c   : > { %v5336_v46 = vadd.f32 %v5335_v53, %v5334_v51  ;;  %v10476_v60 = vadd.f32 %v9743_v59, %v4190_v16  ;;  %v4191_v11 = vmul.f32 %v7390_v28, %v9717_v10  ;;  %v11736_v39 = vunpack.c.l.bf16 %v10139_v41  ;;  %v11738_v53 = vld [vmem:[#allocation40_spill] sm:$0xff]  ;;  %v11740_v10 = vld [vmem:[#allocation37_spill] sm:$0xff]  ;;  %v11741_v16 = vld [vmem:[#allocation27_spill] sm:$0xff] }
 0x32d   : > { %v4317_v5 = vmul.f32 1.442695, %v4264_v30  ;;  %v11737_v6 = vshrl.u32 %v10206_v27, 4  ;;  %v10487_v8 = vadd.s32 256, %v9184_v22  ;;  %v5215_v51 = vadd.f32 %v5214_v42, %v5213_v44 }
 0x32e   : > { %v5339_v4 = vsel %vm11714_vm0, %v11736_v39, 0.0  ;;  %v5338_v3 = vadd.f32 %v5337_v25, %v5336_v46  ;;  %vm11739_vm6 = vnez %v11738_v53  ;;  %v4265_v27 = vsub.f32 0.0, %v10476_v60  ;;  %v4082_v46 = vpop.f32.mrb[44].mxu0  ;;  %v7059_v39 = vpop.f32.mrb[57].mxu1 }
 0x32f   : > { %v10484_v29 = vmul.u32 17, %v11737_v6  ;;  %v11742_v41 = vsel %vm11739_vm6, %v11740_v10, %v11741_v16  ;;  %v10500_v30 = vadd.f32 %v9743_v59, %v4191_v11  ;;  %v5291_v38 = vunpack.c.l.bf16 %v5183_v17  ;;  %v5184_v6 = vld [vmem:[%s9570_s12 + $0x50] sm:$0xf]  ;;  %v7327_v11 = vpop.f32.mrb[45].mxu0  ;;  %v10513_v16 = vpop.f32.mrb[58].mxu1  ;;  %v11753_v39 = vld [vmem:[#allocation29_spill] sm:$0xff]  ;;  %vm11759_vm6 = vmmov %vm11745_vm1 }
 0x330   : > { %vm10494_vm2 = vcmp.lt.s32.totalorder %v11742_v41, 16  ;;  %v5216_v25 = vsel %vm11745_vm1, %v10471_v55, 0.0  ;;  %v10508_v44 = vsel %vm10404_vm9, %v4425_v48, 0.0  ;;  %v4426_v42 = vmul.f32 %v8156_v61, %v10144_v50  ;;  %v8162_v43 = vpop.eup %8161  ;;  %vm11749_vm9 = vmmov %vm11714_vm0 }
 0x331   : > { %11746 = vst [vmem:[#allocation22_spill] sm:$0xff] %v10508_v44  ;;  %v5340_v53 = vadd.f32 %v5339_v4, %v5338_v3  ;;  %v4427_v10 = vmul.f32 %v8158_v45, %v10200_v1  ;;  %8169 = vrcp.f32 %v4362_v54  ;;  %v4319_v59 = vmul.f32 1.442695, %v4265_v27  ;;  %v4085_v4 = vpop.f32.mrb[46].mxu0  ;;  %v7060_v3 = vpop.f32.mrb[59].mxu1  ;;  %v11750_v27 = vld [vmem:[#allocation41_spill] sm:$0xff] }
 0x332   : > { %v11747_v17 = vunpack.c.l.bf16 %v10315_v13  ;;  %v4363_v48 = vadd.f32 1.0, %v8160_v19  ;;  %8171 = vpow2.f32 %v4317_v5  ;;  %v4266_v50 = vsub.f32 0.0, %v10500_v30  ;;  %v8164_v1 = vpop.eup %8163  ;;  %v11752_v13 = vld [vmem:[#allocation38_spill] sm:$0xff]  ;;  %v10539_v3 = vld [vmem:[%s9570_s12 + $0x54] sm:$0xf] }
 0x333   : > { %v7391_v61 = vadd.f32 %v4082_v46, %v10301_v14  ;;  %v5217_v54 = vadd.f32 %v5216_v25, %v5215_v51  ;;  %v5218_v45 = vsel %vm11749_vm9, %v10508_v44, 0.0  ;;  %vm11751_vm7 = vnez %v11750_v27  ;;  %v10535_v51 = vld [vmem:[%s11345_s3] ss:$0 sm:$0xff]  ;;  %vm11769_vm9 = vmmov %vm11759_vm6 }
 0x334   : > { %v5341_v41 = vsel %vm11748_vm8, %v11747_v17, 0.0  ;;  %v11754_v11 = vsel %vm11751_vm7, %v11752_v13, %v11753_v39  ;;  %v7392_v5 = vadd.f32 %v4085_v4, %v10319_v31  ;;  %v7328_v17 = vpop.f32.mrb[47].mxu0  ;;  %v5292_v14 = vunpack.c.l.bf16 %v5184_v6  ;;  %v8166_v13 = vpop.eup %8165  ;;  %vm11768_vm8 = vmmov %vm11759_vm6 }
 0x335   : > { %vm10527_vm0 = vcmp.lt.s32.totalorder %v11754_v11, 16  ;;  %8173 = vpow2.f32 %v4319_v59  ;;  %v4321_v46 = vmul.f32 1.442695, %v4266_v50  ;;  %v4192_v25 = vmul.f32 %v10535_v51, %v7391_v61  ;;  %v8168_v50 = vpop.eup %8167 }
 0x336   : > { %v5342_v27 = vadd.f32 %v5341_v41, %v5340_v53  ;;  %v10543_v39 = vsel %vm10447_vm12, %v4426_v42, 0.0  ;;  %v10547_v31 = vsel %vm10456_vm14, %v4427_v10, 0.0  ;;  %v4193_v6 = vmul.f32 %v10535_v51, %v7392_v5  ;;  %vm11760_vm12 = vmmov %vm11745_vm1 }
 0x337   : > { %11757 = vst [vmem:[#allocation21_spill] sm:$0xff] %v10543_v39  ;;  %11758 = vst [vmem:[#allocation16_spill] sm:$0xff] %v10547_v31  ;;  %v5343_v59 = vsel %vm11759_vm6, %v5291_v38, 0.0  ;;  %v4428_v4 = vmul.f32 %v8162_v43, %v10234_v35  ;;  %8175 = vrcp.f32 %v4363_v48  ;;  %v4364_v61 = vadd.f32 1.0, %v8164_v1  ;;  %v10563_v38 = vpop.f32.mrb[60].mxu1  ;;  %v11761_v43 = vld [vmem:[#allocation44_spill] sm:$0xff] }
 0x338   : > { %v10558_v42 = vadd.f32 %v10555_v23, %v4192_v25  ;;  %v5219_v56 = vadd.f32 %v5218_v45, %v5217_v54  ;;  %v4365_v53 = vadd.f32 1.0, %v8168_v50  ;;  %v10561_v10 = vadd.f32 %v10555_v23, %v4193_v6  ;;  %v11763_v48 = vld [vmem:[#allocation42_spill] sm:$0xff]  ;;  %v11764_v1 = vld [vmem:[#allocation32_spill] sm:$0xff]  ;;  %v4090_v45 = vpop.f32.mrb[48].mxu0  ;;  %v7063_v17 = vpop.f32.mrb[61].mxu1 }
 0x339   : > { %v5293_v35 = vunpack.c.l.bf16 %v10539_v3  ;;  %v5220_v41 = vsel %vm11760_vm12, %v10543_v39, 0.0  ;;  %vm11762_vm14 = vnez %v11761_v43  ;;  %8177 = vpow2.f32 %v4321_v46  ;;  %v10579_v25 = vld [vmem:[%s9570_s12 + $0x58] sm:$0xf]  ;;  %vm11776_vm12 = vmmov %vm11759_vm6 }
 0x33a   : > { %v11765_v11 = vsel %vm11762_vm14, %v11763_v48, %v11764_v1  ;;  %v4267_v54 = vsub.f32 0.0, %v10558_v42  ;;  %v5344_v6 = vadd.f32 %v5343_v59, %v5342_v27  ;;  %v5222_v50 = vsel %vm11768_vm8, %v10547_v31, 0.0  ;;  %v7331_v48 = vpop.f32.mrb[49].mxu0  ;;  %v10585_v1 = vpop.f32.mrb[62].mxu1 }
 0x33b   : > { %vm10573_vm1 = vcmp.lt.s32.totalorder %v11765_v11, 16  ;;  %v4268_v43 = vsub.f32 0.0, %v10561_v10  ;;  %v7393_v39 = vadd.f32 %v4090_v45, %v10357_v63  ;;  %v5345_v11 = vsel %vm11769_vm9, %v5292_v14, 0.0  ;;  %v4093_v59 = vpop.f32.mrb[50].mxu0  ;;  %v7064_v44 = vpop.f32.mrb[63].mxu1 }
 0x33c   : > { %v10590_v46 = vsel %vm10494_vm2, %v4428_v4, 0.0  ;;  %v4429_v17 = vmul.f32 %v8166_v13, %v10275_v52  ;;  %8179 = vrcp.f32 %v4364_v61  ;;  %v4323_v27 = vmul.f32 1.442695, %v4267_v54  ;;  %v8170_v31 = vpop.eup %8169  ;;  %v7332_v48 = vpop.f32.mrb[51].mxu0  ;;  %v10610_v61 = vld [vmem:[%s9570_s12 + $0x5c] sm:$0xf] }
 0x33d   : > { %11770 = vst [vmem:[#allocation10_spill] sm:$0xff] %v10590_v46  ;;  %8181 = vrcp.f32 %v4365_v53  ;;  %v4325_v55 = vmul.f32 1.442695, %v4268_v43  ;;  %v4194_v63 = vmul.f32 %v10535_v51, %v7393_v39  ;;  %v7394_v45 = vadd.f32 %v4093_v59, %v10378_v9  ;;  %v8172_v14 = vpop.eup %8171  ;;  %11775 = vst [vmem:[#allocation25_spill] sm:$0xff] %v10610_v61  ;;  %v10624_v54 = vld [vmem:[%s9570_s12 + $0x60] sm:$0xf] }
 0x33e   : > { %v5221_v28 = vadd.f32 %v5220_v41, %v5219_v56  ;;  %vm11771_vm2 = vnez %v11551_v18  ;;  %8183 = vpow2.f32 %v4323_v27  ;;  %v5294_v44 = vunpack.c.l.bf16 %v10579_v25  ;;  %11779 = vst [vmem:[#allocation26_spill] sm:$0xff] %v10624_v54  ;;  %v4098_v19 = vpop.f32.mrb[52].mxu0  ;;  %v11803_v13 = vld [vmem:[#allocation51_spill] sm:$0xff] }
 0x33f   : > { %v11772_v52 = vsel %vm11771_vm2, %v9761_v40, %v9678_v57  ;;  %v5346_v4 = vadd.f32 %v5345_v11, %v5344_v6  ;;  %8185 = vpow2.f32 %v4325_v55  ;;  %v10606_v9 = vadd.f32 %v10555_v23, %v4194_v63  ;;  %v8174_v56 = vpop.eup %8173  ;;  %v10631_v11 = vpop.f32.mrb[64].mxu1 }
 0x340   : > { %vm10600_vm7 = vcmp.lt.s32.totalorder %v11772_v52, 16  ;;  %v4195_v39 = vmul.f32 %v10535_v51, %v7394_v45  ;;  %v5347_v18 = vsel %vm11759_vm6, %v5293_v35, 0.0  ;;  %v5223_v40 = vadd.f32 %v5222_v50, %v5221_v28  ;;  %v7335_v48 = vpop.f32.mrb[53].mxu0 }
 0x341   : > { %v5224_v57 = vsel %vm11776_vm12, %v10590_v46, 0.0  ;;  %v10617_v53 = vsel %vm10527_vm0, %v4429_v17, 0.0  ;;  %v11778_v55 = vshrl.u32 %v10312_v34, 4  ;;  %v4430_v6 = vmul.f32 %v8170_v31, %v10299_v20  ;;  %v8176_v27 = vpop.eup %8175  ;;  %v7067_v17 = vpop.f32.mrb[65].mxu1  ;;  %vm11780_vm0 = vmmov %vm11759_vm6  ;;  %v11782_v46 = vld [vmem:[#allocation47_spill] sm:$0xff] }
 0x342   : > { %11777 = vst [vmem:[#allocation30_spill] sm:$0xff] %v10617_v53  ;;  %v4366_v43 = vadd.f32 1.0, %v8172_v14  ;;  %v4269_v35 = vsub.f32 0.0, %v10606_v9  ;;  %v10629_v50 = vadd.f32 %v10555_v23, %v4195_v39  ;;  %v5295_v63 = vunpack.c.l.bf16 %v10610_v61  ;;  %v10639_v14 = vpop.f32.mrb[66].mxu1  ;;  %vm11781_vm14 = vmmov %vm11780_vm0  ;;  %v4101_v48 = vpop.f32.mrb[54].mxu0 }
 0x343   : > { %v10621_v41 = vmul.u32 17, %v11778_v55  ;;  %v10634_v59 = vmul.u32.u64.low 4042322161, %v10487_v8  ;;  %v10635_v34 = vmul.u32.u64.high 4042322161, %v10487_v8, %v10634_v59  ;;  %v5348_v45 = vadd.f32 %v5347_v18, %v5346_v4  ;;  %v8178_v39 = vpop.eup %8177  ;;  %vm11800_vm12 = vmmov %vm11780_vm0 }
 0x344   : > { %v4367_v20 = vadd.f32 1.0, %v8174_v56  ;;  %v4327_v31 = vmul.f32 1.442695, %v4269_v35  ;;  %v5296_v28 = vunpack.c.l.bf16 %v10624_v54  ;;  %v5349_v52 = vsel %vm11780_vm0, %v5294_v44, 0.0  ;;  %v11784_v59 = vld [vmem:[#allocation48_spill] sm:$0xff]  ;;  %v7068_v44 = vpop.f32.mrb[67].mxu1 }
 0x345   : > { %v5225_v55 = vadd.f32 %v5224_v57, %v5223_v40  ;;  %v5226_v17 = vsel %vm11781_vm14, %v10617_v53, 0.0  ;;  %vm11783_vm8 = vnez %v11782_v46  ;;  %v4270_v56 = vsub.f32 0.0, %v10629_v50  ;;  %v11790_v46 = vld [vmem:[#allocation49_spill] sm:$0xff]  ;;  %v11792_v53 = vld [vmem:[#allocation50_spill] sm:$0xff] }
 0x346   : > { %v11786_v4 = vsel %vm11783_vm8, %v11784_v59, %v11785_v2  ;;  %v7395_v35 = vadd.f32 %v4098_v19, %v10427_v33  ;;  %v10658_v40 = vsel %vm10573_vm1, %v4430_v6, 0.0  ;;  %v4431_v57 = vmul.f32 %v8176_v27, %v10343_v7  ;;  %v11793_v2 = vld [vmem:[#allocation45_spill] sm:$0xff]  ;;  %v7336_v19 = vpop.f32.mrb[55].mxu0  ;;  %v10672_v44 = vld [vmem:[%s9570_s12 + $0x64] sm:$0xf]  ;;  %v8180_v5 = vpop.eup %8179  ;;  %vm11798_vm1 = vmmov %vm11780_vm0 }
 0x347   : > { %vm10650_vm9 = vcmp.lt.s32.totalorder %v11786_v4, 16  ;;  %11789 = vst [vmem:[#allocation17_spill] sm:$0xff] %v10658_v40  ;;  %vm11791_vm2 = vnez %v11790_v46  ;;  %8187 = vrcp.f32 %v4366_v43  ;;  %v7396_v33 = vadd.f32 %v4101_v48, %v10437_v62  ;;  %11797 = vst [vmem:[#allocation33_spill] sm:$0xff] %v10672_v44  ;;  %v8182_v46 = vpop.eup %8181  ;;  %v4106_v48 = vpop.f32.mrb[56].mxu0 }
 0x348   : > { %v11794_v59 = vsel %vm11791_vm2, %v11792_v53, %v11793_v2  ;;  %8189 = vpow2.f32 %v4327_v31  ;;  %v4329_v6 = vmul.f32 1.442695, %v4270_v56  ;;  %v4196_v7 = vmul.f32 %v10535_v51, %v7395_v35  ;;  %vm11809_vm8 = vmmov %vm11780_vm0 }
 0x349   : > { %vm10666_vm6 = vcmp.lt.s32.totalorder %v11794_v59, 16  ;;  %v5350_v27 = vadd.f32 %v5349_v52, %v5348_v45  ;;  %8191 = vrcp.f32 %v4367_v20  ;;  %v4368_v26 = vadd.f32 1.0, %v8178_v39  ;;  %v8184_v59 = vpop.eup %8183 }
 0x34a   : > { %v4197_v53 = vmul.f32 %v10535_v51, %v7396_v33  ;;  %v5351_v2 = vsel %vm11798_vm1, %v5295_v63, 0.0  ;;  %8193 = vpow2.f32 %v4329_v6  ;;  %v10678_v62 = vadd.f32 %v10555_v23, %v4196_v7  ;;  %v8186_v56 = vpop.eup %8185 }
 0x34b   : > { %v10681_v43 = vadd.s32 17, %v10430_v0  ;;  %v5297_v31 = vunpack.c.l.bf16 %v10672_v44  ;;  %v5227_v45 = vadd.f32 %v5226_v17, %v5225_v55  ;;  %v10686_v20 = vsel %vm10600_vm7, %v4431_v57, 0.0  ;;  %v11801_v55 = vld [vmem:[#allocation52_spill] sm:$0xff]  ;;  %v11804_v17 = vld [vmem:[#allocation46_spill] sm:$0xff] }
 0x34c   : > { %11799 = vst [vmem:[#allocation39_spill] sm:$0xff] %v10686_v20  ;;  %v4369_v52 = vadd.f32 1.0, %v8184_v59  ;;  %v10689_v63 = vadd.f32 %v10555_v23, %v4197_v53  ;;  %v5228_v39 = vsel %vm11800_vm12, %v10658_v40, 0.0  ;;  %v4271_v35 = vsub.f32 0.0, %v10678_v62  ;;  %v7339_v40 = vpop.f32.mrb[57].mxu0  ;;  %vm11833_vm12 = vmmov %vm11780_vm0 }
 0x34d   : > { %v5352_v33 = vadd.f32 %v5351_v2, %v5350_v27  ;;  %v5353_v19 = vsel %vm11780_vm0, %v5296_v28, 0.0  ;;  %v4432_v6 = vmul.f32 %v8180_v5, %v10363_v15  ;;  %vm11802_vm14 = vnez %v11801_v55  ;;  %v10708_v27 = vld [vmem:[%s9570_s12 + $0x68] sm:$0xf]  ;;  %v4109_v55 = vpop.f32.mrb[58].mxu0 }
 0x34e   : > { %v11805_v57 = vsel %vm11802_vm14, %v11803_v13, %v11804_v17  ;;  %8195 = vrcp.f32 %v4368_v26  ;;  %v4272_v53 = vsub.f32 0.0, %v10689_v63  ;;  %v7397_v59 = vadd.f32 %v4106_v48, %v10502_v58  ;;  %11808 = vst [vmem:[#allocation28_spill] sm:$0xff] %v10708_v27  ;;  %v11811_v17 = vld [vmem:[#allocation55_spill] sm:$0xff] }
 0x34f   : > { %vm10701_vm7 = vcmp.lt.s32.totalorder %v11805_v57, 16  ;;  %v5230_v15 = vsel %vm11809_vm8, %v10686_v20, 0.0  ;;  %v4433_v28 = vmul.f32 %v8182_v46, %v10417_v37  ;;  %v4370_v5 = vadd.f32 1.0, %v8186_v56  ;;  %v11812_v57 = vld [vmem:[#allocation53_spill] sm:$0xff]  ;;  %v7340_v37 = vpop.f32.mrb[59].mxu0 }
 0x350   : > { %v4331_v2 = vmul.f32 1.442695, %v4271_v35  ;;  %v11813_v26 = vsel %vm9886_vm5, %v11811_v17, %v11812_v57  ;;  %8197 = vrcp.f32 %v4369_v52  ;;  %v4333_v58 = vmul.f32 1.442695, %v4272_v53  ;;  %vm11818_vm5 = vmmov %vm11780_vm0  ;;  %v4114_v37 = vpop.f32.mrb[60].mxu0 }
 0x351   : > { %vm10718_vm2 = vcmp.lt.s32.totalorder %v11813_v26, 16  ;;  %v4198_v40 = vmul.f32 %v10535_v51, %v7397_v59  ;;  %v7398_v48 = vadd.f32 %v4109_v55, %v10513_v16  ;;  %v5229_v46 = vadd.f32 %v5228_v39, %v5227_v45  ;;  %v8188_v13 = vpop.eup %8187  ;;  %v10734_v59 = vld [vmem:[%s9570_s12 + $0x6c] sm:$0xf]  ;;  %v11821_v55 = vld [vmem:[#allocation54_spill] sm:$0xff] }
 0x352   : > { %8199 = vpow2.f32 %v4331_v2  ;;  %v5298_v56 = vunpack.c.l.bf16 %v10708_v27  ;;  %v5354_v35 = vadd.f32 %v5353_v19, %v5352_v33  ;;  %v10727_v17 = vsel %vm10650_vm9, %v4432_v6, 0.0  ;;  %11817 = vst [vmem:[#allocation34_spill] sm:$0xff] %v10734_v59  ;;  %v8190_v16 = vpop.eup %8189  ;;  %v11820_v2 = vld [vmem:[#allocation58_spill] sm:$0xff] }
 0x353   : > { %11816 = vst [vmem:[#allocation20_spill] sm:$0xff] %v10727_v17  ;;  %8201 = vpow2.f32 %v4333_v58  ;;  %v10730_v52 = vadd.f32 %v10555_v23, %v4198_v40  ;;  %v4199_v53 = vmul.f32 %v10535_v51, %v7398_v48  ;;  %v5231_v45 = vadd.f32 %v5230_v15, %v5229_v46  ;;  %v8192_v19 = vpop.eup %8191  ;;  %v10758_v58 = vld [vmem:[%s9570_s12 + $0x70] sm:$0xf]  ;;  %v10764_v46 = vld [vmem:[%s9570_s12 + $0x74] sm:$0xf] }
 0x354   : > { %v10738_v39 = vsel %vm10666_vm6, %v4433_v28, 0.0  ;;  %v10741_v18 = vadd.s32 264, %v9184_v22  ;;  %v5355_v33 = vsel %vm11818_vm5, %v5297_v31, 0.0  ;;  %v11822_v57 = vsel %vm9895_vm4, %v11820_v2, %v11821_v55  ;;  %v8194_v31 = vpop.eup %8193  ;;  %vm11825_vm6 = vmmov %vm11780_vm0  ;;  %v11828_v2 = vld [vmem:[#allocation60_spill] sm:$0xff] }
 0x355   : > { %vm10749_vm9 = vcmp.lt.s32.totalorder %v11822_v57, 16  ;;  %8203 = vrcp.f32 %v4370_v5  ;;  %v4371_v15 = vadd.f32 1.0, %v8190_v16  ;;  %v4273_v4 = vsub.f32 0.0, %v10730_v52  ;;  %vm11826_vm4 = vmmov %vm11780_vm0 }
 0x356   : > { %v10755_v28 = vadd.f32 %v10555_v23, %v4199_v53  ;;  %v5232_v40 = vsel %vm11825_vm6, %v10727_v17, 0.0  ;;  %v4434_v48 = vmul.f32 %v8188_v13, %v10425_v49  ;;  %v5299_v6 = vunpack.c.l.bf16 %v10734_v59  ;;  %v11829_v53 = vld [vmem:[#allocation56_spill] sm:$0xff]  ;;  %v7343_v49 = vpop.f32.mrb[61].mxu0  ;;  %vm11839_vm14 = vmmov %vm11826_vm4 }
 0x357   : > { %v5357_v5 = vsel %vm11826_vm4, %v5298_v56, 0.0  ;;  %v11830_v55 = vsel %vm9935_vm3, %v11828_v2, %v11829_v53  ;;  %8205 = vrcp.f32 %v4371_v15  ;;  %v4372_v17 = vadd.f32 1.0, %v8194_v31  ;;  %v4117_v54 = vpop.f32.mrb[62].mxu0  ;;  %v11834_v31 = vld [vmem:[#allocation62_spill] sm:$0xff]  ;;  %vm11845_vm5 = vmmov %vm11826_vm4 }
 0x358   : > { %vm10773_vm1 = vcmp.lt.s32.totalorder %v11830_v55, 16  ;;  %v4335_v20 = vmul.f32 1.442695, %v4273_v4  ;;  %v5356_v13 = vadd.f32 %v5355_v33, %v5354_v35  ;;  %v5234_v27 = vsel %vm11833_vm12, %v10738_v39, 0.0  ;;  %v8196_v2 = vpop.eup %8195  ;;  %v7344_v61 = vpop.f32.mrb[63].mxu0  ;;  %vm11847_vm6 = vmmov %vm11826_vm4 }
 0x359   : > { %v4435_v59 = vmul.f32 %v8192_v19, %v10476_v60  ;;  %v4274_v56 = vsub.f32 0.0, %v10755_v28  ;;  %v7399_v16 = vadd.f32 %v4114_v37, %v10563_v38  ;;  %v5233_v53 = vadd.f32 %v5232_v40, %v5231_v45  ;;  %v11870_v61 = vld [vmem:[#allocation69_spill] sm:$0xff] }
 0x35a   : > { %v7400_v55 = vadd.f32 %v4117_v54, %v10585_v1  ;;  %v5300_v15 = vunpack.c.l.bf16 %v10758_v58  ;;  %v5301_v4 = vunpack.c.l.bf16 %v10764_v46  ;;  %v10787_v35 = vsel %vm10701_vm7, %v4434_v48, 0.0  ;;  %v8198_v19 = vpop.eup %8197  ;;  %v11841_v48 = vld [vmem:[#allocation63_spill] sm:$0xff] }
 0x35b   : > { %8207 = vpow2.f32 %v4335_v20  ;;  %v4337_v60 = vmul.f32 1.442695, %v4274_v56  ;;  %v4200_v33 = vmul.f32 %v10535_v51, %v7399_v16  ;;  %v5235_v38 = vadd.f32 %v5234_v27, %v5233_v53  ;;  %v4122_v56 = vpop.f32.mrb[64].mxu0 }
 0x35c   : > { %vm11835_vm3 = vnez %v11834_v31  ;;  %8209 = vrcp.f32 %v4372_v17  ;;  %v4201_v54 = vmul.f32 %v10535_v51, %v7400_v55  ;;  %v5358_v7 = vadd.f32 %v5357_v5, %v5356_v13  ;;  %v8200_v45 = vpop.eup %8199  ;;  %v11840_v17 = vld [vmem:[#allocation65_spill] sm:$0xff] }
 0x35d   : > { %v11836_v1 = vsel %vm11835_vm3, %v9971_v24, %v9917_v47  ;;  %v10802_v20 = vsel %vm10718_vm2, %v4435_v59, 0.0  ;;  %v4436_v27 = vmul.f32 %v8196_v2, %v10500_v30  ;;  %8211 = vpow2.f32 %v4337_v60  ;;  %v8202_v47 = vpop.eup %8201 }
 0x35e   : > { %vm10795_vm0 = vcmp.lt.s32.totalorder %v11836_v1, 16  ;;  %v10806_v40 = vadd.f32 %v10555_v23, %v4200_v33  ;;  %v5236_v24 = vsel %vm11839_vm14, %v10787_v35, 0.0  ;;  %v11842_v37 = vsel %vm10068_vm15, %v11840_v17, %v11841_v48  ;;  %vm11846_vm15 = vmmov %vm11826_vm4  ;;  %v7347_v33 = vpop.f32.mrb[65].mxu0 }
 0x35f   : > { %vm10815_vm7 = vcmp.lt.s32.totalorder %v11842_v37, 16  ;;  %v4373_v44 = vadd.f32 1.0, %v8200_v45  ;;  %vm4887_vm8 = vcmp.ne.s32.totalorder %v10430_v0, 0  ;;  %vm4921_vm2 = vcmp.lt.s32.totalorder %v10430_v0, 0  ;;  %v8204_v2 = vpop.eup %8203  ;;  %v11850_v45 = vld [vmem:[#allocation66_spill] sm:$0xff] }
 0x360   : > { %v10822_v30 = vadd.f32 %v10555_v23, %v4201_v54  ;;  %v5359_v59 = vsel %vm11845_vm5, %v5299_v6, 0.0  ;;  %v4437_v49 = vmul.f32 %v8198_v19, %v10558_v42  ;;  %v4374_v36 = vadd.f32 1.0, %v8202_v47  ;;  %v4125_v19 = vpop.f32.mrb[66].mxu0  ;;  %v11851_v47 = vld [vmem:[#allocation64_spill] sm:$0xff] }
 0x361   : > { %v4275_v13 = vsub.f32 0.0, %v10806_v40  ;;  %v5361_v16 = vsel %vm11846_vm15, %v5300_v15, 0.0  ;;  %v5238_v53 = vsel %vm11847_vm6, %v10802_v20, 0.0  ;;  %8213 = vrcp.f32 %v4373_v44  ;;  %v8206_v54 = vpop.eup %8205  ;;  %v11848_v15 = vld [vmem:[#allocation2_spill] sm:$0xff] }
 0x362   : > { %v4276_v55 = vsub.f32 0.0, %v10822_v30  ;;  %v7401_v60 = vadd.f32 %v4122_v56, %v10631_v11  ;;  %v5237_v31 = vadd.f32 %v5236_v24, %v5235_v38  ;;  %v10834_v42 = vsel %vm10749_vm9, %v4436_v27, 0.0  ;;  %v7348_v27 = vpop.f32.mrb[67].mxu0  ;;  %vm11855_vm9 = vmmov %vm11845_vm5 }
 0x363   : > { %v4339_v6 = vmul.f32 1.442695, %v4275_v13  ;;  %v5360_v1 = vadd.f32 %v5359_v59, %v5358_v7  ;;  %vm11849_vm4 = vnez %v11848_v15  ;;  %8215 = vrcp.f32 %v4374_v36  ;;  %v11857_v36 = vld [vmem:[#allocation68_spill] sm:$0xff]  ;;  %v11858_v13 = vld [vmem:[#allocation3_spill] sm:$0xff] }
 0x364   : > { %v11852_v17 = vsel %vm11849_vm4, %v11850_v45, %v11851_v47  ;;  %v4341_v11 = vmul.f32 1.442695, %v4276_v55  ;;  %v4202_v26 = vmul.f32 %v10535_v51, %v7401_v60  ;;  %v7402_v38 = vadd.f32 %v4125_v19, %v10639_v14  ;;  %v10966_v55 = vld [vmem:[%s9570_s12 + $0x84] sm:$0xf] }
 0x365   : > { %vm10841_vm12 = vcmp.lt.s32.totalorder %v11852_v17, 16  ;;  %v5239_v24 = vadd.f32 %v5238_v53, %v5237_v31  ;;  %v10849_v7 = vsel %vm10773_vm1, %v4437_v49, 0.0  ;;  %v4438_v37 = vmul.f32 %v8204_v2, %v10561_v10  ;;  %v10868_v10 = vld [vmem:[%s9570_s12 + $0x78] sm:$0xf]  ;;  %v8208_v49 = vpop.eup %8207  ;;  %vm11863_vm1 = vmmov %vm11845_vm5 }
 0x366   : > { %8217 = vpow2.f32 %v4339_v6  ;;  %v5240_v44 = vsel %vm11855_vm9, %v10834_v42, 0.0  ;;  %v11859_v56 = vsel %vm10250_vm10, %v11857_v36, %v11858_v13  ;;  %v10864_v14 = vadd.f32 %v10555_v23, %v4202_v26  ;;  %v8210_v31 = vpop.eup %8209  ;;  %vm11862_vm10 = vmmov %vm11845_vm5  ;;  %v11865_v17 = vld [vmem:[#allocation5_spill] sm:$0xff] }
 0x367   : > { %vm10859_vm3 = vcmp.lt.s32.totalorder %v11859_v56, 16  ;;  %8219 = vpow2.f32 %v4341_v11  ;;  %v4203_v57 = vmul.f32 %v10535_v51, %v7402_v38  ;;  %v4439_v2 = vmul.f32 %v8206_v54, %v10606_v9  ;;  %v8212_v51 = vpop.eup %8211  ;;  %v11866_v11 = vld [vmem:[#allocation67_spill] sm:$0xff] }
 0x368   : > { %v10872_v53 = vmul.u32.u64.low 4042322161, %v10741_v18  ;;  %v10873_v60 = vmul.u32.u64.high 4042322161, %v10741_v18, %v10872_v53  ;;  %v5362_v33 = vadd.f32 %v5361_v16, %v5360_v1  ;;  %v5242_v6 = vsel %vm11862_vm10, %v10849_v7, 0.0 }
 0x369   : > { %v4375_v19 = vadd.f32 1.0, %v8208_v49  ;;  %v4277_v15 = vsub.f32 0.0, %v10864_v14  ;;  %v10879_v45 = vadd.f32 %v10555_v23, %v4203_v57  ;;  %v5241_v47 = vadd.f32 %v5240_v44, %v5239_v24  ;;  %v11877_v57 = vld [vmem:[#allocation11_spill] sm:$0xff] }
 0x36a   : > { %v10883_v9 = vsel %vm10795_vm0, %v4438_v37, 0.0  ;;  %v5302_v54 = vunpack.c.l.bf16 %v10868_v10  ;;  %v5363_v16 = vsel %vm11863_vm1, %v5301_v4, 0.0  ;;  %v11867_v26 = vsel %vm10286_vm11, %v11865_v17, %v11866_v11  ;;  %vm10911_vm11 = vmand %vm4921_vm2, %vm4887_vm8 }
 0x36b   : > { %vm10894_vm14 = vcmp.lt.s32.totalorder %v11867_v26, 16  ;;  %8221 = vrcp.f32 %v4375_v19  ;;  %v4376_v38 = vadd.f32 1.0, %v8212_v51  ;;  %v10900_v27 = vsub.s32 %v11870_v61, %v10484_v29  ;;  %v10917_v29 = vld [vmem:[%s9570_s12 + $0x7c] sm:$0xf]  ;;  %v8214_v13 = vpop.eup %8213  ;;  %vm11873_vm0 = vmmov %vm11863_vm1  ;;  %v10950_v51 = vld [vmem:[%s9570_s12 + $0x80] sm:$0xf] }
 0x36c   : > { %v4343_v24 = vmul.f32 1.442695, %v4277_v15  ;;  %v5243_v37 = vadd.f32 %v5242_v6, %v5241_v47  ;;  %v10904_v4 = vsel %vm10815_vm7, %v4439_v2, 0.0  ;;  %v4440_v44 = vmul.f32 %v8210_v31, %v10629_v50  ;;  %vm11878_vm8 = vmmov %vm11873_vm0 }
 0x36d   : > { %v4278_v36 = vsub.f32 0.0, %v10879_v45  ;;  %v5244_v5 = vsel %vm11873_vm0, %v10883_v9, 0.0  ;;  %v11874_v50 = vsel %vm10391_vm13, %v10347_v12, %v10308_v21  ;;  %8223 = vrcp.f32 %v4376_v38  ;;  %v8216_v6 = vpop.eup %8215  ;;  %vm11879_vm13 = vmmov %vm11873_vm0 }
 0x36e   : > { %vm10926_vm7 = vcmp.lt.s32.totalorder %v11874_v50, 16  ;;  %v10932_v49 = vsub.s32 %v11877_v57, %v10621_v41  ;;  %v5364_v2 = vadd.f32 %v5363_v16, %v5362_v33  ;;  %v4441_v53 = vmul.f32 %v8214_v13, %v10678_v62  ;;  %vm11880_vm15 = vmmov %vm11873_vm0 }
 0x36f   : > { %8225 = vpow2.f32 %v4343_v24  ;;  %v4345_v31 = vmul.f32 1.442695, %v4278_v36  ;;  %v5365_v32 = vsel %vm11878_vm8, %v5302_v54, 0.0  ;;  %v5246_v21 = vsel %vm11879_vm13, %v10904_v4, 0.0  ;;  %vm11881_vm6 = vmmov %vm11873_vm0 }
 0x370   : > { %v5023_v12 = vsel %vm10911_vm11, %v10681_v43, %v10430_v0  ;;  %vm4888_vm2 = vcmp.ne.s32.totalorder %v10900_v27, 0  ;;  %v5303_v41 = vunpack.c.l.bf16 %v10917_v29  ;;  %v8218_v33 = vpop.eup %8217  ;;  %v5245_v19 = vadd.f32 %v5244_v5, %v5243_v37  ;;  %vm11882_vm9 = vmmov %vm11873_vm0 }
 0x371   : > { %v10946_v62 = vsel %vm10841_vm12, %v4440_v44, 0.0  ;;  %v4842_v15 = vshrl.u32 %v10635_v34, 4  ;;  %8227 = vpow2.f32 %v4345_v31  ;;  %v8220_v47 = vpop.eup %8219  ;;  %v4377_v54 = vadd.f32 1.0, %v8218_v33  ;;  %vm11887_vm1 = vmmov %vm11873_vm0 }
 0x372   : > { %vm4922_vm5 = vcmp.lt.s32.totalorder %v10900_v27, 0  ;;  %v4853_v0 = vshrl.u32 %v10873_v60, 4  ;;  %v5366_v43 = vadd.f32 %v5365_v32, %v5364_v2  ;;  %v5247_v16 = vadd.f32 %v5246_v21, %v5245_v19 }
 0x373   : > { %v10956_v1 = vsel %vm10859_vm3, %v4441_v53, 0.0  ;;  %v4442_v48 = vmul.f32 %v8216_v6, %v10689_v63  ;;  %v4378_v17 = vadd.f32 1.0, %v8220_v47  ;;  %v5248_v34 = vsel %vm11880_vm15, %v10946_v62, 0.0  ;;  %vm10981_vm3 = vmand %vm4922_vm5, %vm4888_vm2 }
 0x374   : > { %8229 = vrcp.f32 %v4377_v54  ;;  %v5304_v11 = vunpack.c.l.bf16 %v10950_v51  ;;  %v5367_v26 = vsel %vm11881_vm6, %v5303_v41, 0.0  ;;  %vm4889_vm4 = vcmp.ne.s32.totalorder %v10932_v49, 0  ;;  %vm11891_vm6 = vmmov %vm11873_vm0 }
 0x375   : > { %8231 = vrcp.f32 %v4378_v17  ;;  %vm4923_vm12 = vcmp.lt.s32.totalorder %v10932_v49, 0  ;;  %v4843_v60 = vmul.u32 17, %v4842_v15  ;;  %v8222_v38 = vpop.eup %8221  ;;  %v5250_v63 = vsel %vm11882_vm9, %v10956_v1, 0.0  ;;  %vm11893_vm9 = vmmov %vm11873_vm0 }
 0x376   : > { %v4990_v61 = vadd.s32 17, %v10900_v27  ;;  %v4991_v24 = vadd.s32 17, %v10932_v49  ;;  %v4854_v37 = vmul.u32 17, %v4853_v0  ;;  %v5249_v44 = vadd.f32 %v5248_v34, %v5247_v16  ;;  %vm10987_vm10 = vmand %vm4923_vm12, %vm4889_vm4 }
 0x377   : > { %v10974_v59 = vsel %vm10894_vm14, %v4442_v48, 0.0  ;;  %v4443_v36 = vmul.f32 %v8222_v38, %v10730_v52  ;;  %v5368_v5 = vadd.f32 %v5367_v26, %v5366_v43  ;;  %v8224_v50 = vpop.eup %8223  ;;  %v5305_v23 = vunpack.c.l.bf16 %v10966_v55  ;;  %vm11888_vm14 = vmmov %vm11873_vm0 }
 0x378   : > { %v5369_v52 = vsel %vm11887_vm1, %v5304_v11, 0.0  ;;  %v5251_v53 = vadd.f32 %v5250_v63, %v5249_v44  ;;  %v4444_v32 = vmul.f32 %v8224_v50, %v10755_v28  ;;  %v4844_v6 = vsub.s32 %v10487_v8, %v4843_v60 }
 0x379   : > { %v8226_v2 = vpop.eup %8225  ;;  %v10995_v31 = vsel %vm10926_vm7, %v4443_v36, 0.0  ;;  %v5252_v21 = vsel %vm11888_vm14, %v10974_v59, 0.0  ;;  %vm5057_vm11 = vcmp.lt.s32.totalorder %v5023_v12, 16  ;;  %v4855_v33 = vsub.s32 %v10741_v18, %v4854_v37  ;;  %vm11889_vm7 = vmmov %vm11873_vm0 }
 0x37a   : > { %v4379_v41 = vadd.f32 1.0, %v8226_v2  ;;  %v5024_v15 = vsel %vm10981_vm3, %v4990_v61, %v10900_v27  ;;  %v5025_v56 = vsel %vm10987_vm10, %v4991_v24, %v10932_v49  ;;  %v5370_v47 = vadd.f32 %v5369_v52, %v5368_v5  ;;  %vm11895_vm10 = vmmov %vm11873_vm0 }
 0x37b   : > { %v8228_v19 = vpop.eup %8227  ;;  %v5254_v8 = vsel %vm11873_vm0, %v10995_v31, 0.0  ;;  %v5371_v12 = vsel %vm11889_vm7, %v5305_v23, 0.0  ;;  %v5253_v54 = vadd.f32 %v5252_v21, %v5251_v53  ;;  %v11011_v0 = vsel %vm5057_vm11, %v4444_v32, 0.0  ;;  %vm11897_vm11 = vmmov %vm11873_vm0 }
 0x37c   : > { %8233 = vrcp.f32 %v4379_v41  ;;  %v4380_v28 = vadd.f32 1.0, %v8228_v19  ;;  %11890 = vst [vmem:[#allocation31_spill] sm:$0xff] %v11011_v0  ;;  %vm4890_vm8 = vcmp.ne.s32.totalorder %v4844_v6, 0  ;;  %vm4924_vm13 = vcmp.lt.s32.totalorder %v4844_v6, 0  ;;  %vm11899_vm7 = vmmov %vm11873_vm0 }
 0x37d   : > { %vm5058_vm2 = vcmp.lt.s32.totalorder %v5024_v15, 16  ;;  %v4992_v27 = vadd.s32 17, %v4844_v6  ;;  %vm4891_vm5 = vcmp.ne.s32.totalorder %v4855_v33, 0  ;;  %v5255_v49 = vadd.f32 %v5254_v8, %v5253_v54  ;;  %vm4958_vm12 = vmand %vm4924_vm13, %vm4890_vm8 }
 0x37e   : > { %v8230_v18 = vpop.eup %8229  ;;  %8235 = vrcp.f32 %v4380_v28  ;;  %vm4925_vm15 = vcmp.lt.s32.totalorder %v4855_v33, 0  ;;  %v5372_v48 = vadd.f32 %v5371_v12, %v5370_v47  ;;  %v5256_v17 = vsel %vm11891_vm6, %v11011_v0, 0.0 }
 0x37f   : > { %v8232_v43 = vpop.eup %8231  ;;  %v4445_v16 = vmul.f32 %v8230_v18, %v10806_v40  ;;  %vm5059_vm4 = vcmp.lt.s32.totalorder %v5025_v56, 16  ;;  %v4993_v26 = vadd.s32 17, %v4855_v33  ;;  %vm4959_vm3 = vmand %vm4925_vm15, %vm4891_vm5  ;;  %v5257_v38 = vadd.f32 %v5256_v17, %v5255_v49 }
 0x380   : > { %v4446_v34 = vmul.f32 %v8232_v43, %v10822_v30  ;;  %v5026_v40 = vsel %vm4958_vm12, %v4992_v27, %v4844_v6  ;;  %v5373_v61 = vrot.slane %v5372_v48, 4  ;;  %v11900_v18 = vmov 0.0   ;;  %v5440_v27 = vld [vmem:[%s11348_s6] sm:$0x3] }
 0x381   : > { %v11018_v11 = vsel %vm5058_vm2, %v4445_v16, 0.0  ;;  %v5027_v37 = vsel %vm4959_vm3, %v4993_v26, %v4855_v33  ;;  %vm5060_vm1 = vcmp.lt.s32.totalorder %v5026_v40, 16  ;;  %vm11901_vm8 = vmmov 0  }
 0x382   : > { %11892 = vst [vmem:[#allocation23_spill] sm:$0xff] %v11018_v11  ;;  %v5258_v60 = vsel %vm11893_vm9, %v11018_v11, 0.0  ;;  %v11022_v63 = vsel %vm5059_vm4, %v4446_v34, 0.0  ;;  %v5374_v13 = vadd.f32 %v5373_v61, %v5372_v48  ;;  %vm5061_vm14 = vcmp.lt.s32.totalorder %v5027_v37, 16  ;;  %v5495_v61 = vld [vmem:[%s11349_s7] sm:$0x3] }
 0x383   : > { %11894 = vst [vmem:[#allocation35_spill] sm:$0xff] %v11022_v63  ;;  %v5259_v24 = vadd.f32 %v5258_v60, %v5257_v38  ;;  %v5260_v30 = vsel %vm11895_vm10, %v11022_v63, 0.0  ;;  %vm5445_vm13 = vcmask 1041408   ;;  %vm5441_vm2 = vcmask 31744  }
 0x384   : > { %v5375_v32 = vrot.slane %v5374_v13, 2  ;;  %v5447_v43 = vsel %vm5445_vm13, %v5440_v27, 0  ;;  %vm5545_vm5 = vcmask 122880   ;;  %vm5907_vm15 = vcmask 125952  }
 0x385   : > { %v5261_v50 = vadd.f32 %v5260_v30, %v5259_v24 }
 0x386   : > { %v8234_v44 = vpop.eup %8233  ;;  %v5376_v41 = vadd.f32 %v5375_v32, %v5374_v13 }
 0x387   : > { %v4447_v36 = vmul.f32 %v8234_v44, %v10864_v14  ;;  %v5497_v44 = vsel %vm5445_vm13, %v5495_v61, 0 }
 0x388   : > { %v8236_v5 = vpop.eup %8235  ;;  %v5377_v15 = vrot.slane %v5376_v41, 1 }
 0x389   : > { %v11027_v57 = vsel %vm5060_vm1, %v4447_v36, 0.0  ;;  %v4448_v23 = vmul.f32 %v8236_v5, %v10879_v45 }
 0x38a   : > { %11896 = vst [vmem:[#allocation36_spill] sm:$0xff] %v11027_v57  ;;  %v5262_v52 = vsel %vm11897_vm11, %v11027_v57, 0.0  ;;  %v5378_v8 = vadd.f32 %v5377_v15, %v5376_v41 }
 0x38b   : > { %v5263_v2 = vadd.f32 %v5262_v52, %v5261_v50  ;;  %v11032_v53 = vsel %vm5061_vm14, %v4448_v23, 0.0 }
 0x38c   : > { %11898 = vst [vmem:[#allocation24_spill] sm:$0xff] %v11032_v53  ;;  %v5264_v6 = vsel %vm11873_vm0, %v11032_v53, 0.0 }
 0x38d   : > { %v5265_v21 = vadd.f32 %v5264_v6, %v5263_v2 }
 0x38f   : > { %v5266_v14 = vrot.slane %v5265_v21, 4 }
 0x391   : > { %v5267_v33 = vadd.f32 %v5266_v14, %v5265_v21 }
 0x393   : > { %v5268_v19 = vrot.slane %v5267_v33, 2 }
 0x395   : > { %v5269_v56 = vadd.f32 %v5268_v19, %v5267_v33 }
 0x397   : > { %v5270_v47 = vrot.slane %v5269_v56, 1 }
 0x399   : > { %v5271_v45 = vadd.f32 %v5270_v47, %v5269_v56 }
 0x39b   : > { %v5379_v28 = vadd.f32 %v5378_v8, %v5271_v45 }
 0x39d   : > { %v5380_v12 = vmul.f32 0.00390625, %v5379_v28 }
 0x39f   : > { %v5381_v54 = vpack.c.bf16 %v5380_v12, %v5380_v12 }
 0x3a1   : > { %7352 = vmatmul.mubr.msk.bf16.vlgmr.msra.gmra.mrb[68].mxu1 %vm11899_vm7, %v5381_v54 }
 0x3a2   : > { %7357 = vmatprep.mubr.msk.bf16.mxu1 %vm11901_vm8, %v11900_v18  ;;  %7356 = vmatpush3.bf16.msra.mxu1 %v5447_v43 }
 0x3a3   : > { %7361 = vmatprep.subr.bf16.mxu1 %v11900_v18 }
 0x474   : > { %v5427_v49 = vpop.f32.mrb[68].mxu1 }
 0x475   : > { %v5433_v16 = vsub.f32 0.0, %v5427_v49  ;;  %v7353_v48 = vpop.f32.mrb[69].mxu1 }
 0x476   : > { %v5430_v17 = vpop.f32.mrb[70].mxu1 }
 0x477   : > { %v5434_v34 = vmul.f32 1.442695, %v5433_v16  ;;  %v7354_v26 = vpop.f32.mrb[71].mxu1 }
 0x479   : > { %8237 = vpow2.f32 %v5434_v34 }
 0x483   : > { %v8238_v60 = vpop.eup %8237 }
 0x484   : > { %v5436_v38 = vadd.f32 1.0, %v8238_v60 }
 0x486   : > { %8239 = vrcp.f32 %v5436_v38 }
 0x490   : > { %v8240_v40 = vpop.eup %8239 }
 0x491   : > { %v5438_v24 = vmul.f32 %v8240_v40, %v5427_v49 }
 0x493   : > { %v5439_v37 = vpack.c.bf16 %v5438_v24, %v5438_v24  ;;  %v5570_v24 = vsub.s32 0, %v9184_v22 }
 0x495   : > { %7358 = vmatmul.mubr.msk.bf16.vlgmr.msra.gmra.mrb[72].mxu1 %vm5441_vm2, %v5439_v37 }
 0x496   : > { %7362 = vmatpush3.bf16.msra.mxu1 %v5497_v44  ;;  %7363 = vmatprep.mubr.msk.bf16.mxu1 %vm11901_vm8, %v11900_v18 }
 0x49d   : > { %7364 = vmatmul.mubr.msk.bf16.vlgmr.msra.gmra.mrb[76].mxu1 %vm5441_vm2, %v5439_v37 }
 0x568   : > { %v5483_v30 = vpop.f32.mrb[72].mxu1 }
 0x569   : > { %v5489_v36 = vsub.f32 0.0, %v5483_v30  ;;  %v7359_v13 = vpop.f32.mrb[73].mxu1 }
 0x56a   : > { %v5486_v5 = vpop.f32.mrb[74].mxu1 }
 0x56b   : > { %v7360_v50 = vpop.f32.mrb[75].mxu1  ;;  %v5490_v23 = vmul.f32 1.442695, %v5489_v36 }
 0x56d   : > { %8241 = vpow2.f32 %v5490_v23  ;;  %v11902_v23 = vld [vmem:[#allocation70_spill] sm:$0xff] }
 0x570   : > { %v5533_v52 = vpop.f32.mrb[76].mxu1 }
 0x571   : > { %v5539_v2 = vsub.f32 0.0, %v5533_v52  ;;  %v7365_v32 = vpop.f32.mrb[77].mxu1 }
 0x572   : > { %v5536_v6 = vpop.f32.mrb[78].mxu1  ;;  %v11906_v32 = vld [vmem:[#allocation15_spill] sm:$0xff] }
 0x573   : > { %v5540_v21 = vmul.f32 1.442695, %v5539_v2  ;;  %v7366_v14 = vpop.f32.mrb[79].mxu1  ;;  %v11904_v2 = vld [vmem:[#allocation4_spill] sm:$0xff] }
 0x575   : > { %8243 = vpow2.f32 %v5540_v21  ;;  %v11908_v21 = vld [vmem:[#allocation9_spill] sm:$0xff] }
 0x577   : > { %v8242_v41 = vpop.eup %8241 }
 0x578   : > { %v5492_v33 = vadd.f32 1.0, %v8242_v41  ;;  %v11910_v41 = vld [vmem:[#allocation18_spill] sm:$0xff] }
 0x57a   : > { %8245 = vrcp.f32 %v5492_v33 }
 0x57f   : > { %v8244_v19 = vpop.eup %8243 }
 0x580   : > { %v5542_v15 = vadd.f32 1.0, %v8244_v19  ;;  %v11912_v19 = vld [vmem:[#allocation12_spill] sm:$0xff] }
 0x582   : > { %8247 = vrcp.f32 %v5542_v15 }
 0x584   : > { %v8246_v56 = vpop.eup %8245 }
 0x585   : > { %v5494_v45 = vmul.f32 %v8246_v56, %v5483_v30  ;;  %v11914_v56 = vld [vmem:[#allocation19_spill] sm:$0xff] }
 0x587   : > { %v5546_v12 = vsel %vm5545_vm5, %v5494_v45, -inf }
 0x58c   : > { %v8248_v47 = vpop.eup %8247 }
 0x58d   : > { %v5544_v8 = vmul.f32 %v8248_v47, %v5533_v52 }
 0x58f   : > { %v5557_v28 = vsel %vm5545_vm5, %v5544_v8, -inf }
 0x590   : > { %5558 = vmax.xlane.f32.xlu0 %v5557_v28  ;;  %v8260_v28 = vld [vmem:[%s9570_s12 + $0x4] sm:$0xf] }
 0x594   : > { %5547 = vmax.xlane.f32.xlu0 %v5546_v12 }
 0x61d   : > { %v5559_v54 = vpop.xlane.xlu0 %5558 }
 0x61e   : > { %v5560_v18 = vsub.f32 %v5544_v8, %v5559_v54  ;;  %v8259_v8 = vld [vmem:[%s9570_s12] sm:$0xf]  ;;  %v8261_v54 = vld [vmem:[%s9570_s12 + $0x8] sm:$0xf] }
 0x620   : > { %v5561_v27 = vmul.f32 1.442695, %v5560_v18 }
 0x621   : > { %v5548_v43 = vpop.xlane.xlu0 %5547 }
 0x622   : > { %8249 = vpow2.f32 %v5561_v27  ;;  %v5549_v49 = vsub.f32 %v5494_v45, %v5548_v43  ;;  %v8262_v27 = vld [vmem:[%s9570_s12 + $0xc] sm:$0xf] }
 0x624   : > { %v5550_v16 = vmul.f32 1.442695, %v5549_v49  ;;  %v8263_v49 = vld [vmem:[%s9570_s12 + $0x10] sm:$0xf] }
 0x626   : > { %8251 = vpow2.f32 %v5550_v16 }
 0x62c   : > { %v8250_v48 = vpop.eup %8249 }
 0x62d   : > { %v5563_v17 = vsel %vm5545_vm5, %v8250_v48, 0.0 }
 0x62e   : > { %5564 = vadd.xlane.f32.xlu1 %v5563_v17 }
 0x630   : > { %v8252_v34 = vpop.eup %8251 }
 0x631   : > { %v5552_v26 = vsel %vm5545_vm5, %v8252_v34, 0.0 }
 0x632   : > { %5553 = vadd.xlane.f32.xlu1 %v5552_v26 }
 0x6bb   : > { %v5565_v60 = vpop.xlane.xlu1 %5564 }
 0x6bc   : > { %8253 = vrcp.f32 %v5565_v60  ;;  %v8266_v60 = vld [vmem:[%s9570_s12 + $0x1c] sm:$0xf] }
 0x6bf   : > { %v5554_v38 = vpop.xlane.xlu1 %5553 }
 0x6c0   : > { %8255 = vrcp.f32 %v5554_v38 }
 0x6c6   : > { %v8254_v40 = vpop.eup %8253 }
 0x6c7   : > { %v5567_v61 = vmul.f32 %v8254_v40, %v8250_v48  ;;  %v8264_v48 = vld [vmem:[%s9570_s12 + $0x14] sm:$0xf]  ;;  %v8267_v40 = vld [vmem:[%s9570_s12 + $0x20] sm:$0xf] }
 0x6c9   : > { %v5623_v37 = vpack.c.bf16 %v5567_v61, %v5567_v61 }
 0x6ca   : > { %v8256_v44 = vpop.eup %8255 }
 0x6cb   : > { %v5625_v30 = vpack.i.b16 %v5623_v37, %v5623_v37  ;;  %v5556_v36 = vmul.f32 %v8256_v44, %v8252_v34  ;;  %v8265_v34 = vld [vmem:[%s9570_s12 + $0x18] sm:$0xf]  ;;  %v8269_v44 = vld [vmem:[%s9570_s12 + $0x28] sm:$0xf] }
 0x6cd   : > { %v5630_v13 = vrot.slane %v5625_v30, %v5570_v24  ;;  %v11055_v5 = vrot.slane %v5556_v36, %v5570_v24  ;;  %v8268_v24 = vld [vmem:[%s9570_s12 + $0x24] sm:$0xf]  ;;  %v8270_v36 = vld [vmem:[%s9570_s12 + $0x2c] sm:$0xf] }
 0x6cf   : > { %v11057_v50 = vcombine.low %v5630_v13, %v5630_v13  ;;  %v11061_v52 = vmul.f32 %v11055_v5, %v11902_v23  ;;  %v11065_v22 = vmul.f32 %v11055_v5, %v11904_v2  ;;  %v11069_v6 = vmul.f32 %v11055_v5, %v11906_v32  ;;  %v8271_v23 = vld [vmem:[%s9570_s12 + $0x30] sm:$0xf]  ;;  %v8272_v32 = vld [vmem:[%s9570_s12 + $0x34] sm:$0xf] }
 0x6d0   : > { %v11073_v14 = vmul.f32 %v11055_v5, %v11908_v21  ;;  %v11077_v33 = vmul.f32 %v11055_v5, %v11910_v41  ;;  %v11081_v15 = vmul.f32 %v11055_v5, %v11912_v19  ;;  %v11085_v47 = vmul.f32 %v11055_v5, %v11914_v56  ;;  %v8273_v41 = vld [vmem:[%s9570_s12 + $0x38] sm:$0xf]  ;;  %v8274_v56 = vld [vmem:[%s9570_s12 + $0x3c] sm:$0xf] }
 0x6d1   : > { %11903 = vst [vmem:[#allocation40_spill] sm:$0xff] %v11061_v52  ;;  %11905 = vst [vmem:[#allocation37_spill] sm:$0xff] %v11065_v22  ;;  %v5635_v45 = vmul.bf16 %v8259_v8, %v11057_v50  ;;  %v5636_v12 = vmul.bf16 %v8260_v28, %v11057_v50  ;;  %v5637_v18 = vmul.bf16 %v8261_v54, %v11057_v50  ;;  %v8275_v28 = vld [vmem:[%s9570_s12 + $0x40] sm:$0xf] }
 0x6d2   : > { %11907 = vst [vmem:[#allocation27_spill] sm:$0xff] %v11069_v6  ;;  %11909 = vst [vmem:[#allocation41_spill] sm:$0xff] %v11073_v14  ;;  %v5638_v43 = vmul.bf16 %v8262_v27, %v11057_v50  ;;  %v5639_v16 = vmul.bf16 %v8263_v49, %v11057_v50  ;;  %v5640_v17 = vmul.bf16 %v8264_v48, %v11057_v50  ;;  %v8276_v27 = vld [vmem:[%s9570_s12 + $0x44] sm:$0xf]  ;;  %v8277_v48 = vld [vmem:[%s9570_s12 + $0x48] sm:$0xf] }
 0x6d3   : > { %11911 = vst [vmem:[#allocation38_spill] sm:$0xff] %v11077_v33  ;;  %11913 = vst [vmem:[#allocation29_spill] sm:$0xff] %v11081_v15  ;;  %v5641_v26 = vmul.bf16 %v8265_v34, %v11057_v50  ;;  %v5642_v38 = vmul.bf16 %v8266_v60, %v11057_v50  ;;  %v5643_v61 = vmul.bf16 %v8267_v40, %v11057_v50  ;;  %v8278_v60 = vld [vmem:[%s9570_s12 + $0x4c] sm:$0xf]  ;;  %v11920_v15 = vld [vmem:[#allocation34_spill] sm:$0xff] }
 0x6d4   : > { %11915 = vst [vmem:[#allocation44_spill] sm:$0xff] %v11085_v47  ;;  %v5644_v37 = vmul.bf16 %v8268_v24, %v11057_v50  ;;  %v5645_v30 = vmul.bf16 %v8269_v44, %v11057_v50  ;;  %v5646_v13 = vmul.bf16 %v8270_v36, %v11057_v50  ;;  %v5647_v2 = vmul.bf16 %v8271_v23, %v11057_v50  ;;  %v8279_v24 = vld [vmem:[%s9570_s12 + $0x50] sm:$0xf] }
 0x6d5   : > { %v5648_v21 = vmul.bf16 %v8272_v32, %v11057_v50  ;;  %v5649_v19 = vmul.bf16 %v8273_v41, %v11057_v50  ;;  %v5650_v8 = vmul.bf16 %v8274_v56, %v11057_v50  ;;  %v5651_v54 = vmul.bf16 %v8275_v28, %v11057_v50  ;;  %v11916_v32 = vld [vmem:[#allocation25_spill] sm:$0xff]  ;;  %v11917_v56 = vld [vmem:[#allocation26_spill] sm:$0xff]  ;;  %v11919_v47 = vld [vmem:[#allocation28_spill] sm:$0xff] }
 0x6d6   : > { %v5652_v49 = vmul.bf16 %v8276_v27, %v11057_v50  ;;  %v5653_v34 = vmul.bf16 %v8277_v48, %v11057_v50  ;;  %v5654_v40 = vmul.bf16 %v8278_v60, %v11057_v50  ;;  %v5655_v44 = vmul.bf16 %v8279_v24, %v11057_v50  ;;  %v11918_v27 = vld [vmem:[#allocation33_spill] sm:$0xff] }
 0x6d7   : > { %v5656_v36 = vmul.bf16 %v11057_v50, %v10539_v3  ;;  %v5657_v23 = vmul.bf16 %v11057_v50, %v10579_v25  ;;  %v5658_v41 = vmul.bf16 %v11057_v50, %v11916_v32  ;;  %v5659_v28 = vmul.bf16 %v11057_v50, %v11917_v56 }
 0x6d8   : > { %v5660_v48 = vmul.bf16 %v11057_v50, %v11918_v27  ;;  %v5661_v60 = vmul.bf16 %v11057_v50, %v11919_v47  ;;  %v5662_v24 = vmul.bf16 %v11057_v50, %v11920_v15  ;;  %v5663_v3 = vmul.bf16 %v11057_v50, %v10758_v58 }
 0x6d9   : > { %v5664_v25 = vmul.bf16 %v11057_v50, %v10764_v46  ;;  %v5665_v32 = vmul.bf16 %v11057_v50, %v10868_v10  ;;  %v5666_v56 = vmul.bf16 %v11057_v50, %v10917_v29  ;;  %v5667_v27 = vmul.bf16 %v11057_v50, %v10950_v51 }
 0x6da   : > { %v5668_v47 = vmul.bf16 %v11057_v50, %v10966_v55  ;;  %v6498_v33 = vcombine.low %v5635_v45, %v5636_v12  ;;  %v6499_v15 = vcombine.low %v5637_v18, %v5638_v43  ;;  %v6500_v14 = vcombine.low %v5639_v16, %v5640_v17  ;;  %v11924_v50 = vld [vmem:[#allocation13_spill] sm:$0xff]  ;;  %v11925_v12 = vld [vmem:[#allocation8_spill] sm:$0xff]  ;;  %v11926_v43 = vld [vmem:[#allocation14_spill] sm:$0xff] }
 0x6db   : > { %v6501_v6 = vcombine.low %v5641_v26, %v5642_v38  ;;  %v6502_v58 = vcombine.low %v5643_v61, %v5644_v37  ;;  %v6503_v22 = vcombine.low %v5645_v30, %v5646_v13  ;;  %v6504_v52 = vcombine.low %v5647_v2, %v5648_v21  ;;  %v11927_v17 = vld [vmem:[#allocation22_spill] sm:$0xff]  ;;  %v11928_v38 = vld [vmem:[#allocation21_spill] sm:$0xff]  ;;  %v11929_v37 = vld [vmem:[#allocation16_spill] sm:$0xff] }
 0x6dc   : > { %v6505_v46 = vcombine.low %v5649_v19, %v5650_v8  ;;  %v6506_v53 = vcombine.low %v5651_v54, %v5652_v49  ;;  %v6507_v57 = vcombine.low %v5653_v34, %v5654_v40  ;;  %v6508_v10 = vcombine.low %v5655_v44, %v5656_v36  ;;  %v11930_v13 = vld [vmem:[#allocation10_spill] sm:$0xff]  ;;  %v11932_v8 = vld [vmem:[#allocation17_spill] sm:$0xff]  ;;  %v11933_v49 = vld [vmem:[#allocation39_spill] sm:$0xff] }
 0x6dd   : > { %v6509_v63 = vcombine.low %v5657_v23, %v5658_v41  ;;  %v6510_v11 = vcombine.low %v5659_v28, %v5660_v48  ;;  %v11155_v29 = vcombine.low %v5661_v60, %v5662_v24  ;;  %v11157_v0 = vcombine.low %v5663_v3, %v5664_v25  ;;  %v11931_v21 = vld [vmem:[#allocation30_spill] sm:$0xff]  ;;  %v11934_v40 = vld [vmem:[#allocation20_spill] sm:$0xff]  ;;  %v11935_v3 = vld [vmem:[#allocation31_spill] sm:$0xff] }
 0x6de   : > { %v11159_v51 = vcombine.low %v5665_v32, %v5666_v56  ;;  %v11161_v55 = vcombine.low %v5667_v27, %v5668_v47  ;;  %v5579_v45 = vmul.f32 %v11055_v5, %v11924_v50  ;;  %v5580_v18 = vmul.f32 %v11055_v5, %v11925_v12  ;;  %v11936_v25 = vld [vmem:[#allocation23_spill] sm:$0xff]  ;;  %v11941_v47 = vld [vmem:[#allocation37_spill] sm:$0xff] }
 0x6df   : > { %11921 = vst [vmem:[#allocation42_spill] sm:$0xff] %v11157_v0  ;;  %v5581_v16 = vmul.f32 %v11055_v5, %v11926_v43  ;;  %v5582_v26 = vmul.f32 %v11055_v5, %v11927_v17  ;;  %v5583_v61 = vmul.f32 %v11055_v5, %v11928_v38  ;;  %v5584_v30 = vmul.f32 %v11055_v5, %v11929_v37  ;;  %v11937_v32 = vld [vmem:[#allocation35_spill] sm:$0xff]  ;;  %v11943_v12 = vld [vmem:[#allocation41_spill] sm:$0xff]  ;;  %v11944_v17 = vld [vmem:[#allocation38_spill] sm:$0xff] }
 0x6e0   : > { %11922 = vst [vmem:[#allocation32_spill] sm:$0xff] %v11159_v51  ;;  %11923 = vst [vmem:[#allocation47_spill] sm:$0xff] %v11161_v55  ;;  %v5585_v2 = vmul.f32 %v11055_v5, %v11930_v13  ;;  %v5586_v19 = vmul.f32 %v11055_v5, %v11931_v21  ;;  %v5587_v54 = vmul.f32 %v11055_v5, %v11932_v8  ;;  %v11945_v38 = vld [vmem:[#allocation29_spill] sm:$0xff]  ;;  %v11946_v13 = vld [vmem:[#allocation44_spill] sm:$0xff] }
 0x6e1   : > { %v5588_v34 = vmul.f32 %v11055_v5, %v11933_v49  ;;  %v5589_v44 = vmul.f32 %v11055_v5, %v11934_v40  ;;  %v5590_v36 = vmul.f32 %v11055_v5, %v10738_v39  ;;  %v5591_v23 = vmul.f32 %v11055_v5, %v10787_v35 }
 0x6e2   : > { %v5592_v41 = vmul.f32 %v11055_v5, %v10802_v20  ;;  %v5593_v28 = vmul.f32 %v11055_v5, %v10834_v42  ;;  %v5594_v48 = vmul.f32 %v11055_v5, %v10849_v7  ;;  %v5595_v60 = vmul.f32 %v11055_v5, %v10883_v9 }
 0x6e3   : > { %v5596_v24 = vmul.f32 %v11055_v5, %v10904_v4  ;;  %v5597_v39 = vmul.f32 %v11055_v5, %v10946_v62  ;;  %v5598_v35 = vmul.f32 %v11055_v5, %v10956_v1  ;;  %v5599_v20 = vmul.f32 %v11055_v5, %v10974_v59  ;;  %v11938_v62 = vld [vmem:[#allocation36_spill] sm:$0xff] }
 0x6e4   : > { %v5600_v42 = vmul.f32 %v11055_v5, %v10995_v31  ;;  %v5601_v7 = vmul.f32 %v11055_v5, %v11935_v3  ;;  %v5602_v9 = vmul.f32 %v11055_v5, %v11936_v25  ;;  %v5603_v4 = vmul.f32 %v11055_v5, %v11937_v32  ;;  %v11939_v1 = vld [vmem:[#allocation24_spill] sm:$0xff]  ;;  %v11942_v31 = vld [vmem:[#allocation27_spill] sm:$0xff] }
 0x6e5   : > { %v5604_v56 = vmul.f32 %v11055_v5, %v11938_v62  ;;  %v5605_v27 = vmul.f32 %v11055_v5, %v11939_v1  ;;  %v11940_v59 = vld [vmem:[#allocation40_spill] sm:$0xff]  ;;  %v5607_v43 = vpack.c.bf16 %v11943_v12, %v11942_v31  ;;  %v5608_v37 = vpack.c.bf16 %v11945_v38, %v11944_v17 }
 0x6e6   : > { %v5606_v50 = vpack.c.bf16 %v11941_v47, %v11940_v59  ;;  %v5609_v21 = vpack.c.bf16 %v5579_v45, %v11946_v13  ;;  %v5610_v8 = vpack.c.bf16 %v5581_v16, %v5580_v18  ;;  %v5611_v49 = vpack.c.bf16 %v5583_v61, %v5582_v26 }
 0x6e7   : > { %v5612_v40 = vpack.c.bf16 %v5585_v2, %v5584_v30  ;;  %v5613_v3 = vpack.c.bf16 %v5587_v54, %v5586_v19  ;;  %v5614_v25 = vpack.c.bf16 %v5589_v44, %v5588_v34  ;;  %v5615_v32 = vpack.c.bf16 %v5591_v23, %v5590_v36 }
 0x6e8   : > { %v5616_v62 = vpack.c.bf16 %v5593_v28, %v5592_v41  ;;  %v5617_v55 = vpack.c.bf16 %v5595_v60, %v5594_v48  ;;  %v5618_v5 = vpack.c.bf16 %v5597_v39, %v5596_v24  ;;  %v5619_v1 = vpack.c.bf16 %v5599_v20, %v5598_v35 }
 0x6e9   : > { %v5620_v51 = vpack.c.bf16 %v5601_v7, %v5600_v42  ;;  %v5621_v59 = vpack.c.bf16 %v5603_v4, %v5602_v9  ;;  %v5622_v47 = vpack.c.bf16 %v5605_v27, %v5604_v56  ;;  %v5771_v31 = vadd.bf16 %v6498_v33, %v5606_v50 }
 0x6ea   : > { %v5772_v12 = vadd.bf16 %v6499_v15, %v5607_v43  ;;  %v5773_v0 = vadd.bf16 %v6500_v14, %v5608_v37  ;;  %v5774_v17 = vadd.bf16 %v6501_v6, %v5609_v21  ;;  %v5775_v38 = vadd.bf16 %v6502_v58, %v5610_v8  ;;  %v11947_v6 = vld [vmem:[#allocation42_spill] sm:$0xff] }
 0x6eb   : > { %v5776_v45 = vadd.bf16 %v6503_v22, %v5611_v49  ;;  %v5777_v18 = vadd.bf16 %v6504_v52, %v5612_v40  ;;  %v5778_v16 = vadd.bf16 %v6505_v46, %v5613_v3  ;;  %v5779_v26 = vadd.bf16 %v6506_v53, %v5614_v25  ;;  %v11948_v53 = vld [vmem:[#allocation32_spill] sm:$0xff] }
 0x6ec   : > { %v5780_v61 = vadd.bf16 %v6507_v57, %v5615_v32  ;;  %v5781_v30 = vadd.bf16 %v6508_v10, %v5616_v62  ;;  %v11224_v2 = vadd.bf16 %v6509_v63, %v5617_v55  ;;  %v11226_v19 = vadd.bf16 %v6510_v11, %v5618_v5  ;;  %v11949_v63 = vld [vmem:[#allocation47_spill] sm:$0xff] }
 0x6ed   : > { %v11236_v14 = vadd.bf16 %v11155_v29, %v5619_v1  ;;  %v11239_v52 = vadd.bf16 %v11947_v6, %v5620_v51  ;;  %v11242_v57 = vadd.bf16 %v11948_v53, %v5621_v59  ;;  %v11245_v11 = vadd.bf16 %v11949_v63, %v5622_v47 }
 0x6ee   : > { %v6515_v22 = vcombine.low %v5771_v31, %v5771_v31  ;;  %v6516_v33 = vcombine.high %v5771_v31, %v5771_v31  ;;  %v6517_v15 = vcombine.low %v5772_v12, %v5772_v12  ;;  %v6518_v58 = vcombine.high %v5772_v12, %v5772_v12 }
 0x6ef   : > { %v6519_v46 = vcombine.low %v5773_v0, %v5773_v0  ;;  %v6520_v10 = vcombine.high %v5773_v0, %v5773_v0  ;;  %v6521_v29 = vcombine.low %v5774_v17, %v5774_v17  ;;  %v6522_v51 = vcombine.high %v5774_v17, %v5774_v17 }
 0x6f0   : > { %v6523_v55 = vcombine.low %v5775_v38, %v5775_v38  ;;  %v6524_v54 = vcombine.high %v5775_v38, %v5775_v38  ;;  %v6525_v34 = vcombine.low %v5776_v45, %v5776_v45  ;;  %v6526_v44 = vcombine.high %v5776_v45, %v5776_v45  ;;  %5908 = vst.msk [vmem:[%s11233_s10] sm:$0xf] %vm5907_vm15, %v6515_v22 }
 0x6f1   : > { %5909 = vst.msk [vmem:[%s11233_s10 + $0x4] sm:$0xf] %vm5907_vm15, %v6516_v33  ;;  %5910 = vst.msk [vmem:[%s11233_s10 + $0x8] sm:$0xf] %vm5907_vm15, %v6517_v15  ;;  %v6527_v0 = vcombine.low %v5777_v18, %v5777_v18  ;;  %v6528_v36 = vcombine.high %v5777_v18, %v5777_v18  ;;  %v6529_v23 = vcombine.low %v5778_v16, %v5778_v16 }
 0x6f2   : > { %5911 = vst.msk [vmem:[%s11233_s10 + $0xc] sm:$0xf] %vm5907_vm15, %v6518_v58  ;;  %v6530_v41 = vcombine.high %v5778_v16, %v5778_v16  ;;  %5912 = vst.msk [vmem:[%s11233_s10 + $0x10] sm:$0xf] %vm5907_vm15, %v6519_v46  ;;  %v6531_v28 = vcombine.low %v5779_v26, %v5779_v26  ;;  %v6532_v48 = vcombine.high %v5779_v26, %v5779_v26 }
 0x6f3   : > { %5913 = vst.msk [vmem:[%s11233_s10 + $0x14] sm:$0xf] %vm5907_vm15, %v6520_v10  ;;  %5914 = vst.msk [vmem:[%s11233_s10 + $0x18] sm:$0xf] %vm5907_vm15, %v6521_v29  ;;  %v6533_v60 = vcombine.low %v5780_v61, %v5780_v61  ;;  %v6534_v24 = vcombine.high %v5780_v61, %v5780_v61  ;;  %v6535_v39 = vcombine.low %v5781_v30, %v5781_v30 }
 0x6f4   : > { %5915 = vst.msk [vmem:[%s11233_s10 + $0x1c] sm:$0xf] %vm5907_vm15, %v6522_v51  ;;  %5916 = vst.msk [vmem:[%s11233_s10 + $0x20] sm:$0xf] %vm5907_vm15, %v6523_v55  ;;  %v6536_v35 = vcombine.high %v5781_v30, %v5781_v30  ;;  %v6537_v20 = vcombine.low %v11224_v2, %v11224_v2  ;;  %v6538_v42 = vcombine.high %v11224_v2, %v11224_v2 }
 0x6f5   : > { %5917 = vst.msk [vmem:[%s11233_s10 + $0x24] sm:$0xf] %vm5907_vm15, %v6524_v54  ;;  %5918 = vst.msk [vmem:[%s11233_s10 + $0x28] sm:$0xf] %vm5907_vm15, %v6525_v34  ;;  %v6539_v7 = vcombine.low %v11226_v19, %v11226_v19  ;;  %v6540_v9 = vcombine.high %v11226_v19, %v11226_v19  ;;  %v6541_v4 = vcombine.low %v11236_v14, %v11236_v14 }
 0x6f6   : > { %5919 = vst.msk [vmem:[%s11233_s10 + $0x2c] sm:$0xf] %vm5907_vm15, %v6526_v44  ;;  %5920 = vst.msk [vmem:[%s11233_s10 + $0x30] sm:$0xf] %vm5907_vm15, %v6527_v0  ;;  %v6542_v56 = vcombine.high %v11236_v14, %v11236_v14  ;;  %v6543_v27 = vcombine.low %v11239_v52, %v11239_v52  ;;  %v6544_v50 = vcombine.high %v11239_v52, %v11239_v52 }
 0x6f7   : > { %5921 = vst.msk [vmem:[%s11233_s10 + $0x34] sm:$0xf] %vm5907_vm15, %v6528_v36  ;;  %5922 = vst.msk [vmem:[%s11233_s10 + $0x38] sm:$0xf] %vm5907_vm15, %v6529_v23  ;;  %v6545_v43 = vcombine.low %v11242_v57, %v11242_v57  ;;  %v6546_v37 = vcombine.high %v11242_v57, %v11242_v57  ;;  %v6547_v13 = vcombine.low %v11245_v11, %v11245_v11 }
 0x6f8   : > { %5923 = vst.msk [vmem:[%s11233_s10 + $0x3c] sm:$0xf] %vm5907_vm15, %v6530_v41  ;;  %5924 = vst.msk [vmem:[%s11233_s10 + $0x40] sm:$0xf] %vm5907_vm15, %v6531_v28  ;;  %v6548_v21 = vcombine.high %v11245_v11, %v11245_v11 }
 0x6f9   : > { %5925 = vst.msk [vmem:[%s11233_s10 + $0x44] sm:$0xf] %vm5907_vm15, %v6532_v48  ;;  %5926 = vst.msk [vmem:[%s11233_s10 + $0x48] sm:$0xf] %vm5907_vm15, %v6533_v60 }
 0x6fa   : > { %5927 = vst.msk [vmem:[%s11233_s10 + $0x4c] sm:$0xf] %vm5907_vm15, %v6534_v24  ;;  %5928 = vst.msk [vmem:[%s11233_s10 + $0x50] sm:$0xf] %vm5907_vm15, %v6535_v39 }
 0x6fb   : > { %5929 = vst.msk [vmem:[%s11233_s10 + $0x54] sm:$0xf] %vm5907_vm15, %v6536_v35  ;;  %5930 = vst.msk [vmem:[%s11233_s10 + $0x58] sm:$0xf] %vm5907_vm15, %v6537_v20 }
 0x6fc   : > { %5931 = vst.msk [vmem:[%s11233_s10 + $0x5c] sm:$0xf] %vm5907_vm15, %v6538_v42  ;;  %5932 = vst.msk [vmem:[%s11233_s10 + $0x60] sm:$0xf] %vm5907_vm15, %v6539_v7 }
 0x6fd   : > { %5933 = vst.msk [vmem:[%s11233_s10 + $0x64] sm:$0xf] %vm5907_vm15, %v6540_v9  ;;  %5934 = vst.msk [vmem:[%s11233_s10 + $0x68] sm:$0xf] %vm5907_vm15, %v6541_v4 }
 0x6fe   : > { %5935 = vst.msk [vmem:[%s11233_s10 + $0x6c] sm:$0xf] %vm5907_vm15, %v6542_v56  ;;  %5936 = vst.msk [vmem:[%s11233_s10 + $0x70] sm:$0xf] %vm5907_vm15, %v6543_v27 }
 0x6ff   : > { %5937 = vst.msk [vmem:[%s11233_s10 + $0x74] sm:$0xf] %vm5907_vm15, %v6544_v50  ;;  %5938 = vst.msk [vmem:[%s11233_s10 + $0x78] sm:$0xf] %vm5907_vm15, %v6545_v43 }
 0x700   : > { %5939 = vst.msk [vmem:[%s11233_s10 + $0x7c] sm:$0xf] %vm5907_vm15, %v6546_v37  ;;  %5940 = vst.msk [vmem:[%s11233_s10 + $0x80] sm:$0xf] %vm5907_vm15, %v6547_v13 }
 0x701   : > { %5941 = vst.msk [vmem:[%s11233_s10 + $0x84] sm:$0xf] %vm5907_vm15, %v6548_v21 }
 0x702 PF: > { %s18_s27 = sadd.s32 1, %s8286_s27  }
 0x703   : > { %p15_p4 = scmp.ge.s32.totalorder %s18_s27, 4  }
 0x705   :  { %17 = sbr.rel (!%p15_p4) target bundleno = 1 (0x1), region = 96 }

</bundles_post_ra>
